<compile_context>
chip_gen: v7x
topology: tpu7x:2x2x1
jax: 0.10.0
libtpu: 0.0.40
codegen_flags: <defaults>
</compile_context>

<pallas_src>
import functools

import jax
import jax.numpy as jnp
from jax import lax
from jax.experimental import pallas as pl
from jax.experimental.pallas import tpu as pltpu


# ----------------------------------------------------------------------------
# Exact GELU built only from ops guaranteed to lower in Mosaic
# (Abramowitz & Stegun 7.1.26 erf approximation, |err| < 1.5e-7 — below f32
#  noise, so numerically equivalent to torch.nn.GELU() exact erf form).
# ----------------------------------------------------------------------------
def _erf(x):
    a1, a2, a3, a4, a5 = (0.254829592, -0.284496736, 1.421413741,
                          -1.453152027, 1.061405429)
    p = 0.3275911
    sgn = jnp.where(x >= 0, 1.0, -1.0)
    ax = jnp.abs(x)
    t = 1.0 / (1.0 + p * ax)
    poly = ((((a5 * t + a4) * t + a3) * t + a2) * t + a1) * t
    return sgn * (1.0 - poly * jnp.exp(-ax * ax))


def _gelu_exact(x):
    return 0.5 * x * (1.0 + _erf(x * 0.7071067811865476))


# ----------------------------------------------------------------------------
# Kernel A: MultiheadAttention (+pos embed) + residual + LayerNorm, fused.
# Per-batch block; all weights pre-transposed so every projection is X @ W.
# ----------------------------------------------------------------------------
def _mha_ln_kernel(qb_ref, qp_ref, kvb_ref, kvp_ref,
                   wq_ref, wk_ref, wv_ref, wo_ref,
                   bq_ref, bk_ref, bv_ref, bo_ref,
                   g_ref, be_ref, o_ref, *, nhead, eps):
    qb = qb_ref[0].astype(jnp.float32)                       # (Lq, E) residual
    q_in = qb + qp_ref[0].astype(jnp.float32)                # q = src + pos
    kvb = kvb_ref[0].astype(jnp.float32)                     # value source
    k_in = kvb + kvp_ref[0].astype(jnp.float32)              # k = src + pos
    v_in = kvb                                               # v = src (no pos)

    q = jnp.dot(q_in, wq_ref[...], preferred_element_type=jnp.float32) + bq_ref[...]
    k = jnp.dot(k_in, wk_ref[...], preferred_element_type=jnp.float32) + bk_ref[...]
    v = jnp.dot(v_in, wv_ref[...], preferred_element_type=jnp.float32) + bv_ref[...]

    e_dim = q.shape[-1]
    dh = e_dim // nhead
    scale = 1.0 / float(dh) ** 0.5

    heads = []
    for h in range(nhead):                                   # static unroll
        lo = h * dh
        qh = q[:, lo:lo + dh]
        kh = k[:, lo:lo + dh]
        vh = v[:, lo:lo + dh]
        # scores[q, k] = sum_d Q[q, d] K[k, d]  (NT matmul; no transpose op)
        s = lax.dot_general(qh, kh, (((1,), (1,)), ((), ())),
                            preferred_element_type=jnp.float32) * scale
        s = s - jnp.max(s, axis=-1, keepdims=True)
        p = jnp.exp(s)
        p = p / jnp.sum(p, axis=-1, keepdims=True)
        heads.append(jnp.dot(p, vh, preferred_element_type=jnp.float32))
    ctx = jnp.concatenate(heads, axis=-1)                    # (Lq, E)

    attn = jnp.dot(ctx, wo_ref[...], preferred_element_type=jnp.float32) + bo_ref[...]

    # residual + LayerNorm (fused epilogue — saves one full HBM round trip)
    x = qb + attn
    mu = jnp.mean(x, axis=-1, keepdims=True)
    xc = x - mu
    var = jnp.mean(xc * xc, axis=-1, keepdims=True)
    y = xc * lax.rsqrt(var + eps) * g_ref[...] + be_ref[...]
    o_ref[...] = y[None].astype(o_ref.dtype)


# ----------------------------------------------------------------------------
# Kernel B: Linear -> GELU -> Linear + residual + LayerNorm, fused.
# ----------------------------------------------------------------------------
def _ffn_ln_kernel(x_ref, w1_ref, b1_ref, w2_ref, b2_ref, g_ref, be_ref,
                   o_ref, *, eps):
    x = x_ref[0].astype(jnp.float32)                         # (L, E)
    h = jnp.dot(x, w1_ref[...], preferred_element_type=jnp.float32) + b1_ref[...]
    h = _gelu_exact(h)
    y = jnp.dot(h, w2_ref[...], preferred_element_type=jnp.float32) + b2_ref[...]
    s = x + y
    mu = jnp.mean(s, axis=-1, keepdims=True)
    sc = s - mu
    var = jnp.mean(sc * sc, axis=-1, keepdims=True)
    o = sc * lax.rsqrt(var + eps) * g_ref[...] + be_ref[...]
    o_ref[...] = o[None].astype(o_ref.dtype)


# ----------------------------------------------------------------------------
# pallas_call wrappers
# ----------------------------------------------------------------------------
def _mha_ln_call(q_base, q_pos, kv_base, kv_pos, attn_p, ln_p, *, nhead,
                 eps=1e-5):
    n, lq, e = q_base.shape
    lk = kv_base.shape[1]
    rep2 = lambda i: (0, 0)
    per_q = lambda i: (i, 0, 0)
    kernel = functools.partial(_mha_ln_kernel, nhead=nhead, eps=eps)
    return pl.pallas_call(
        kernel,
        out_shape=jax.ShapeDtypeStruct((n, lq, e), jnp.float32),
        grid_spec=pltpu.PrefetchScalarGridSpec(
            num_scalar_prefetch=0,
            grid=(n,),
            in_specs=[
                pl.BlockSpec((1, lq, e), per_q),
                pl.BlockSpec((1, lq, e), per_q),
                pl.BlockSpec((1, lk, e), per_q),
                pl.BlockSpec((1, lk, e), per_q),
                pl.BlockSpec((e, e), rep2),
                pl.BlockSpec((e, e), rep2),
                pl.BlockSpec((e, e), rep2),
                pl.BlockSpec((e, e), rep2),
                pl.BlockSpec((1, e), rep2),
                pl.BlockSpec((1, e), rep2),
                pl.BlockSpec((1, e), rep2),
                pl.BlockSpec((1, e), rep2),
                pl.BlockSpec((1, e), rep2),
                pl.BlockSpec((1, e), rep2),
            ],
            out_specs=pl.BlockSpec((1, lq, e), per_q),
        ),
        compiler_params=pltpu.CompilerParams(
            dimension_semantics=("parallel",)),      # megacore-shardable batch
    )(q_base, q_pos, kv_base, kv_pos,
      attn_p["wq_t"], attn_p["wk_t"], attn_p["wv_t"], attn_p["wo_t"],
      attn_p["bq"], attn_p["bk"], attn_p["bv"], attn_p["bo"],
      ln_p["g"], ln_p["b"])


def _ffn_ln_call(x, lin1, lin2, ln_p, *, eps=1e-5):
    n, l, e = x.shape
    f = lin1["w_t"].shape[1]
    rep2 = lambda i: (0, 0)
    per_b = lambda i: (i, 0, 0)
    kernel = functools.partial(_ffn_ln_kernel, eps=eps)
    return pl.pallas_call(
        kernel,
        out_shape=jax.ShapeDtypeStruct((n, l, e), jnp.float32),
        grid_spec=pltpu.PrefetchScalarGridSpec(
            num_scalar_prefetch=0,
            grid=(n,),
            in_specs=[
                pl.BlockSpec((1, l, e), per_b),
                pl.BlockSpec((e, f), rep2),
                pl.BlockSpec((1, f), rep2),
                pl.BlockSpec((f, e), rep2),
                pl.BlockSpec((1, e), rep2),
                pl.BlockSpec((1, e), rep2),
                pl.BlockSpec((1, e), rep2),
            ],
            out_specs=pl.BlockSpec((1, l, e), per_b),
        ),
        compiler_params=pltpu.CompilerParams(
            dimension_semantics=("parallel",)),
    )(x, lin1["w_t"], lin1["b"], lin2["w_t"], lin2["b"], ln_p["g"], ln_p["b"])


# ----------------------------------------------------------------------------
# Full DCAEncoderLayer forward
# ----------------------------------------------------------------------------
def dca_encoder_layer_forward(src1, src2, src3, pos1, pos2, pos3, params, *,
                              nhead):
    """Inputs follow the PyTorch (L, N, E) convention; outputs are (L, N, E)."""
    to_b = lambda a: jnp.transpose(a, (1, 0, 2)).astype(jnp.float32)
    s1, s2, s3 = to_b(src1), to_b(src2), to_b(src3)
    p1, p2, p3 = to_b(pos1), to_b(pos2), to_b(pos3)

    # TODO(synk): nn.Dropout layers are stochastic in training mode; they are
    # implemented as identity here (deterministic eval-mode forward).
    s1 = _mha_ln_call(s1, p1, s1, p1, params["self_attn1"], params["norm11"], nhead=nhead)
    s2 = _mha_ln_call(s2, p2, s2, p2, params["self_attn2"], params["norm21"], nhead=nhead)
    s1 = _mha_ln_call(s1, p1, s2, p2, params["multihead_attn1"], params["norm12"], nhead=nhead)
    s1 = _ffn_ln_call(s1, params["linear11"], params["linear12"], params["norm13"])
    s2 = _mha_ln_call(s2, p2, s1, p1, params["multihead_attn2"], params["norm22"], nhead=nhead)
    s2 = _ffn_ln_call(s2, params["linear21"], params["linear22"], params["norm23"])
    s3 = _mha_ln_call(s3, p3, s3, p3, params["self_attn3"], params["norm31"], nhead=nhead)
    s3 = _ffn_ln_call(s3, params["linear31"], params["linear32"], params["norm33"])

    to_l = lambda a: jnp.transpose(a, (1, 0, 2))
    return to_l(s1), to_l(s2), to_l(s3)


# ----------------------------------------------------------------------------
# Parameter construction (PyTorch layouts, re-packed lane-dense for the MXU)
# ----------------------------------------------------------------------------
def _init_mha(key, e):
    ks = jax.random.split(key, 4)
    sc = 1.0 / float(e) ** 0.5
    in_w = jax.random.normal(ks[0], (3 * e, e), jnp.float32) * sc   # in_proj_weight
    in_b = jax.random.normal(ks[1], (3 * e,), jnp.float32) * 0.1    # in_proj_bias
    out_w = jax.random.normal(ks[2], (e, e), jnp.float32) * sc      # out_proj.weight
    out_b = jax.random.normal(ks[3], (e,), jnp.float32) * 0.1       # out_proj.bias
    wq, wk, wv = in_w[:e], in_w[e:2 * e], in_w[2 * e:]
    bq, bk, bv = in_b[:e], in_b[e:2 * e], in_b[2 * e:]
    return dict(wq_t=wq.T, wk_t=wk.T, wv_t=wv.T, wo_t=out_w.T,
                bq=bq.reshape(1, e), bk=bk.reshape(1, e),
                bv=bv.reshape(1, e), bo=out_b.reshape(1, e))


def _init_linear(key, din, dout):
    k1, k2 = jax.random.split(key)
    w = jax.random.normal(k1, (dout, din), jnp.float32) * (1.0 / float(din) ** 0.5)
    b = jax.random.normal(k2, (dout,), jnp.float32) * 0.1
    return dict(w_t=w.T, b=b.reshape(1, dout))


def _init_ln(key, d):
    k1, k2 = jax.random.split(key)
    g = 1.0 + 0.1 * jax.random.normal(k1, (d,), jnp.float32)
    b = 0.1 * jax.random.normal(k2, (d,), jnp.float32)
    return dict(g=g.reshape(1, d), b=b.reshape(1, d))


# ----------------------------------------------------------------------------
# Pure-JAX reference (high-precision matmuls) for the sanity check
# ----------------------------------------------------------------------------
def _ref_ln(x, ln, eps=1e-5):
    mu = jnp.mean(x, axis=-1, keepdims=True)
    var = jnp.mean((x - mu) ** 2, axis=-1, keepdims=True)
    return (x - mu) * lax.rsqrt(var + eps) * ln["g"] + ln["b"]


def _ref_mha_ln(q_base, q_pos, kv_base, kv_pos, p, ln, nhead):
    hp = lax.Precision.HIGHEST
    q_in, k_in, v_in = q_base + q_pos, kv_base + kv_pos, kv_base
    q = jnp.matmul(q_in, p["wq_t"], precision=hp) + p["bq"]
    k = jnp.matmul(k_in, p["wk_t"], precision=hp) + p["bk"]
    v = jnp.matmul(v_in, p["wv_t"], precision=hp) + p["bv"]
    n, lq, e = q.shape
    lk = k.shape[1]
    dh = e // nhead
    qh = q.reshape(n, lq, nhead, dh)
    kh = k.reshape(n, lk, nhead, dh)
    vh = v.reshape(n, lk, nhead, dh)
    s = jnp.einsum("nqhd,nkhd->nhqk", qh, kh, precision=hp) * (float(dh) ** -0.5)
    a = jax.nn.softmax(s, axis=-1)
    ctx = jnp.einsum("nhqk,nkhd->nqhd", a, vh, precision=hp).reshape(n, lq, e)
    attn = jnp.matmul(ctx, p["wo_t"], precision=hp) + p["bo"]
    return _ref_ln(q_base + attn, ln)


def _ref_ffn_ln(x, lin1, lin2, ln):
    hp = lax.Precision.HIGHEST
    h = jax.nn.gelu(jnp.matmul(x, lin1["w_t"], precision=hp) + lin1["b"],
                    approximate=False)
    y = jnp.matmul(h, lin2["w_t"], precision=hp) + lin2["b"]
    return _ref_ln(x + y, ln)


def _reference_forward(src1, src2, src3, pos1, pos2, pos3, params, *, nhead):
    to_b = lambda a: jnp.transpose(a, (1, 0, 2)).astype(jnp.float32)
    s1, s2, s3 = to_b(src1), to_b(src2), to_b(src3)
    p1, p2, p3 = to_b(pos1), to_b(pos2), to_b(pos3)
    s1 = _ref_mha_ln(s1, p1, s1, p1, params["self_attn1"], params["norm11"], nhead)
    s2 = _ref_mha_ln(s2, p2, s2, p2, params["self_attn2"], params["norm21"], nhead)
    s1 = _ref_mha_ln(s1, p1, s2, p2, params["multihead_attn1"], params["norm12"], nhead)
    s1 = _ref_ffn_ln(s1, params["linear11"], params["linear12"], params["norm13"])
    s2 = _ref_mha_ln(s2, p2, s1, p1, params["multihead_attn2"], params["norm22"], nhead)
    s2 = _ref_ffn_ln(s2, params["linear21"], params["linear22"], params["norm23"])
    s3 = _ref_mha_ln(s3, p3, s3, p3, params["self_attn3"], params["norm31"], nhead)
    s3 = _ref_ffn_ln(s3, params["linear31"], params["linear32"], params["norm33"])
    to_l = lambda a: jnp.transpose(a, (1, 0, 2))
    return to_l(s1), to_l(s2), to_l(s3)


if __name__ == "__main__":
    # Small shapes consistent with the module: seq lengths 16/8/8, batch 2,
    # d_model=32, num=16, nhead=4, dim_feedforward=64.
    S1, S2, S3 = 16, 8, 8
    N = 2
    D_MODEL, NUM, NHEAD, FF = 32, 16, 4, 64

    keys = iter(jax.random.split(jax.random.PRNGKey(0), 32))

    src1 = jax.random.normal(next(keys), (S1, N, D_MODEL), jnp.float32)
    src2 = jax.random.normal(next(keys), (S2, N, D_MODEL), jnp.float32)
    src3 = jax.random.normal(next(keys), (S3, N, NUM), jnp.float32)
    pos1 = jax.random.normal(next(keys), (S1, N, D_MODEL), jnp.float32)
    pos2 = jax.random.normal(next(keys), (S2, N, D_MODEL), jnp.float32)
    pos3 = jax.random.normal(next(keys), (S3, N, NUM), jnp.float32)

    params = {
        "self_attn1": _init_mha(next(keys), D_MODEL),
        "norm11": _init_ln(next(keys), D_MODEL),
        "self_attn2": _init_mha(next(keys), D_MODEL),
        "norm21": _init_ln(next(keys), D_MODEL),
        "multihead_attn1": _init_mha(next(keys), D_MODEL),
        "norm12": _init_ln(next(keys), D_MODEL),
        "linear11": _init_linear(next(keys), D_MODEL, FF),
        "linear12": _init_linear(next(keys), FF, D_MODEL),
        "norm13": _init_ln(next(keys), D_MODEL),
        "multihead_attn2": _init_mha(next(keys), D_MODEL),
        "norm22": _init_ln(next(keys), D_MODEL),
        "linear21": _init_linear(next(keys), D_MODEL, FF),
        "linear22": _init_linear(next(keys), FF, D_MODEL),
        "norm23": _init_ln(next(keys), D_MODEL),
        "self_attn3": _init_mha(next(keys), NUM),
        "norm31": _init_ln(next(keys), NUM),
        "linear31": _init_linear(next(keys), NUM, FF),
        "linear32": _init_linear(next(keys), FF, NUM),
        "norm33": _init_ln(next(keys), NUM),
    }

    fwd = jax.jit(functools.partial(dca_encoder_layer_forward, nhead=NHEAD))
    out1, out2, out3 = jax.block_until_ready(
        fwd(src1, src2, src3, pos1, pos2, pos3, params))

    ref1, ref2, ref3 = _reference_forward(
        src1, src2, src3, pos1, pos2, pos3, params, nhead=NHEAD)

    assert out1.shape == (S1, N, D_MODEL)
    assert out2.shape == (S2, N, D_MODEL)
    assert out3.shape == (S3, N, NUM)
    for o, r in ((out1, ref1), (out2, ref2), (out3, ref3)):
        assert bool(jnp.all(jnp.isfinite(o)))
        err = float(jnp.max(jnp.abs(o - r)))
        assert jnp.allclose(o, r, atol=2e-3, rtol=2e-3), f"mismatch: {err}"

    print("KERNEL_OK")
</pallas_src>

<mosaic_0001>
module attributes {stable_mosaic.version = 11 : i64} {
  func.func @_mha_ln_kernel(%arg0: i32, %arg1: memref<1x16x32xf32, #tpu.memory_space<vmem>>, %arg2: memref<1x16x32xf32, #tpu.memory_space<vmem>>, %arg3: memref<1x16x32xf32, #tpu.memory_space<vmem>>, %arg4: memref<1x16x32xf32, #tpu.memory_space<vmem>>, %arg5: memref<32x32xf32, #tpu.memory_space<vmem>>, %arg6: memref<32x32xf32, #tpu.memory_space<vmem>>, %arg7: memref<32x32xf32, #tpu.memory_space<vmem>>, %arg8: memref<32x32xf32, #tpu.memory_space<vmem>>, %arg9: memref<1x32xf32, #tpu.memory_space<vmem>>, %arg10: memref<1x32xf32, #tpu.memory_space<vmem>>, %arg11: memref<1x32xf32, #tpu.memory_space<vmem>>, %arg12: memref<1x32xf32, #tpu.memory_space<vmem>>, %arg13: memref<1x32xf32, #tpu.memory_space<vmem>>, %arg14: memref<1x32xf32, #tpu.memory_space<vmem>>, %arg15: memref<1x16x32xf32, #tpu.memory_space<vmem>>) attributes {dimension_semantics = [#tpu.dimension_semantics<parallel>], iteration_bounds = array<i64: 2>, scalar_prefetch = 0 : i64, scratch_operands = 0 : i64, tpu.core_type = #tpu.core_type<tc>, window_params = [{transform_indices = @transform_0, window_bounds = array<i64: 1, 16, 32>}, {transform_indices = @transform_1, window_bounds = array<i64: 1, 16, 32>}, {transform_indices = @transform_2, window_bounds = array<i64: 1, 16, 32>}, {transform_indices = @transform_3, window_bounds = array<i64: 1, 16, 32>}, {pipeline_mode = #tpu.pipeline_mode<synchronous>, transform_indices = @transform_4, window_bounds = array<i64: 32, 32>}, {pipeline_mode = #tpu.pipeline_mode<synchronous>, transform_indices = @transform_5, window_bounds = array<i64: 32, 32>}, {pipeline_mode = #tpu.pipeline_mode<synchronous>, transform_indices = @transform_6, window_bounds = array<i64: 32, 32>}, {pipeline_mode = #tpu.pipeline_mode<synchronous>, transform_indices = @transform_7, window_bounds = array<i64: 32, 32>}, {pipeline_mode = #tpu.pipeline_mode<synchronous>, transform_indices = @transform_8, window_bounds = array<i64: 1, 32>}, {pipeline_mode = #tpu.pipeline_mode<synchronous>, transform_indices = @transform_9, window_bounds = array<i64: 1, 32>}, {pipeline_mode = #tpu.pipeline_mode<synchronous>, transform_indices = @transform_10, window_bounds = array<i64: 1, 32>}, {pipeline_mode = #tpu.pipeline_mode<synchronous>, transform_indices = @transform_11, window_bounds = array<i64: 1, 32>}, {pipeline_mode = #tpu.pipeline_mode<synchronous>, transform_indices = @transform_12, window_bounds = array<i64: 1, 32>}, {pipeline_mode = #tpu.pipeline_mode<synchronous>, transform_indices = @transform_13, window_bounds = array<i64: 1, 32>}, {transform_indices = @transform_14, window_bounds = array<i64: 1, 16, 32>}]} {
    %c0 = arith.constant 0 : index
    %c0_0 = arith.constant 0 : index
    %c0_1 = arith.constant 0 : index
    %0 = vector.load %arg1[%c0, %c0_0, %c0_1] : memref<1x16x32xf32, #tpu.memory_space<vmem>>, vector<1x16x32xf32>
    %1 = vector.shape_cast %0 : vector<1x16x32xf32> to vector<16x32xf32>
    %c0_2 = arith.constant 0 : index
    %c0_3 = arith.constant 0 : index
    %c0_4 = arith.constant 0 : index
    %2 = vector.load %arg2[%c0_2, %c0_3, %c0_4] : memref<1x16x32xf32, #tpu.memory_space<vmem>>, vector<1x16x32xf32>
    %3 = vector.shape_cast %2 : vector<1x16x32xf32> to vector<16x32xf32>
    %4 = arith.addf %1, %3 : vector<16x32xf32>
    %c0_5 = arith.constant 0 : index
    %c0_6 = arith.constant 0 : index
    %c0_7 = arith.constant 0 : index
    %5 = vector.load %arg3[%c0_5, %c0_6, %c0_7] : memref<1x16x32xf32, #tpu.memory_space<vmem>>, vector<1x16x32xf32>
    %6 = vector.shape_cast %5 : vector<1x16x32xf32> to vector<16x32xf32>
    %c0_8 = arith.constant 0 : index
    %c0_9 = arith.constant 0 : index
    %c0_10 = arith.constant 0 : index
    %7 = vector.load %arg4[%c0_8, %c0_9, %c0_10] : memref<1x16x32xf32, #tpu.memory_space<vmem>>, vector<1x16x32xf32>
    %8 = vector.shape_cast %7 : vector<1x16x32xf32> to vector<16x32xf32>
    %9 = arith.addf %6, %8 : vector<16x32xf32>
    %c0_11 = arith.constant 0 : index
    %c0_12 = arith.constant 0 : index
    %10 = vector.load %arg5[%c0_11, %c0_12] : memref<32x32xf32, #tpu.memory_space<vmem>>, vector<32x32xf32>
    %cst = arith.constant dense<0.000000e+00> : vector<16x32xf32>
    %11 = tpu.matmul %4, %10, %cst {dimension_numbers = #tpu.dot_dimension_numbers<[1], [0], [0], [1], [0, 0, 1, 1], [], []>} : vector<16x32xf32>, vector<32x32xf32>, vector<16x32xf32> -> vector<16x32xf32>
    %c0_13 = arith.constant 0 : index
    %c0_14 = arith.constant 0 : index
    %12 = vector.load %arg9[%c0_13, %c0_14] : memref<1x32xf32, #tpu.memory_space<vmem>>, vector<1x32xf32>
    %13 = vector.broadcast %12 : vector<1x32xf32> to vector<16x32xf32>
    %14 = arith.addf %11, %13 : vector<16x32xf32>
    %c0_15 = arith.constant 0 : index
    %c0_16 = arith.constant 0 : index
    %15 = vector.load %arg6[%c0_15, %c0_16] : memref<32x32xf32, #tpu.memory_space<vmem>>, vector<32x32xf32>
    %cst_17 = arith.constant dense<0.000000e+00> : vector<16x32xf32>
    %16 = tpu.matmul %9, %15, %cst_17 {dimension_numbers = #tpu.dot_dimension_numbers<[1], [0], [0], [1], [0, 0, 1, 1], [], []>} : vector<16x32xf32>, vector<32x32xf32>, vector<16x32xf32> -> vector<16x32xf32>
    %c0_18 = arith.constant 0 : index
    %c0_19 = arith.constant 0 : index
    %17 = vector.load %arg10[%c0_18, %c0_19] : memref<1x32xf32, #tpu.memory_space<vmem>>, vector<1x32xf32>
    %18 = vector.broadcast %17 : vector<1x32xf32> to vector<16x32xf32>
    %19 = arith.addf %16, %18 : vector<16x32xf32>
    %c0_20 = arith.constant 0 : index
    %c0_21 = arith.constant 0 : index
    %20 = vector.load %arg7[%c0_20, %c0_21] : memref<32x32xf32, #tpu.memory_space<vmem>>, vector<32x32xf32>
    %cst_22 = arith.constant dense<0.000000e+00> : vector<16x32xf32>
    %21 = tpu.matmul %6, %20, %cst_22 {dimension_numbers = #tpu.dot_dimension_numbers<[1], [0], [0], [1], [0, 0, 1, 1], [], []>} : vector<16x32xf32>, vector<32x32xf32>, vector<16x32xf32> -> vector<16x32xf32>
    %c0_23 = arith.constant 0 : index
    %c0_24 = arith.constant 0 : index
    %22 = vector.load %arg11[%c0_23, %c0_24] : memref<1x32xf32, #tpu.memory_space<vmem>>, vector<1x32xf32>
    %23 = vector.broadcast %22 : vector<1x32xf32> to vector<16x32xf32>
    %24 = arith.addf %21, %23 : vector<16x32xf32>
    %25 = vector.extract_strided_slice %14 {offsets = [0, 0], sizes = [16, 8], strides = [1, 1]} : vector<16x32xf32> to vector<16x8xf32>
    %26 = vector.extract_strided_slice %19 {offsets = [0, 0], sizes = [16, 8], strides = [1, 1]} : vector<16x32xf32> to vector<16x8xf32>
    %27 = vector.extract_strided_slice %24 {offsets = [0, 0], sizes = [16, 8], strides = [1, 1]} : vector<16x32xf32> to vector<16x8xf32>
    %cst_25 = arith.constant dense<0.000000e+00> : vector<16x16xf32>
    %28 = tpu.matmul %25, %26, %cst_25 {dimension_numbers = #tpu.dot_dimension_numbers<[1], [1], [0], [0], [0, 0, 1, 0], [], []>} : vector<16x8xf32>, vector<16x8xf32>, vector<16x16xf32> -> vector<16x16xf32>
    %cst_26 = arith.constant 0.353553385 : f32
    %29 = vector.broadcast %cst_26 : f32 to vector<16x16xf32>
    %30 = arith.mulf %28, %29 : vector<16x16xf32>
    %cst_27 = arith.constant dense<0xFF800000> : vector<16xf32>
    %31 = vector.multi_reduction <maximumf>, %30, %cst_27 [1] : vector<16x16xf32> to vector<16xf32>
    %32 = vector.shape_cast %31 : vector<16xf32> to vector<16x1xf32>
    %33 = vector.broadcast %32 : vector<16x1xf32> to vector<16x16xf32>
    %34 = arith.subf %30, %33 : vector<16x16xf32>
    %35 = math.exp %34 : vector<16x16xf32>
    %cst_28 = arith.constant dense<0.000000e+00> : vector<16xf32>
    %36 = vector.multi_reduction <add>, %35, %cst_28 [1] : vector<16x16xf32> to vector<16xf32>
    %37 = vector.shape_cast %36 : vector<16xf32> to vector<16x1xf32>
    %38 = vector.broadcast %37 : vector<16x1xf32> to vector<16x16xf32>
    %39 = arith.divf %35, %38 : vector<16x16xf32>
    %cst_29 = arith.constant dense<0.000000e+00> : vector<16x8xf32>
    %40 = tpu.matmul %39, %27, %cst_29 {dimension_numbers = #tpu.dot_dimension_numbers<[1], [0], [0], [1], [0, 0, 1, 1], [], []>} : vector<16x16xf32>, vector<16x8xf32>, vector<16x8xf32> -> vector<16x8xf32>
    %41 = vector.extract_strided_slice %14 {offsets = [0, 8], sizes = [16, 8], strides = [1, 1]} : vector<16x32xf32> to vector<16x8xf32>
    %42 = vector.extract_strided_slice %19 {offsets = [0, 8], sizes = [16, 8], strides = [1, 1]} : vector<16x32xf32> to vector<16x8xf32>
    %43 = vector.extract_strided_slice %24 {offsets = [0, 8], sizes = [16, 8], strides = [1, 1]} : vector<16x32xf32> to vector<16x8xf32>
    %cst_30 = arith.constant dense<0.000000e+00> : vector<16x16xf32>
    %44 = tpu.matmul %41, %42, %cst_30 {dimension_numbers = #tpu.dot_dimension_numbers<[1], [1], [0], [0], [0, 0, 1, 0], [], []>} : vector<16x8xf32>, vector<16x8xf32>, vector<16x16xf32> -> vector<16x16xf32>
    %cst_31 = arith.constant 0.353553385 : f32
    %45 = vector.broadcast %cst_31 : f32 to vector<16x16xf32>
    %46 = arith.mulf %44, %45 : vector<16x16xf32>
    %cst_32 = arith.constant dense<0xFF800000> : vector<16xf32>
    %47 = vector.multi_reduction <maximumf>, %46, %cst_32 [1] : vector<16x16xf32> to vector<16xf32>
    %48 = vector.shape_cast %47 : vector<16xf32> to vector<16x1xf32>
    %49 = vector.broadcast %48 : vector<16x1xf32> to vector<16x16xf32>
    %50 = arith.subf %46, %49 : vector<16x16xf32>
    %51 = math.exp %50 : vector<16x16xf32>
    %cst_33 = arith.constant dense<0.000000e+00> : vector<16xf32>
    %52 = vector.multi_reduction <add>, %51, %cst_33 [1] : vector<16x16xf32> to vector<16xf32>
    %53 = vector.shape_cast %52 : vector<16xf32> to vector<16x1xf32>
    %54 = vector.broadcast %53 : vector<16x1xf32> to vector<16x16xf32>
    %55 = arith.divf %51, %54 : vector<16x16xf32>
    %cst_34 = arith.constant dense<0.000000e+00> : vector<16x8xf32>
    %56 = tpu.matmul %55, %43, %cst_34 {dimension_numbers = #tpu.dot_dimension_numbers<[1], [0], [0], [1], [0, 0, 1, 1], [], []>} : vector<16x16xf32>, vector<16x8xf32>, vector<16x8xf32> -> vector<16x8xf32>
    %57 = vector.extract_strided_slice %14 {offsets = [0, 16], sizes = [16, 8], strides = [1, 1]} : vector<16x32xf32> to vector<16x8xf32>
    %58 = vector.extract_strided_slice %19 {offsets = [0, 16], sizes = [16, 8], strides = [1, 1]} : vector<16x32xf32> to vector<16x8xf32>
    %59 = vector.extract_strided_slice %24 {offsets = [0, 16], sizes = [16, 8], strides = [1, 1]} : vector<16x32xf32> to vector<16x8xf32>
    %cst_35 = arith.constant dense<0.000000e+00> : vector<16x16xf32>
    %60 = tpu.matmul %57, %58, %cst_35 {dimension_numbers = #tpu.dot_dimension_numbers<[1], [1], [0], [0], [0, 0, 1, 0], [], []>} : vector<16x8xf32>, vector<16x8xf32>, vector<16x16xf32> -> vector<16x16xf32>
    %cst_36 = arith.constant 0.353553385 : f32
    %61 = vector.broadcast %cst_36 : f32 to vector<16x16xf32>
    %62 = arith.mulf %60, %61 : vector<16x16xf32>
    %cst_37 = arith.constant dense<0xFF800000> : vector<16xf32>
    %63 = vector.multi_reduction <maximumf>, %62, %cst_37 [1] : vector<16x16xf32> to vector<16xf32>
    %64 = vector.shape_cast %63 : vector<16xf32> to vector<16x1xf32>
    %65 = vector.broadcast %64 : vector<16x1xf32> to vector<16x16xf32>
    %66 = arith.subf %62, %65 : vector<16x16xf32>
    %67 = math.exp %66 : vector<16x16xf32>
    %cst_38 = arith.constant dense<0.000000e+00> : vector<16xf32>
    %68 = vector.multi_reduction <add>, %67, %cst_38 [1] : vector<16x16xf32> to vector<16xf32>
    %69 = vector.shape_cast %68 : vector<16xf32> to vector<16x1xf32>
    %70 = vector.broadcast %69 : vector<16x1xf32> to vector<16x16xf32>
    %71 = arith.divf %67, %70 : vector<16x16xf32>
    %cst_39 = arith.constant dense<0.000000e+00> : vector<16x8xf32>
    %72 = tpu.matmul %71, %59, %cst_39 {dimension_numbers = #tpu.dot_dimension_numbers<[1], [0], [0], [1], [0, 0, 1, 1], [], []>} : vector<16x16xf32>, vector<16x8xf32>, vector<16x8xf32> -> vector<16x8xf32>
    %73 = vector.extract_strided_slice %14 {offsets = [0, 24], sizes = [16, 8], strides = [1, 1]} : vector<16x32xf32> to vector<16x8xf32>
    %74 = vector.extract_strided_slice %19 {offsets = [0, 24], sizes = [16, 8], strides = [1, 1]} : vector<16x32xf32> to vector<16x8xf32>
    %75 = vector.extract_strided_slice %24 {offsets = [0, 24], sizes = [16, 8], strides = [1, 1]} : vector<16x32xf32> to vector<16x8xf32>
    %cst_40 = arith.constant dense<0.000000e+00> : vector<16x16xf32>
    %76 = tpu.matmul %73, %74, %cst_40 {dimension_numbers = #tpu.dot_dimension_numbers<[1], [1], [0], [0], [0, 0, 1, 0], [], []>} : vector<16x8xf32>, vector<16x8xf32>, vector<16x16xf32> -> vector<16x16xf32>
    %cst_41 = arith.constant 0.353553385 : f32
    %77 = vector.broadcast %cst_41 : f32 to vector<16x16xf32>
    %78 = arith.mulf %76, %77 : vector<16x16xf32>
    %cst_42 = arith.constant dense<0xFF800000> : vector<16xf32>
    %79 = vector.multi_reduction <maximumf>, %78, %cst_42 [1] : vector<16x16xf32> to vector<16xf32>
    %80 = vector.shape_cast %79 : vector<16xf32> to vector<16x1xf32>
    %81 = vector.broadcast %80 : vector<16x1xf32> to vector<16x16xf32>
    %82 = arith.subf %78, %81 : vector<16x16xf32>
    %83 = math.exp %82 : vector<16x16xf32>
    %cst_43 = arith.constant dense<0.000000e+00> : vector<16xf32>
    %84 = vector.multi_reduction <add>, %83, %cst_43 [1] : vector<16x16xf32> to vector<16xf32>
    %85 = vector.shape_cast %84 : vector<16xf32> to vector<16x1xf32>
    %86 = vector.broadcast %85 : vector<16x1xf32> to vector<16x16xf32>
    %87 = arith.divf %83, %86 : vector<16x16xf32>
    %cst_44 = arith.constant dense<0.000000e+00> : vector<16x8xf32>
    %88 = tpu.matmul %87, %75, %cst_44 {dimension_numbers = #tpu.dot_dimension_numbers<[1], [0], [0], [1], [0, 0, 1, 1], [], []>} : vector<16x16xf32>, vector<16x8xf32>, vector<16x8xf32> -> vector<16x8xf32>
    %89 = tpu.concatenate %40, %56, %72, %88 in 1 : vector<16x8xf32>, vector<16x8xf32>, vector<16x8xf32>, vector<16x8xf32> -> vector<16x32xf32>
    %c0_45 = arith.constant 0 : index
    %c0_46 = arith.constant 0 : index
    %90 = vector.load %arg8[%c0_45, %c0_46] : memref<32x32xf32, #tpu.memory_space<vmem>>, vector<32x32xf32>
    %cst_47 = arith.constant dense<0.000000e+00> : vector<16x32xf32>
    %91 = tpu.matmul %89, %90, %cst_47 {dimension_numbers = #tpu.dot_dimension_numbers<[1], [0], [0], [1], [0, 0, 1, 1], [], []>} : vector<16x32xf32>, vector<32x32xf32>, vector<16x32xf32> -> vector<16x32xf32>
    %c0_48 = arith.constant 0 : index
    %c0_49 = arith.constant 0 : index
    %92 = vector.load %arg12[%c0_48, %c0_49] : memref<1x32xf32, #tpu.memory_space<vmem>>, vector<1x32xf32>
    %93 = vector.broadcast %92 : vector<1x32xf32> to vector<16x32xf32>
    %94 = arith.addf %91, %93 : vector<16x32xf32>
    %95 = arith.addf %1, %94 : vector<16x32xf32>
    %cst_50 = arith.constant dense<0.000000e+00> : vector<16xf32>
    %96 = vector.multi_reduction <add>, %95, %cst_50 [1] : vector<16x32xf32> to vector<16xf32>
    %97 = vector.shape_cast %96 : vector<16xf32> to vector<16x1xf32>
    %cst_51 = arith.constant 3.200000e+01 : f32
    %98 = vector.broadcast %cst_51 : f32 to vector<16x1xf32>
    %99 = arith.divf %97, %98 : vector<16x1xf32>
    %100 = vector.broadcast %99 : vector<16x1xf32> to vector<16x32xf32>
    %101 = arith.subf %95, %100 : vector<16x32xf32>
    %102 = arith.mulf %101, %101 : vector<16x32xf32>
    %cst_52 = arith.constant dense<0.000000e+00> : vector<16xf32>
    %103 = vector.multi_reduction <add>, %102, %cst_52 [1] : vector<16x32xf32> to vector<16xf32>
    %104 = vector.shape_cast %103 : vector<16xf32> to vector<16x1xf32>
    %cst_53 = arith.constant 3.200000e+01 : f32
    %105 = vector.broadcast %cst_53 : f32 to vector<16x1xf32>
    %106 = arith.divf %104, %105 : vector<16x1xf32>
    %cst_54 = arith.constant 9.99999974E-6 : f32
    %107 = vector.broadcast %cst_54 : f32 to vector<16x1xf32>
    %108 = arith.addf %106, %107 : vector<16x1xf32>
    %109 = math.rsqrt %108 : vector<16x1xf32>
    %110 = vector.broadcast %109 : vector<16x1xf32> to vector<16x32xf32>
    %111 = arith.mulf %101, %110 : vector<16x32xf32>
    %c0_55 = arith.constant 0 : index
    %c0_56 = arith.constant 0 : index
    %112 = vector.load %arg13[%c0_55, %c0_56] : memref<1x32xf32, #tpu.memory_space<vmem>>, vector<1x32xf32>
    %113 = vector.broadcast %112 : vector<1x32xf32> to vector<16x32xf32>
    %114 = arith.mulf %111, %113 : vector<16x32xf32>
    %c0_57 = arith.constant 0 : index
    %c0_58 = arith.constant 0 : index
    %115 = vector.load %arg14[%c0_57, %c0_58] : memref<1x32xf32, #tpu.memory_space<vmem>>, vector<1x32xf32>
    %116 = vector.broadcast %115 : vector<1x32xf32> to vector<16x32xf32>
    %117 = arith.addf %114, %116 : vector<16x32xf32>
    %118 = vector.shape_cast %117 : vector<16x32xf32> to vector<1x16x32xf32>
    %c0_59 = arith.constant 0 : index
    %c0_60 = arith.constant 0 : index
    %c0_61 = arith.constant 0 : index
    %119 = vector.load %arg15[%c0_59, %c0_60, %c0_61] : memref<1x16x32xf32, #tpu.memory_space<vmem>>, vector<1x16x32xf32>
    tpu.vector_store %arg15[%c0_59, %c0_60, %c0_61], %118 {strides = array<i32>} : memref<1x16x32xf32, #tpu.memory_space<vmem>>, vector<1x16x32xf32>,
    return
  }
  func.func @transform_0(%arg0: i32) -> (i32, i32, i32) {
    %c0_i32 = arith.constant 0 : i32
    %c0_i32_0 = arith.constant 0 : i32
    %c0_i32_1 = arith.constant 0 : i32
    return %arg0, %c0_i32, %c0_i32_0 : i32, i32, i32
  }
  func.func @transform_1(%arg0: i32) -> (i32, i32, i32) {
    %c0_i32 = arith.constant 0 : i32
    %c0_i32_0 = arith.constant 0 : i32
    %c0_i32_1 = arith.constant 0 : i32
    return %arg0, %c0_i32, %c0_i32_0 : i32, i32, i32
  }
  func.func @transform_2(%arg0: i32) -> (i32, i32, i32) {
    %c0_i32 = arith.constant 0 : i32
    %c0_i32_0 = arith.constant 0 : i32
    %c0_i32_1 = arith.constant 0 : i32
    return %arg0, %c0_i32, %c0_i32_0 : i32, i32, i32
  }
  func.func @transform_3(%arg0: i32) -> (i32, i32, i32) {
    %c0_i32 = arith.constant 0 : i32
    %c0_i32_0 = arith.constant 0 : i32
    %c0_i32_1 = arith.constant 0 : i32
    return %arg0, %c0_i32, %c0_i32_0 : i32, i32, i32
  }
  func.func @transform_4(%arg0: i32) -> (i32, i32) {
    %c0_i32 = arith.constant 0 : i32
    %c0_i32_0 = arith.constant 0 : i32
    %c0_i32_1 = arith.constant 0 : i32
    return %c0_i32, %c0_i32_0 : i32, i32
  }
  func.func @transform_5(%arg0: i32) -> (i32, i32) {
    %c0_i32 = arith.constant 0 : i32
    %c0_i32_0 = arith.constant 0 : i32
    %c0_i32_1 = arith.constant 0 : i32
    return %c0_i32, %c0_i32_0 : i32, i32
  }
  func.func @transform_6(%arg0: i32) -> (i32, i32) {
    %c0_i32 = arith.constant 0 : i32
    %c0_i32_0 = arith.constant 0 : i32
    %c0_i32_1 = arith.constant 0 : i32
    return %c0_i32, %c0_i32_0 : i32, i32
  }
  func.func @transform_7(%arg0: i32) -> (i32, i32) {
    %c0_i32 = arith.constant 0 : i32
    %c0_i32_0 = arith.constant 0 : i32
    %c0_i32_1 = arith.constant 0 : i32
    return %c0_i32, %c0_i32_0 : i32, i32
  }
  func.func @transform_8(%arg0: i32) -> (i32, i32) {
    %c0_i32 = arith.constant 0 : i32
    %c0_i32_0 = arith.constant 0 : i32
    %c0_i32_1 = arith.constant 0 : i32
    return %c0_i32, %c0_i32_0 : i32, i32
  }
  func.func @transform_9(%arg0: i32) -> (i32, i32) {
    %c0_i32 = arith.constant 0 : i32
    %c0_i32_0 = arith.constant 0 : i32
    %c0_i32_1 = arith.constant 0 : i32
    return %c0_i32, %c0_i32_0 : i32, i32
  }
  func.func @transform_10(%arg0: i32) -> (i32, i32) {
    %c0_i32 = arith.constant 0 : i32
    %c0_i32_0 = arith.constant 0 : i32
    %c0_i32_1 = arith.constant 0 : i32
    return %c0_i32, %c0_i32_0 : i32, i32
  }
  func.func @transform_11(%arg0: i32) -> (i32, i32) {
    %c0_i32 = arith.constant 0 : i32
    %c0_i32_0 = arith.constant 0 : i32
    %c0_i32_1 = arith.constant 0 : i32
    return %c0_i32, %c0_i32_0 : i32, i32
  }
  func.func @transform_12(%arg0: i32) -> (i32, i32) {
    %c0_i32 = arith.constant 0 : i32
    %c0_i32_0 = arith.constant 0 : i32
    %c0_i32_1 = arith.constant 0 : i32
    return %c0_i32, %c0_i32_0 : i32, i32
  }
  func.func @transform_13(%arg0: i32) -> (i32, i32) {
    %c0_i32 = arith.constant 0 : i32
    %c0_i32_0 = arith.constant 0 : i32
    %c0_i32_1 = arith.constant 0 : i32
    return %c0_i32, %c0_i32_0 : i32, i32
  }
  func.func @transform_14(%arg0: i32) -> (i32, i32, i32) {
    %c0_i32 = arith.constant 0 : i32
    %c0_i32_0 = arith.constant 0 : i32
    %c0_i32_1 = arith.constant 0 : i32
    return %arg0, %c0_i32, %c0_i32_0 : i32, i32, i32
  }
}

module attributes {stable_mosaic.version = 11 : i64} {
  func.func @_mha_ln_kernel(%arg0: i32, %arg1: memref<1x8x32xf32, #tpu.memory_space<vmem>>, %arg2: memref<1x8x32xf32, #tpu.memory_space<vmem>>, %arg3: memref<1x8x32xf32, #tpu.memory_space<vmem>>, %arg4: memref<1x8x32xf32, #tpu.memory_space<vmem>>, %arg5: memref<32x32xf32, #tpu.memory_space<vmem>>, %arg6: memref<32x32xf32, #tpu.memory_space<vmem>>, %arg7: memref<32x32xf32, #tpu.memory_space<vmem>>, %arg8: memref<32x32xf32, #tpu.memory_space<vmem>>, %arg9: memref<1x32xf32, #tpu.memory_space<vmem>>, %arg10: memref<1x32xf32, #tpu.memory_space<vmem>>, %arg11: memref<1x32xf32, #tpu.memory_space<vmem>>, %arg12: memref<1x32xf32, #tpu.memory_space<vmem>>, %arg13: memref<1x32xf32, #tpu.memory_space<vmem>>, %arg14: memref<1x32xf32, #tpu.memory_space<vmem>>, %arg15: memref<1x8x32xf32, #tpu.memory_space<vmem>>) attributes {dimension_semantics = [#tpu.dimension_semantics<parallel>], iteration_bounds = array<i64: 2>, scalar_prefetch = 0 : i64, scratch_operands = 0 : i64, tpu.core_type = #tpu.core_type<tc>, window_params = [{transform_indices = @transform_0, window_bounds = array<i64: 1, 8, 32>}, {transform_indices = @transform_1, window_bounds = array<i64: 1, 8, 32>}, {transform_indices = @transform_2, window_bounds = array<i64: 1, 8, 32>}, {transform_indices = @transform_3, window_bounds = array<i64: 1, 8, 32>}, {pipeline_mode = #tpu.pipeline_mode<synchronous>, transform_indices = @transform_4, window_bounds = array<i64: 32, 32>}, {pipeline_mode = #tpu.pipeline_mode<synchronous>, transform_indices = @transform_5, window_bounds = array<i64: 32, 32>}, {pipeline_mode = #tpu.pipeline_mode<synchronous>, transform_indices = @transform_6, window_bounds = array<i64: 32, 32>}, {pipeline_mode = #tpu.pipeline_mode<synchronous>, transform_indices = @transform_7, window_bounds = array<i64: 32, 32>}, {pipeline_mode = #tpu.pipeline_mode<synchronous>, transform_indices = @transform_8, window_bounds = array<i64: 1, 32>}, {pipeline_mode = #tpu.pipeline_mode<synchronous>, transform_indices = @transform_9, window_bounds = array<i64: 1, 32>}, {pipeline_mode = #tpu.pipeline_mode<synchronous>, transform_indices = @transform_10, window_bounds = array<i64: 1, 32>}, {pipeline_mode = #tpu.pipeline_mode<synchronous>, transform_indices = @transform_11, window_bounds = array<i64: 1, 32>}, {pipeline_mode = #tpu.pipeline_mode<synchronous>, transform_indices = @transform_12, window_bounds = array<i64: 1, 32>}, {pipeline_mode = #tpu.pipeline_mode<synchronous>, transform_indices = @transform_13, window_bounds = array<i64: 1, 32>}, {transform_indices = @transform_14, window_bounds = array<i64: 1, 8, 32>}]} {
    %c0 = arith.constant 0 : index
    %c0_0 = arith.constant 0 : index
    %c0_1 = arith.constant 0 : index
    %0 = vector.load %arg1[%c0, %c0_0, %c0_1] : memref<1x8x32xf32, #tpu.memory_space<vmem>>, vector<1x8x32xf32>
    %1 = vector.shape_cast %0 : vector<1x8x32xf32> to vector<8x32xf32>
    %c0_2 = arith.constant 0 : index
    %c0_3 = arith.constant 0 : index
    %c0_4 = arith.constant 0 : index
    %2 = vector.load %arg2[%c0_2, %c0_3, %c0_4] : memref<1x8x32xf32, #tpu.memory_space<vmem>>, vector<1x8x32xf32>
    %3 = vector.shape_cast %2 : vector<1x8x32xf32> to vector<8x32xf32>
    %4 = arith.addf %1, %3 : vector<8x32xf32>
    %c0_5 = arith.constant 0 : index
    %c0_6 = arith.constant 0 : index
    %c0_7 = arith.constant 0 : index
    %5 = vector.load %arg3[%c0_5, %c0_6, %c0_7] : memref<1x8x32xf32, #tpu.memory_space<vmem>>, vector<1x8x32xf32>
    %6 = vector.shape_cast %5 : vector<1x8x32xf32> to vector<8x32xf32>
    %c0_8 = arith.constant 0 : index
    %c0_9 = arith.constant 0 : index
    %c0_10 = arith.constant 0 : index
    %7 = vector.load %arg4[%c0_8, %c0_9, %c0_10] : memref<1x8x32xf32, #tpu.memory_space<vmem>>, vector<1x8x32xf32>
    %8 = vector.shape_cast %7 : vector<1x8x32xf32> to vector<8x32xf32>
    %9 = arith.addf %6, %8 : vector<8x32xf32>
    %c0_11 = arith.constant 0 : index
    %c0_12 = arith.constant 0 : index
    %10 = vector.load %arg5[%c0_11, %c0_12] : memref<32x32xf32, #tpu.memory_space<vmem>>, vector<32x32xf32>
    %cst = arith.constant dense<0.000000e+00> : vector<8x32xf32>
    %11 = tpu.matmul %4, %10, %cst {dimension_numbers = #tpu.dot_dimension_numbers<[1], [0], [0], [1], [0, 0, 1, 1], [], []>} : vector<8x32xf32>, vector<32x32xf32>, vector<8x32xf32> -> vector<8x32xf32>
    %c0_13 = arith.constant 0 : index
    %c0_14 = arith.constant 0 : index
    %12 = vector.load %arg9[%c0_13, %c0_14] : memref<1x32xf32, #tpu.memory_space<vmem>>, vector<1x32xf32>
    %13 = vector.broadcast %12 : vector<1x32xf32> to vector<8x32xf32>
    %14 = arith.addf %11, %13 : vector<8x32xf32>
    %c0_15 = arith.constant 0 : index
    %c0_16 = arith.constant 0 : index
    %15 = vector.load %arg6[%c0_15, %c0_16] : memref<32x32xf32, #tpu.memory_space<vmem>>, vector<32x32xf32>
    %cst_17 = arith.constant dense<0.000000e+00> : vector<8x32xf32>
    %16 = tpu.matmul %9, %15, %cst_17 {dimension_numbers = #tpu.dot_dimension_numbers<[1], [0], [0], [1], [0, 0, 1, 1], [], []>} : vector<8x32xf32>, vector<32x32xf32>, vector<8x32xf32> -> vector<8x32xf32>
    %c0_18 = arith.constant 0 : index
    %c0_19 = arith.constant 0 : index
    %17 = vector.load %arg10[%c0_18, %c0_19] : memref<1x32xf32, #tpu.memory_space<vmem>>, vector<1x32xf32>
    %18 = vector.broadcast %17 : vector<1x32xf32> to vector<8x32xf32>
    %19 = arith.addf %16, %18 : vector<8x32xf32>
    %c0_20 = arith.constant 0 : index
    %c0_21 = arith.constant 0 : index
    %20 = vector.load %arg7[%c0_20, %c0_21] : memref<32x32xf32, #tpu.memory_space<vmem>>, vector<32x32xf32>
    %cst_22 = arith.constant dense<0.000000e+00> : vector<8x32xf32>
    %21 = tpu.matmul %6, %20, %cst_22 {dimension_numbers = #tpu.dot_dimension_numbers<[1], [0], [0], [1], [0, 0, 1, 1], [], []>} : vector<8x32xf32>, vector<32x32xf32>, vector<8x32xf32> -> vector<8x32xf32>
    %c0_23 = arith.constant 0 : index
    %c0_24 = arith.constant 0 : index
    %22 = vector.load %arg11[%c0_23, %c0_24] : memref<1x32xf32, #tpu.memory_space<vmem>>, vector<1x32xf32>
    %23 = vector.broadcast %22 : vector<1x32xf32> to vector<8x32xf32>
    %24 = arith.addf %21, %23 : vector<8x32xf32>
    %25 = vector.extract_strided_slice %14 {offsets = [0, 0], sizes = [8, 8], strides = [1, 1]} : vector<8x32xf32> to vector<8x8xf32>
    %26 = vector.extract_strided_slice %19 {offsets = [0, 0], sizes = [8, 8], strides = [1, 1]} : vector<8x32xf32> to vector<8x8xf32>
    %27 = vector.extract_strided_slice %24 {offsets = [0, 0], sizes = [8, 8], strides = [1, 1]} : vector<8x32xf32> to vector<8x8xf32>
    %cst_25 = arith.constant dense<0.000000e+00> : vector<8x8xf32>
    %28 = tpu.matmul %25, %26, %cst_25 {dimension_numbers = #tpu.dot_dimension_numbers<[1], [1], [0], [0], [0, 0, 1, 0], [], []>} : vector<8x8xf32>, vector<8x8xf32>, vector<8x8xf32> -> vector<8x8xf32>
    %cst_26 = arith.constant 0.353553385 : f32
    %29 = vector.broadcast %cst_26 : f32 to vector<8x8xf32>
    %30 = arith.mulf %28, %29 : vector<8x8xf32>
    %cst_27 = arith.constant dense<0xFF800000> : vector<8xf32>
    %31 = vector.multi_reduction <maximumf>, %30, %cst_27 [1] : vector<8x8xf32> to vector<8xf32>
    %32 = vector.shape_cast %31 : vector<8xf32> to vector<8x1xf32>
    %33 = vector.broadcast %32 : vector<8x1xf32> to vector<8x8xf32>
    %34 = arith.subf %30, %33 : vector<8x8xf32>
    %35 = math.exp %34 : vector<8x8xf32>
    %cst_28 = arith.constant dense<0.000000e+00> : vector<8xf32>
    %36 = vector.multi_reduction <add>, %35, %cst_28 [1] : vector<8x8xf32> to vector<8xf32>
    %37 = vector.shape_cast %36 : vector<8xf32> to vector<8x1xf32>
    %38 = vector.broadcast %37 : vector<8x1xf32> to vector<8x8xf32>
    %39 = arith.divf %35, %38 : vector<8x8xf32>
    %cst_29 = arith.constant dense<0.000000e+00> : vector<8x8xf32>
    %40 = tpu.matmul %39, %27, %cst_29 {dimension_numbers = #tpu.dot_dimension_numbers<[1], [0], [0], [1], [0, 0, 1, 1], [], []>} : vector<8x8xf32>, vector<8x8xf32>, vector<8x8xf32> -> vector<8x8xf32>
    %41 = vector.extract_strided_slice %14 {offsets = [0, 8], sizes = [8, 8], strides = [1, 1]} : vector<8x32xf32> to vector<8x8xf32>
    %42 = vector.extract_strided_slice %19 {offsets = [0, 8], sizes = [8, 8], strides = [1, 1]} : vector<8x32xf32> to vector<8x8xf32>
    %43 = vector.extract_strided_slice %24 {offsets = [0, 8], sizes = [8, 8], strides = [1, 1]} : vector<8x32xf32> to vector<8x8xf32>
    %cst_30 = arith.constant dense<0.000000e+00> : vector<8x8xf32>
    %44 = tpu.matmul %41, %42, %cst_30 {dimension_numbers = #tpu.dot_dimension_numbers<[1], [1], [0], [0], [0, 0, 1, 0], [], []>} : vector<8x8xf32>, vector<8x8xf32>, vector<8x8xf32> -> vector<8x8xf32>
    %cst_31 = arith.constant 0.353553385 : f32
    %45 = vector.broadcast %cst_31 : f32 to vector<8x8xf32>
    %46 = arith.mulf %44, %45 : vector<8x8xf32>
    %cst_32 = arith.constant dense<0xFF800000> : vector<8xf32>
    %47 = vector.multi_reduction <maximumf>, %46, %cst_32 [1] : vector<8x8xf32> to vector<8xf32>
    %48 = vector.shape_cast %47 : vector<8xf32> to vector<8x1xf32>
    %49 = vector.broadcast %48 : vector<8x1xf32> to vector<8x8xf32>
    %50 = arith.subf %46, %49 : vector<8x8xf32>
    %51 = math.exp %50 : vector<8x8xf32>
    %cst_33 = arith.constant dense<0.000000e+00> : vector<8xf32>
    %52 = vector.multi_reduction <add>, %51, %cst_33 [1] : vector<8x8xf32> to vector<8xf32>
    %53 = vector.shape_cast %52 : vector<8xf32> to vector<8x1xf32>
    %54 = vector.broadcast %53 : vector<8x1xf32> to vector<8x8xf32>
    %55 = arith.divf %51, %54 : vector<8x8xf32>
    %cst_34 = arith.constant dense<0.000000e+00> : vector<8x8xf32>
    %56 = tpu.matmul %55, %43, %cst_34 {dimension_numbers = #tpu.dot_dimension_numbers<[1], [0], [0], [1], [0, 0, 1, 1], [], []>} : vector<8x8xf32>, vector<8x8xf32>, vector<8x8xf32> -> vector<8x8xf32>
    %57 = vector.extract_strided_slice %14 {offsets = [0, 16], sizes = [8, 8], strides = [1, 1]} : vector<8x32xf32> to vector<8x8xf32>
    %58 = vector.extract_strided_slice %19 {offsets = [0, 16], sizes = [8, 8], strides = [1, 1]} : vector<8x32xf32> to vector<8x8xf32>
    %59 = vector.extract_strided_slice %24 {offsets = [0, 16], sizes = [8, 8], strides = [1, 1]} : vector<8x32xf32> to vector<8x8xf32>
    %cst_35 = arith.constant dense<0.000000e+00> : vector<8x8xf32>
    %60 = tpu.matmul %57, %58, %cst_35 {dimension_numbers = #tpu.dot_dimension_numbers<[1], [1], [0], [0], [0, 0, 1, 0], [], []>} : vector<8x8xf32>, vector<8x8xf32>, vector<8x8xf32> -> vector<8x8xf32>
    %cst_36 = arith.constant 0.353553385 : f32
    %61 = vector.broadcast %cst_36 : f32 to vector<8x8xf32>
    %62 = arith.mulf %60, %61 : vector<8x8xf32>
    %cst_37 = arith.constant dense<0xFF800000> : vector<8xf32>
    %63 = vector.multi_reduction <maximumf>, %62, %cst_37 [1] : vector<8x8xf32> to vector<8xf32>
    %64 = vector.shape_cast %63 : vector<8xf32> to vector<8x1xf32>
    %65 = vector.broadcast %64 : vector<8x1xf32> to vector<8x8xf32>
    %66 = arith.subf %62, %65 : vector<8x8xf32>
    %67 = math.exp %66 : vector<8x8xf32>
    %cst_38 = arith.constant dense<0.000000e+00> : vector<8xf32>
    %68 = vector.multi_reduction <add>, %67, %cst_38 [1] : vector<8x8xf32> to vector<8xf32>
    %69 = vector.shape_cast %68 : vector<8xf32> to vector<8x1xf32>
    %70 = vector.broadcast %69 : vector<8x1xf32> to vector<8x8xf32>
    %71 = arith.divf %67, %70 : vector<8x8xf32>
    %cst_39 = arith.constant dense<0.000000e+00> : vector<8x8xf32>
    %72 = tpu.matmul %71, %59, %cst_39 {dimension_numbers = #tpu.dot_dimension_numbers<[1], [0], [0], [1], [0, 0, 1, 1], [], []>} : vector<8x8xf32>, vector<8x8xf32>, vector<8x8xf32> -> vector<8x8xf32>
    %73 = vector.extract_strided_slice %14 {offsets = [0, 24], sizes = [8, 8], strides = [1, 1]} : vector<8x32xf32> to vector<8x8xf32>
    %74 = vector.extract_strided_slice %19 {offsets = [0, 24], sizes = [8, 8], strides = [1, 1]} : vector<8x32xf32> to vector<8x8xf32>
    %75 = vector.extract_strided_slice %24 {offsets = [0, 24], sizes = [8, 8], strides = [1, 1]} : vector<8x32xf32> to vector<8x8xf32>
    %cst_40 = arith.constant dense<0.000000e+00> : vector<8x8xf32>
    %76 = tpu.matmul %73, %74, %cst_40 {dimension_numbers = #tpu.dot_dimension_numbers<[1], [1], [0], [0], [0, 0, 1, 0], [], []>} : vector<8x8xf32>, vector<8x8xf32>, vector<8x8xf32> -> vector<8x8xf32>
    %cst_41 = arith.constant 0.353553385 : f32
    %77 = vector.broadcast %cst_41 : f32 to vector<8x8xf32>
    %78 = arith.mulf %76, %77 : vector<8x8xf32>
    %cst_42 = arith.constant dense<0xFF800000> : vector<8xf32>
    %79 = vector.multi_reduction <maximumf>, %78, %cst_42 [1] : vector<8x8xf32> to vector<8xf32>
    %80 = vector.shape_cast %79 : vector<8xf32> to vector<8x1xf32>
    %81 = vector.broadcast %80 : vector<8x1xf32> to vector<8x8xf32>
    %82 = arith.subf %78, %81 : vector<8x8xf32>
    %83 = math.exp %82 : vector<8x8xf32>
    %cst_43 = arith.constant dense<0.000000e+00> : vector<8xf32>
    %84 = vector.multi_reduction <add>, %83, %cst_43 [1] : vector<8x8xf32> to vector<8xf32>
    %85 = vector.shape_cast %84 : vector<8xf32> to vector<8x1xf32>
    %86 = vector.broadcast %85 : vector<8x1xf32> to vector<8x8xf32>
    %87 = arith.divf %83, %86 : vector<8x8xf32>
    %cst_44 = arith.constant dense<0.000000e+00> : vector<8x8xf32>
    %88 = tpu.matmul %87, %75, %cst_44 {dimension_numbers = #tpu.dot_dimension_numbers<[1], [0], [0], [1], [0, 0, 1, 1], [], []>} : vector<8x8xf32>, vector<8x8xf32>, vector<8x8xf32> -> vector<8x8xf32>
    %89 = tpu.concatenate %40, %56, %72, %88 in 1 : vector<8x8xf32>, vector<8x8xf32>, vector<8x8xf32>, vector<8x8xf32> -> vector<8x32xf32>
    %c0_45 = arith.constant 0 : index
    %c0_46 = arith.constant 0 : index
    %90 = vector.load %arg8[%c0_45, %c0_46] : memref<32x32xf32, #tpu.memory_space<vmem>>, vector<32x32xf32>
    %cst_47 = arith.constant dense<0.000000e+00> : vector<8x32xf32>
    %91 = tpu.matmul %89, %90, %cst_47 {dimension_numbers = #tpu.dot_dimension_numbers<[1], [0], [0], [1], [0, 0, 1, 1], [], []>} : vector<8x32xf32>, vector<32x32xf32>, vector<8x32xf32> -> vector<8x32xf32>
    %c0_48 = arith.constant 0 : index
    %c0_49 = arith.constant 0 : index
    %92 = vector.load %arg12[%c0_48, %c0_49] : memref<1x32xf32, #tpu.memory_space<vmem>>, vector<1x32xf32>
    %93 = vector.broadcast %92 : vector<1x32xf32> to vector<8x32xf32>
    %94 = arith.addf %91, %93 : vector<8x32xf32>
    %95 = arith.addf %1, %94 : vector<8x32xf32>
    %cst_50 = arith.constant dense<0.000000e+00> : vector<8xf32>
    %96 = vector.multi_reduction <add>, %95, %cst_50 [1] : vector<8x32xf32> to vector<8xf32>
    %97 = vector.shape_cast %96 : vector<8xf32> to vector<8x1xf32>
    %cst_51 = arith.constant 3.200000e+01 : f32
    %98 = vector.broadcast %cst_51 : f32 to vector<8x1xf32>
    %99 = arith.divf %97, %98 : vector<8x1xf32>
    %100 = vector.broadcast %99 : vector<8x1xf32> to vector<8x32xf32>
    %101 = arith.subf %95, %100 : vector<8x32xf32>
    %102 = arith.mulf %101, %101 : vector<8x32xf32>
    %cst_52 = arith.constant dense<0.000000e+00> : vector<8xf32>
    %103 = vector.multi_reduction <add>, %102, %cst_52 [1] : vector<8x32xf32> to vector<8xf32>
    %104 = vector.shape_cast %103 : vector<8xf32> to vector<8x1xf32>
    %cst_53 = arith.constant 3.200000e+01 : f32
    %105 = vector.broadcast %cst_53 : f32 to vector<8x1xf32>
    %106 = arith.divf %104, %105 : vector<8x1xf32>
    %cst_54 = arith.constant 9.99999974E-6 : f32
    %107 = vector.broadcast %cst_54 : f32 to vector<8x1xf32>
    %108 = arith.addf %106, %107 : vector<8x1xf32>
    %109 = math.rsqrt %108 : vector<8x1xf32>
    %110 = vector.broadcast %109 : vector<8x1xf32> to vector<8x32xf32>
    %111 = arith.mulf %101, %110 : vector<8x32xf32>
    %c0_55 = arith.constant 0 : index
    %c0_56 = arith.constant 0 : index
    %112 = vector.load %arg13[%c0_55, %c0_56] : memref<1x32xf32, #tpu.memory_space<vmem>>, vector<1x32xf32>
    %113 = vector.broadcast %112 : vector<1x32xf32> to vector<8x32xf32>
    %114 = arith.mulf %111, %113 : vector<8x32xf32>
    %c0_57 = arith.constant 0 : index
    %c0_58 = arith.constant 0 : index
    %115 = vector.load %arg14[%c0_57, %c0_58] : memref<1x32xf32, #tpu.memory_space<vmem>>, vector<1x32xf32>
    %116 = vector.broadcast %115 : vector<1x32xf32> to vector<8x32xf32>
    %117 = arith.addf %114, %116 : vector<8x32xf32>
    %118 = vector.shape_cast %117 : vector<8x32xf32> to vector<1x8x32xf32>
    %c0_59 = arith.constant 0 : index
    %c0_60 = arith.constant 0 : index
    %c0_61 = arith.constant 0 : index
    %119 = vector.load %arg15[%c0_59, %c0_60, %c0_61] : memref<1x8x32xf32, #tpu.memory_space<vmem>>, vector<1x8x32xf32>
    tpu.vector_store %arg15[%c0_59, %c0_60, %c0_61], %118 {strides = array<i32>} : memref<1x8x32xf32, #tpu.memory_space<vmem>>, vector<1x8x32xf32>,
    return
  }
  func.func @transform_0(%arg0: i32) -> (i32, i32, i32) {
    %c0_i32 = arith.constant 0 : i32
    %c0_i32_0 = arith.constant 0 : i32
    %c0_i32_1 = arith.constant 0 : i32
    return %arg0, %c0_i32, %c0_i32_0 : i32, i32, i32
  }
  func.func @transform_1(%arg0: i32) -> (i32, i32, i32) {
    %c0_i32 = arith.constant 0 : i32
    %c0_i32_0 = arith.constant 0 : i32
    %c0_i32_1 = arith.constant 0 : i32
    return %arg0, %c0_i32, %c0_i32_0 : i32, i32, i32
  }
  func.func @transform_2(%arg0: i32) -> (i32, i32, i32) {
    %c0_i32 = arith.constant 0 : i32
    %c0_i32_0 = arith.constant 0 : i32
    %c0_i32_1 = arith.constant 0 : i32
    return %arg0, %c0_i32, %c0_i32_0 : i32, i32, i32
  }
  func.func @transform_3(%arg0: i32) -> (i32, i32, i32) {
    %c0_i32 = arith.constant 0 : i32
    %c0_i32_0 = arith.constant 0 : i32
    %c0_i32_1 = arith.constant 0 : i32
    return %arg0, %c0_i32, %c0_i32_0 : i32, i32, i32
  }
  func.func @transform_4(%arg0: i32) -> (i32, i32) {
    %c0_i32 = arith.constant 0 : i32
    %c0_i32_0 = arith.constant 0 : i32
    %c0_i32_1 = arith.constant 0 : i32
    return %c0_i32, %c0_i32_0 : i32, i32
  }
  func.func @transform_5(%arg0: i32) -> (i32, i32) {
    %c0_i32 = arith.constant 0 : i32
    %c0_i32_0 = arith.constant 0 : i32
    %c0_i32_1 = arith.constant 0 : i32
    return %c0_i32, %c0_i32_0 : i32, i32
  }
  func.func @transform_6(%arg0: i32) -> (i32, i32) {
    %c0_i32 = arith.constant 0 : i32
    %c0_i32_0 = arith.constant 0 : i32
    %c0_i32_1 = arith.constant 0 : i32
    return %c0_i32, %c0_i32_0 : i32, i32
  }
  func.func @transform_7(%arg0: i32) -> (i32, i32) {
    %c0_i32 = arith.constant 0 : i32
    %c0_i32_0 = arith.constant 0 : i32
    %c0_i32_1 = arith.constant 0 : i32
    return %c0_i32, %c0_i32_0 : i32, i32
  }
  func.func @transform_8(%arg0: i32) -> (i32, i32) {
    %c0_i32 = arith.constant 0 : i32
    %c0_i32_0 = arith.constant 0 : i32
    %c0_i32_1 = arith.constant 0 : i32
    return %c0_i32, %c0_i32_0 : i32, i32
  }
  func.func @transform_9(%arg0: i32) -> (i32, i32) {
    %c0_i32 = arith.constant 0 : i32
    %c0_i32_0 = arith.constant 0 : i32
    %c0_i32_1 = arith.constant 0 : i32
    return %c0_i32, %c0_i32_0 : i32, i32
  }
  func.func @transform_10(%arg0: i32) -> (i32, i32) {
    %c0_i32 = arith.constant 0 : i32
    %c0_i32_0 = arith.constant 0 : i32
    %c0_i32_1 = arith.constant 0 : i32
    return %c0_i32, %c0_i32_0 : i32, i32
  }
  func.func @transform_11(%arg0: i32) -> (i32, i32) {
    %c0_i32 = arith.constant 0 : i32
    %c0_i32_0 = arith.constant 0 : i32
    %c0_i32_1 = arith.constant 0 : i32
    return %c0_i32, %c0_i32_0 : i32, i32
  }
  func.func @transform_12(%arg0: i32) -> (i32, i32) {
    %c0_i32 = arith.constant 0 : i32
    %c0_i32_0 = arith.constant 0 : i32
    %c0_i32_1 = arith.constant 0 : i32
    return %c0_i32, %c0_i32_0 : i32, i32
  }
  func.func @transform_13(%arg0: i32) -> (i32, i32) {
    %c0_i32 = arith.constant 0 : i32
    %c0_i32_0 = arith.constant 0 : i32
    %c0_i32_1 = arith.constant 0 : i32
    return %c0_i32, %c0_i32_0 : i32, i32
  }
  func.func @transform_14(%arg0: i32) -> (i32, i32, i32) {
    %c0_i32 = arith.constant 0 : i32
    %c0_i32_0 = arith.constant 0 : i32
    %c0_i32_1 = arith.constant 0 : i32
    return %arg0, %c0_i32, %c0_i32_0 : i32, i32, i32
  }
}

module attributes {stable_mosaic.version = 11 : i64} {
  func.func @_mha_ln_kernel(%arg0: i32, %arg1: memref<1x16x32xf32, #tpu.memory_space<vmem>>, %arg2: memref<1x16x32xf32, #tpu.memory_space<vmem>>, %arg3: memref<1x8x32xf32, #tpu.memory_space<vmem>>, %arg4: memref<1x8x32xf32, #tpu.memory_space<vmem>>, %arg5: memref<32x32xf32, #tpu.memory_space<vmem>>, %arg6: memref<32x32xf32, #tpu.memory_space<vmem>>, %arg7: memref<32x32xf32, #tpu.memory_space<vmem>>, %arg8: memref<32x32xf32, #tpu.memory_space<vmem>>, %arg9: memref<1x32xf32, #tpu.memory_space<vmem>>, %arg10: memref<1x32xf32, #tpu.memory_space<vmem>>, %arg11: memref<1x32xf32, #tpu.memory_space<vmem>>, %arg12: memref<1x32xf32, #tpu.memory_space<vmem>>, %arg13: memref<1x32xf32, #tpu.memory_space<vmem>>, %arg14: memref<1x32xf32, #tpu.memory_space<vmem>>, %arg15: memref<1x16x32xf32, #tpu.memory_space<vmem>>) attributes {dimension_semantics = [#tpu.dimension_semantics<parallel>], iteration_bounds = array<i64: 2>, scalar_prefetch = 0 : i64, scratch_operands = 0 : i64, tpu.core_type = #tpu.core_type<tc>, window_params = [{transform_indices = @transform_0, window_bounds = array<i64: 1, 16, 32>}, {transform_indices = @transform_1, window_bounds = array<i64: 1, 16, 32>}, {transform_indices = @transform_2, window_bounds = array<i64: 1, 8, 32>}, {transform_indices = @transform_3, window_bounds = array<i64: 1, 8, 32>}, {pipeline_mode = #tpu.pipeline_mode<synchronous>, transform_indices = @transform_4, window_bounds = array<i64: 32, 32>}, {pipeline_mode = #tpu.pipeline_mode<synchronous>, transform_indices = @transform_5, window_bounds = array<i64: 32, 32>}, {pipeline_mode = #tpu.pipeline_mode<synchronous>, transform_indices = @transform_6, window_bounds = array<i64: 32, 32>}, {pipeline_mode = #tpu.pipeline_mode<synchronous>, transform_indices = @transform_7, window_bounds = array<i64: 32, 32>}, {pipeline_mode = #tpu.pipeline_mode<synchronous>, transform_indices = @transform_8, window_bounds = array<i64: 1, 32>}, {pipeline_mode = #tpu.pipeline_mode<synchronous>, transform_indices = @transform_9, window_bounds = array<i64: 1, 32>}, {pipeline_mode = #tpu.pipeline_mode<synchronous>, transform_indices = @transform_10, window_bounds = array<i64: 1, 32>}, {pipeline_mode = #tpu.pipeline_mode<synchronous>, transform_indices = @transform_11, window_bounds = array<i64: 1, 32>}, {pipeline_mode = #tpu.pipeline_mode<synchronous>, transform_indices = @transform_12, window_bounds = array<i64: 1, 32>}, {pipeline_mode = #tpu.pipeline_mode<synchronous>, transform_indices = @transform_13, window_bounds = array<i64: 1, 32>}, {transform_indices = @transform_14, window_bounds = array<i64: 1, 16, 32>}]} {
    %c0 = arith.constant 0 : index
    %c0_0 = arith.constant 0 : index
    %c0_1 = arith.constant 0 : index
    %0 = vector.load %arg1[%c0, %c0_0, %c0_1] : memref<1x16x32xf32, #tpu.memory_space<vmem>>, vector<1x16x32xf32>
    %1 = vector.shape_cast %0 : vector<1x16x32xf32> to vector<16x32xf32>
    %c0_2 = arith.constant 0 : index
    %c0_3 = arith.constant 0 : index
    %c0_4 = arith.constant 0 : index
    %2 = vector.load %arg2[%c0_2, %c0_3, %c0_4] : memref<1x16x32xf32, #tpu.memory_space<vmem>>, vector<1x16x32xf32>
    %3 = vector.shape_cast %2 : vector<1x16x32xf32> to vector<16x32xf32>
    %4 = arith.addf %1, %3 : vector<16x32xf32>
    %c0_5 = arith.constant 0 : index
    %c0_6 = arith.constant 0 : index
    %c0_7 = arith.constant 0 : index
    %5 = vector.load %arg3[%c0_5, %c0_6, %c0_7] : memref<1x8x32xf32, #tpu.memory_space<vmem>>, vector<1x8x32xf32>
    %6 = vector.shape_cast %5 : vector<1x8x32xf32> to vector<8x32xf32>
    %c0_8 = arith.constant 0 : index
    %c0_9 = arith.constant 0 : index
    %c0_10 = arith.constant 0 : index
    %7 = vector.load %arg4[%c0_8, %c0_9, %c0_10] : memref<1x8x32xf32, #tpu.memory_space<vmem>>, vector<1x8x32xf32>
    %8 = vector.shape_cast %7 : vector<1x8x32xf32> to vector<8x32xf32>
    %9 = arith.addf %6, %8 : vector<8x32xf32>
    %c0_11 = arith.constant 0 : index
    %c0_12 = arith.constant 0 : index
    %10 = vector.load %arg5[%c0_11, %c0_12] : memref<32x32xf32, #tpu.memory_space<vmem>>, vector<32x32xf32>
    %cst = arith.constant dense<0.000000e+00> : vector<16x32xf32>
    %11 = tpu.matmul %4, %10, %cst {dimension_numbers = #tpu.dot_dimension_numbers<[1], [0], [0], [1], [0, 0, 1, 1], [], []>} : vector<16x32xf32>, vector<32x32xf32>, vector<16x32xf32> -> vector<16x32xf32>
    %c0_13 = arith.constant 0 : index
    %c0_14 = arith.constant 0 : index
    %12 = vector.load %arg9[%c0_13, %c0_14] : memref<1x32xf32, #tpu.memory_space<vmem>>, vector<1x32xf32>
    %13 = vector.broadcast %12 : vector<1x32xf32> to vector<16x32xf32>
    %14 = arith.addf %11, %13 : vector<16x32xf32>
    %c0_15 = arith.constant 0 : index
    %c0_16 = arith.constant 0 : index
    %15 = vector.load %arg6[%c0_15, %c0_16] : memref<32x32xf32, #tpu.memory_space<vmem>>, vector<32x32xf32>
    %cst_17 = arith.constant dense<0.000000e+00> : vector<8x32xf32>
    %16 = tpu.matmul %9, %15, %cst_17 {dimension_numbers = #tpu.dot_dimension_numbers<[1], [0], [0], [1], [0, 0, 1, 1], [], []>} : vector<8x32xf32>, vector<32x32xf32>, vector<8x32xf32> -> vector<8x32xf32>
    %c0_18 = arith.constant 0 : index
    %c0_19 = arith.constant 0 : index
    %17 = vector.load %arg10[%c0_18, %c0_19] : memref<1x32xf32, #tpu.memory_space<vmem>>, vector<1x32xf32>
    %18 = vector.broadcast %17 : vector<1x32xf32> to vector<8x32xf32>
    %19 = arith.addf %16, %18 : vector<8x32xf32>
    %c0_20 = arith.constant 0 : index
    %c0_21 = arith.constant 0 : index
    %20 = vector.load %arg7[%c0_20, %c0_21] : memref<32x32xf32, #tpu.memory_space<vmem>>, vector<32x32xf32>
    %cst_22 = arith.constant dense<0.000000e+00> : vector<8x32xf32>
    %21 = tpu.matmul %6, %20, %cst_22 {dimension_numbers = #tpu.dot_dimension_numbers<[1], [0], [0], [1], [0, 0, 1, 1], [], []>} : vector<8x32xf32>, vector<32x32xf32>, vector<8x32xf32> -> vector<8x32xf32>
    %c0_23 = arith.constant 0 : index
    %c0_24 = arith.constant 0 : index
    %22 = vector.load %arg11[%c0_23, %c0_24] : memref<1x32xf32, #tpu.memory_space<vmem>>, vector<1x32xf32>
    %23 = vector.broadcast %22 : vector<1x32xf32> to vector<8x32xf32>
    %24 = arith.addf %21, %23 : vector<8x32xf32>
    %25 = vector.extract_strided_slice %14 {offsets = [0, 0], sizes = [16, 8], strides = [1, 1]} : vector<16x32xf32> to vector<16x8xf32>
    %26 = vector.extract_strided_slice %19 {offsets = [0, 0], sizes = [8, 8], strides = [1, 1]} : vector<8x32xf32> to vector<8x8xf32>
    %27 = vector.extract_strided_slice %24 {offsets = [0, 0], sizes = [8, 8], strides = [1, 1]} : vector<8x32xf32> to vector<8x8xf32>
    %cst_25 = arith.constant dense<0.000000e+00> : vector<16x8xf32>
    %28 = tpu.matmul %25, %26, %cst_25 {dimension_numbers = #tpu.dot_dimension_numbers<[1], [1], [0], [0], [0, 0, 1, 0], [], []>} : vector<16x8xf32>, vector<8x8xf32>, vector<16x8xf32> -> vector<16x8xf32>
    %cst_26 = arith.constant 0.353553385 : f32
    %29 = vector.broadcast %cst_26 : f32 to vector<16x8xf32>
    %30 = arith.mulf %28, %29 : vector<16x8xf32>
    %cst_27 = arith.constant dense<0xFF800000> : vector<16xf32>
    %31 = vector.multi_reduction <maximumf>, %30, %cst_27 [1] : vector<16x8xf32> to vector<16xf32>
    %32 = vector.shape_cast %31 : vector<16xf32> to vector<16x1xf32>
    %33 = vector.broadcast %32 : vector<16x1xf32> to vector<16x8xf32>
    %34 = arith.subf %30, %33 : vector<16x8xf32>
    %35 = math.exp %34 : vector<16x8xf32>
    %cst_28 = arith.constant dense<0.000000e+00> : vector<16xf32>
    %36 = vector.multi_reduction <add>, %35, %cst_28 [1] : vector<16x8xf32> to vector<16xf32>
    %37 = vector.shape_cast %36 : vector<16xf32> to vector<16x1xf32>
    %38 = vector.broadcast %37 : vector<16x1xf32> to vector<16x8xf32>
    %39 = arith.divf %35, %38 : vector<16x8xf32>
    %cst_29 = arith.constant dense<0.000000e+00> : vector<16x8xf32>
    %40 = tpu.matmul %39, %27, %cst_29 {dimension_numbers = #tpu.dot_dimension_numbers<[1], [0], [0], [1], [0, 0, 1, 1], [], []>} : vector<16x8xf32>, vector<8x8xf32>, vector<16x8xf32> -> vector<16x8xf32>
    %41 = vector.extract_strided_slice %14 {offsets = [0, 8], sizes = [16, 8], strides = [1, 1]} : vector<16x32xf32> to vector<16x8xf32>
    %42 = vector.extract_strided_slice %19 {offsets = [0, 8], sizes = [8, 8], strides = [1, 1]} : vector<8x32xf32> to vector<8x8xf32>
    %43 = vector.extract_strided_slice %24 {offsets = [0, 8], sizes = [8, 8], strides = [1, 1]} : vector<8x32xf32> to vector<8x8xf32>
    %cst_30 = arith.constant dense<0.000000e+00> : vector<16x8xf32>
    %44 = tpu.matmul %41, %42, %cst_30 {dimension_numbers = #tpu.dot_dimension_numbers<[1], [1], [0], [0], [0, 0, 1, 0], [], []>} : vector<16x8xf32>, vector<8x8xf32>, vector<16x8xf32> -> vector<16x8xf32>
    %cst_31 = arith.constant 0.353553385 : f32
    %45 = vector.broadcast %cst_31 : f32 to vector<16x8xf32>
    %46 = arith.mulf %44, %45 : vector<16x8xf32>
    %cst_32 = arith.constant dense<0xFF800000> : vector<16xf32>
    %47 = vector.multi_reduction <maximumf>, %46, %cst_32 [1] : vector<16x8xf32> to vector<16xf32>
    %48 = vector.shape_cast %47 : vector<16xf32> to vector<16x1xf32>
    %49 = vector.broadcast %48 : vector<16x1xf32> to vector<16x8xf32>
    %50 = arith.subf %46, %49 : vector<16x8xf32>
    %51 = math.exp %50 : vector<16x8xf32>
    %cst_33 = arith.constant dense<0.000000e+00> : vector<16xf32>
    %52 = vector.multi_reduction <add>, %51, %cst_33 [1] : vector<16x8xf32> to vector<16xf32>
    %53 = vector.shape_cast %52 : vector<16xf32> to vector<16x1xf32>
    %54 = vector.broadcast %53 : vector<16x1xf32> to vector<16x8xf32>
    %55 = arith.divf %51, %54 : vector<16x8xf32>
    %cst_34 = arith.constant dense<0.000000e+00> : vector<16x8xf32>
    %56 = tpu.matmul %55, %43, %cst_34 {dimension_numbers = #tpu.dot_dimension_numbers<[1], [0], [0], [1], [0, 0, 1, 1], [], []>} : vector<16x8xf32>, vector<8x8xf32>, vector<16x8xf32> -> vector<16x8xf32>
    %57 = vector.extract_strided_slice %14 {offsets = [0, 16], sizes = [16, 8], strides = [1, 1]} : vector<16x32xf32> to vector<16x8xf32>
    %58 = vector.extract_strided_slice %19 {offsets = [0, 16], sizes = [8, 8], strides = [1, 1]} : vector<8x32xf32> to vector<8x8xf32>
    %59 = vector.extract_strided_slice %24 {offsets = [0, 16], sizes = [8, 8], strides = [1, 1]} : vector<8x32xf32> to vector<8x8xf32>
    %cst_35 = arith.constant dense<0.000000e+00> : vector<16x8xf32>
    %60 = tpu.matmul %57, %58, %cst_35 {dimension_numbers = #tpu.dot_dimension_numbers<[1], [1], [0], [0], [0, 0, 1, 0], [], []>} : vector<16x8xf32>, vector<8x8xf32>, vector<16x8xf32> -> vector<16x8xf32>
    %cst_36 = arith.constant 0.353553385 : f32
    %61 = vector.broadcast %cst_36 : f32 to vector<16x8xf32>
    %62 = arith.mulf %60, %61 : vector<16x8xf32>
    %cst_37 = arith.constant dense<0xFF800000> : vector<16xf32>
    %63 = vector.multi_reduction <maximumf>, %62, %cst_37 [1] : vector<16x8xf32> to vector<16xf32>
    %64 = vector.shape_cast %63 : vector<16xf32> to vector<16x1xf32>
    %65 = vector.broadcast %64 : vector<16x1xf32> to vector<16x8xf32>
    %66 = arith.subf %62, %65 : vector<16x8xf32>
    %67 = math.exp %66 : vector<16x8xf32>
    %cst_38 = arith.constant dense<0.000000e+00> : vector<16xf32>
    %68 = vector.multi_reduction <add>, %67, %cst_38 [1] : vector<16x8xf32> to vector<16xf32>
    %69 = vector.shape_cast %68 : vector<16xf32> to vector<16x1xf32>
    %70 = vector.broadcast %69 : vector<16x1xf32> to vector<16x8xf32>
    %71 = arith.divf %67, %70 : vector<16x8xf32>
    %cst_39 = arith.constant dense<0.000000e+00> : vector<16x8xf32>
    %72 = tpu.matmul %71, %59, %cst_39 {dimension_numbers = #tpu.dot_dimension_numbers<[1], [0], [0], [1], [0, 0, 1, 1], [], []>} : vector<16x8xf32>, vector<8x8xf32>, vector<16x8xf32> -> vector<16x8xf32>
    %73 = vector.extract_strided_slice %14 {offsets = [0, 24], sizes = [16, 8], strides = [1, 1]} : vector<16x32xf32> to vector<16x8xf32>
    %74 = vector.extract_strided_slice %19 {offsets = [0, 24], sizes = [8, 8], strides = [1, 1]} : vector<8x32xf32> to vector<8x8xf32>
    %75 = vector.extract_strided_slice %24 {offsets = [0, 24], sizes = [8, 8], strides = [1, 1]} : vector<8x32xf32> to vector<8x8xf32>
    %cst_40 = arith.constant dense<0.000000e+00> : vector<16x8xf32>
    %76 = tpu.matmul %73, %74, %cst_40 {dimension_numbers = #tpu.dot_dimension_numbers<[1], [1], [0], [0], [0, 0, 1, 0], [], []>} : vector<16x8xf32>, vector<8x8xf32>, vector<16x8xf32> -> vector<16x8xf32>
    %cst_41 = arith.constant 0.353553385 : f32
    %77 = vector.broadcast %cst_41 : f32 to vector<16x8xf32>
    %78 = arith.mulf %76, %77 : vector<16x8xf32>
    %cst_42 = arith.constant dense<0xFF800000> : vector<16xf32>
    %79 = vector.multi_reduction <maximumf>, %78, %cst_42 [1] : vector<16x8xf32> to vector<16xf32>
    %80 = vector.shape_cast %79 : vector<16xf32> to vector<16x1xf32>
    %81 = vector.broadcast %80 : vector<16x1xf32> to vector<16x8xf32>
    %82 = arith.subf %78, %81 : vector<16x8xf32>
    %83 = math.exp %82 : vector<16x8xf32>
    %cst_43 = arith.constant dense<0.000000e+00> : vector<16xf32>
    %84 = vector.multi_reduction <add>, %83, %cst_43 [1] : vector<16x8xf32> to vector<16xf32>
    %85 = vector.shape_cast %84 : vector<16xf32> to vector<16x1xf32>
    %86 = vector.broadcast %85 : vector<16x1xf32> to vector<16x8xf32>
    %87 = arith.divf %83, %86 : vector<16x8xf32>
    %cst_44 = arith.constant dense<0.000000e+00> : vector<16x8xf32>
    %88 = tpu.matmul %87, %75, %cst_44 {dimension_numbers = #tpu.dot_dimension_numbers<[1], [0], [0], [1], [0, 0, 1, 1], [], []>} : vector<16x8xf32>, vector<8x8xf32>, vector<16x8xf32> -> vector<16x8xf32>
    %89 = tpu.concatenate %40, %56, %72, %88 in 1 : vector<16x8xf32>, vector<16x8xf32>, vector<16x8xf32>, vector<16x8xf32> -> vector<16x32xf32>
    %c0_45 = arith.constant 0 : index
    %c0_46 = arith.constant 0 : index
    %90 = vector.load %arg8[%c0_45, %c0_46] : memref<32x32xf32, #tpu.memory_space<vmem>>, vector<32x32xf32>
    %cst_47 = arith.constant dense<0.000000e+00> : vector<16x32xf32>
    %91 = tpu.matmul %89, %90, %cst_47 {dimension_numbers = #tpu.dot_dimension_numbers<[1], [0], [0], [1], [0, 0, 1, 1], [], []>} : vector<16x32xf32>, vector<32x32xf32>, vector<16x32xf32> -> vector<16x32xf32>
    %c0_48 = arith.constant 0 : index
    %c0_49 = arith.constant 0 : index
    %92 = vector.load %arg12[%c0_48, %c0_49] : memref<1x32xf32, #tpu.memory_space<vmem>>, vector<1x32xf32>
    %93 = vector.broadcast %92 : vector<1x32xf32> to vector<16x32xf32>
    %94 = arith.addf %91, %93 : vector<16x32xf32>
    %95 = arith.addf %1, %94 : vector<16x32xf32>
    %cst_50 = arith.constant dense<0.000000e+00> : vector<16xf32>
    %96 = vector.multi_reduction <add>, %95, %cst_50 [1] : vector<16x32xf32> to vector<16xf32>
    %97 = vector.shape_cast %96 : vector<16xf32> to vector<16x1xf32>
    %cst_51 = arith.constant 3.200000e+01 : f32
    %98 = vector.broadcast %cst_51 : f32 to vector<16x1xf32>
    %99 = arith.divf %97, %98 : vector<16x1xf32>
    %100 = vector.broadcast %99 : vector<16x1xf32> to vector<16x32xf32>
    %101 = arith.subf %95, %100 : vector<16x32xf32>
    %102 = arith.mulf %101, %101 : vector<16x32xf32>
    %cst_52 = arith.constant dense<0.000000e+00> : vector<16xf32>
    %103 = vector.multi_reduction <add>, %102, %cst_52 [1] : vector<16x32xf32> to vector<16xf32>
    %104 = vector.shape_cast %103 : vector<16xf32> to vector<16x1xf32>
    %cst_53 = arith.constant 3.200000e+01 : f32
    %105 = vector.broadcast %cst_53 : f32 to vector<16x1xf32>
    %106 = arith.divf %104, %105 : vector<16x1xf32>
    %cst_54 = arith.constant 9.99999974E-6 : f32
    %107 = vector.broadcast %cst_54 : f32 to vector<16x1xf32>
    %108 = arith.addf %106, %107 : vector<16x1xf32>
    %109 = math.rsqrt %108 : vector<16x1xf32>
    %110 = vector.broadcast %109 : vector<16x1xf32> to vector<16x32xf32>
    %111 = arith.mulf %101, %110 : vector<16x32xf32>
    %c0_55 = arith.constant 0 : index
    %c0_56 = arith.constant 0 : index
    %112 = vector.load %arg13[%c0_55, %c0_56] : memref<1x32xf32, #tpu.memory_space<vmem>>, vector<1x32xf32>
    %113 = vector.broadcast %112 : vector<1x32xf32> to vector<16x32xf32>
    %114 = arith.mulf %111, %113 : vector<16x32xf32>
    %c0_57 = arith.constant 0 : index
    %c0_58 = arith.constant 0 : index
    %115 = vector.load %arg14[%c0_57, %c0_58] : memref<1x32xf32, #tpu.memory_space<vmem>>, vector<1x32xf32>
    %116 = vector.broadcast %115 : vector<1x32xf32> to vector<16x32xf32>
    %117 = arith.addf %114, %116 : vector<16x32xf32>
    %118 = vector.shape_cast %117 : vector<16x32xf32> to vector<1x16x32xf32>
    %c0_59 = arith.constant 0 : index
    %c0_60 = arith.constant 0 : index
    %c0_61 = arith.constant 0 : index
    %119 = vector.load %arg15[%c0_59, %c0_60, %c0_61] : memref<1x16x32xf32, #tpu.memory_space<vmem>>, vector<1x16x32xf32>
    tpu.vector_store %arg15[%c0_59, %c0_60, %c0_61], %118 {strides = array<i32>} : memref<1x16x32xf32, #tpu.memory_space<vmem>>, vector<1x16x32xf32>,
    return
  }
  func.func @transform_0(%arg0: i32) -> (i32, i32, i32) {
    %c0_i32 = arith.constant 0 : i32
    %c0_i32_0 = arith.constant 0 : i32
    %c0_i32_1 = arith.constant 0 : i32
    return %arg0, %c0_i32, %c0_i32_0 : i32, i32, i32
  }
  func.func @transform_1(%arg0: i32) -> (i32, i32, i32) {
    %c0_i32 = arith.constant 0 : i32
    %c0_i32_0 = arith.constant 0 : i32
    %c0_i32_1 = arith.constant 0 : i32
    return %arg0, %c0_i32, %c0_i32_0 : i32, i32, i32
  }
  func.func @transform_2(%arg0: i32) -> (i32, i32, i32) {
    %c0_i32 = arith.constant 0 : i32
    %c0_i32_0 = arith.constant 0 : i32
    %c0_i32_1 = arith.constant 0 : i32
    return %arg0, %c0_i32, %c0_i32_0 : i32, i32, i32
  }
  func.func @transform_3(%arg0: i32) -> (i32, i32, i32) {
    %c0_i32 = arith.constant 0 : i32
    %c0_i32_0 = arith.constant 0 : i32
    %c0_i32_1 = arith.constant 0 : i32
    return %arg0, %c0_i32, %c0_i32_0 : i32, i32, i32
  }
  func.func @transform_4(%arg0: i32) -> (i32, i32) {
    %c0_i32 = arith.constant 0 : i32
    %c0_i32_0 = arith.constant 0 : i32
    %c0_i32_1 = arith.constant 0 : i32
    return %c0_i32, %c0_i32_0 : i32, i32
  }
  func.func @transform_5(%arg0: i32) -> (i32, i32) {
    %c0_i32 = arith.constant 0 : i32
    %c0_i32_0 = arith.constant 0 : i32
    %c0_i32_1 = arith.constant 0 : i32
    return %c0_i32, %c0_i32_0 : i32, i32
  }
  func.func @transform_6(%arg0: i32) -> (i32, i32) {
    %c0_i32 = arith.constant 0 : i32
    %c0_i32_0 = arith.constant 0 : i32
    %c0_i32_1 = arith.constant 0 : i32
    return %c0_i32, %c0_i32_0 : i32, i32
  }
  func.func @transform_7(%arg0: i32) -> (i32, i32) {
    %c0_i32 = arith.constant 0 : i32
    %c0_i32_0 = arith.constant 0 : i32
    %c0_i32_1 = arith.constant 0 : i32
    return %c0_i32, %c0_i32_0 : i32, i32
  }
  func.func @transform_8(%arg0: i32) -> (i32, i32) {
    %c0_i32 = arith.constant 0 : i32
    %c0_i32_0 = arith.constant 0 : i32
    %c0_i32_1 = arith.constant 0 : i32
    return %c0_i32, %c0_i32_0 : i32, i32
  }
  func.func @transform_9(%arg0: i32) -> (i32, i32) {
    %c0_i32 = arith.constant 0 : i32
    %c0_i32_0 = arith.constant 0 : i32
    %c0_i32_1 = arith.constant 0 : i32
    return %c0_i32, %c0_i32_0 : i32, i32
  }
  func.func @transform_10(%arg0: i32) -> (i32, i32) {
    %c0_i32 = arith.constant 0 : i32
    %c0_i32_0 = arith.constant 0 : i32
    %c0_i32_1 = arith.constant 0 : i32
    return %c0_i32, %c0_i32_0 : i32, i32
  }
  func.func @transform_11(%arg0: i32) -> (i32, i32) {
    %c0_i32 = arith.constant 0 : i32
    %c0_i32_0 = arith.constant 0 : i32
    %c0_i32_1 = arith.constant 0 : i32
    return %c0_i32, %c0_i32_0 : i32, i32
  }
  func.func @transform_12(%arg0: i32) -> (i32, i32) {
    %c0_i32 = arith.constant 0 : i32
    %c0_i32_0 = arith.constant 0 : i32
    %c0_i32_1 = arith.constant 0 : i32
    return %c0_i32, %c0_i32_0 : i32, i32
  }
  func.func @transform_13(%arg0: i32) -> (i32, i32) {
    %c0_i32 = arith.constant 0 : i32
    %c0_i32_0 = arith.constant 0 : i32
    %c0_i32_1 = arith.constant 0 : i32
    return %c0_i32, %c0_i32_0 : i32, i32
  }
  func.func @transform_14(%arg0: i32) -> (i32, i32, i32) {
    %c0_i32 = arith.constant 0 : i32
    %c0_i32_0 = arith.constant 0 : i32
    %c0_i32_1 = arith.constant 0 : i32
    return %arg0, %c0_i32, %c0_i32_0 : i32, i32, i32
  }
}

module attributes {stable_mosaic.version = 11 : i64} {
  func.func @_ffn_ln_kernel(%arg0: i32, %arg1: memref<1x16x32xf32, #tpu.memory_space<vmem>>, %arg2: memref<32x64xf32, #tpu.memory_space<vmem>>, %arg3: memref<1x64xf32, #tpu.memory_space<vmem>>, %arg4: memref<64x32xf32, #tpu.memory_space<vmem>>, %arg5: memref<1x32xf32, #tpu.memory_space<vmem>>, %arg6: memref<1x32xf32, #tpu.memory_space<vmem>>, %arg7: memref<1x32xf32, #tpu.memory_space<vmem>>, %arg8: memref<1x16x32xf32, #tpu.memory_space<vmem>>) attributes {dimension_semantics = [#tpu.dimension_semantics<parallel>], iteration_bounds = array<i64: 2>, scalar_prefetch = 0 : i64, scratch_operands = 0 : i64, tpu.core_type = #tpu.core_type<tc>, window_params = [{transform_indices = @transform_0, window_bounds = array<i64: 1, 16, 32>}, {pipeline_mode = #tpu.pipeline_mode<synchronous>, transform_indices = @transform_1, window_bounds = array<i64: 32, 64>}, {pipeline_mode = #tpu.pipeline_mode<synchronous>, transform_indices = @transform_2, window_bounds = array<i64: 1, 64>}, {pipeline_mode = #tpu.pipeline_mode<synchronous>, transform_indices = @transform_3, window_bounds = array<i64: 64, 32>}, {pipeline_mode = #tpu.pipeline_mode<synchronous>, transform_indices = @transform_4, window_bounds = array<i64: 1, 32>}, {pipeline_mode = #tpu.pipeline_mode<synchronous>, transform_indices = @transform_5, window_bounds = array<i64: 1, 32>}, {pipeline_mode = #tpu.pipeline_mode<synchronous>, transform_indices = @transform_6, window_bounds = array<i64: 1, 32>}, {transform_indices = @transform_7, window_bounds = array<i64: 1, 16, 32>}]} {
    %c0 = arith.constant 0 : index
    %c0_0 = arith.constant 0 : index
    %c0_1 = arith.constant 0 : index
    %0 = vector.load %arg1[%c0, %c0_0, %c0_1] : memref<1x16x32xf32, #tpu.memory_space<vmem>>, vector<1x16x32xf32>
    %1 = vector.shape_cast %0 : vector<1x16x32xf32> to vector<16x32xf32>
    %c0_2 = arith.constant 0 : index
    %c0_3 = arith.constant 0 : index
    %2 = vector.load %arg2[%c0_2, %c0_3] : memref<32x64xf32, #tpu.memory_space<vmem>>, vector<32x64xf32>
    %cst = arith.constant dense<0.000000e+00> : vector<16x64xf32>
    %3 = tpu.matmul %1, %2, %cst {dimension_numbers = #tpu.dot_dimension_numbers<[1], [0], [0], [1], [0, 0, 1, 1], [], []>} : vector<16x32xf32>, vector<32x64xf32>, vector<16x64xf32> -> vector<16x64xf32>
    %c0_4 = arith.constant 0 : index
    %c0_5 = arith.constant 0 : index
    %4 = vector.load %arg3[%c0_4, %c0_5] : memref<1x64xf32, #tpu.memory_space<vmem>>, vector<1x64xf32>
    %5 = vector.broadcast %4 : vector<1x64xf32> to vector<16x64xf32>
    %6 = arith.addf %3, %5 : vector<16x64xf32>
    %cst_6 = arith.constant 5.000000e-01 : f32
    %7 = vector.broadcast %cst_6 : f32 to vector<16x64xf32>
    %8 = arith.mulf %7, %6 : vector<16x64xf32>
    %cst_7 = arith.constant 0.707106769 : f32
    %9 = vector.broadcast %cst_7 : f32 to vector<16x64xf32>
    %10 = arith.mulf %6, %9 : vector<16x64xf32>
    %cst_8 = arith.constant 0.000000e+00 : f32
    %11 = vector.broadcast %cst_8 : f32 to vector<16x64xf32>
    %12 = arith.cmpf oge, %10, %11 : vector<16x64xf32>
    %cst_9 = arith.constant 1.000000e+00 : f32
    %cst_10 = arith.constant -1.000000e+00 : f32
    %13 = vector.broadcast %cst_9 : f32 to vector<16x64xf32>
    %14 = vector.broadcast %cst_10 : f32 to vector<16x64xf32>
    %15 = arith.select %12, %13, %14 : vector<16x64xi1>, vector<16x64xf32>
    %16 = math.absf %10 : vector<16x64xf32>
    %cst_11 = arith.constant 0.327591091 : f32
    %17 = vector.broadcast %cst_11 : f32 to vector<16x64xf32>
    %18 = arith.mulf %17, %16 : vector<16x64xf32>
    %cst_12 = arith.constant 1.000000e+00 : f32
    %19 = vector.broadcast %cst_12 : f32 to vector<16x64xf32>
    %20 = arith.addf %19, %18 : vector<16x64xf32>
    %cst_13 = arith.constant 1.000000e+00 : f32
    %21 = vector.broadcast %cst_13 : f32 to vector<16x64xf32>
    %22 = arith.divf %21, %20 : vector<16x64xf32>
    %cst_14 = arith.constant 1.06140542 : f32
    %23 = vector.broadcast %cst_14 : f32 to vector<16x64xf32>
    %24 = arith.mulf %23, %22 : vector<16x64xf32>
    %cst_15 = arith.constant -1.45315206 : f32
    %25 = vector.broadcast %cst_15 : f32 to vector<16x64xf32>
    %26 = arith.addf %24, %25 : vector<16x64xf32>
    %27 = arith.mulf %26, %22 : vector<16x64xf32>
    %cst_16 = arith.constant 1.42141378 : f32
    %28 = vector.broadcast %cst_16 : f32 to vector<16x64xf32>
    %29 = arith.addf %27, %28 : vector<16x64xf32>
    %30 = arith.mulf %29, %22 : vector<16x64xf32>
    %cst_17 = arith.constant -0.284496725 : f32
    %31 = vector.broadcast %cst_17 : f32 to vector<16x64xf32>
    %32 = arith.addf %30, %31 : vector<16x64xf32>
    %33 = arith.mulf %32, %22 : vector<16x64xf32>
    %cst_18 = arith.constant 0.254829586 : f32
    %34 = vector.broadcast %cst_18 : f32 to vector<16x64xf32>
    %35 = arith.addf %33, %34 : vector<16x64xf32>
    %36 = arith.mulf %35, %22 : vector<16x64xf32>
    %cst_19 = arith.constant 0.000000e+00 : f32
    %37 = vector.broadcast %cst_19 : f32 to vector<16x64xf32>
    %38 = arith.subf %37, %16 : vector<16x64xf32>
    %39 = arith.mulf %38, %16 : vector<16x64xf32>
    %40 = math.exp %39 : vector<16x64xf32>
    %41 = arith.mulf %36, %40 : vector<16x64xf32>
    %cst_20 = arith.constant 1.000000e+00 : f32
    %42 = vector.broadcast %cst_20 : f32 to vector<16x64xf32>
    %43 = arith.subf %42, %41 : vector<16x64xf32>
    %44 = arith.mulf %15, %43 : vector<16x64xf32>
    %cst_21 = arith.constant 1.000000e+00 : f32
    %45 = vector.broadcast %cst_21 : f32 to vector<16x64xf32>
    %46 = arith.addf %45, %44 : vector<16x64xf32>
    %47 = arith.mulf %8, %46 : vector<16x64xf32>
    %c0_22 = arith.constant 0 : index
    %c0_23 = arith.constant 0 : index
    %48 = vector.load %arg4[%c0_22, %c0_23] : memref<64x32xf32, #tpu.memory_space<vmem>>, vector<64x32xf32>
    %cst_24 = arith.constant dense<0.000000e+00> : vector<16x32xf32>
    %49 = tpu.matmul %47, %48, %cst_24 {dimension_numbers = #tpu.dot_dimension_numbers<[1], [0], [0], [1], [0, 0, 1, 1], [], []>} : vector<16x64xf32>, vector<64x32xf32>, vector<16x32xf32> -> vector<16x32xf32>
    %c0_25 = arith.constant 0 : index
    %c0_26 = arith.constant 0 : index
    %50 = vector.load %arg5[%c0_25, %c0_26] : memref<1x32xf32, #tpu.memory_space<vmem>>, vector<1x32xf32>
    %51 = vector.broadcast %50 : vector<1x32xf32> to vector<16x32xf32>
    %52 = arith.addf %49, %51 : vector<16x32xf32>
    %53 = arith.addf %1, %52 : vector<16x32xf32>
    %cst_27 = arith.constant dense<0.000000e+00> : vector<16xf32>
    %54 = vector.multi_reduction <add>, %53, %cst_27 [1] : vector<16x32xf32> to vector<16xf32>
    %55 = vector.shape_cast %54 : vector<16xf32> to vector<16x1xf32>
    %cst_28 = arith.constant 3.200000e+01 : f32
    %56 = vector.broadcast %cst_28 : f32 to vector<16x1xf32>
    %57 = arith.divf %55, %56 : vector<16x1xf32>
    %58 = vector.broadcast %57 : vector<16x1xf32> to vector<16x32xf32>
    %59 = arith.subf %53, %58 : vector<16x32xf32>
    %60 = arith.mulf %59, %59 : vector<16x32xf32>
    %cst_29 = arith.constant dense<0.000000e+00> : vector<16xf32>
    %61 = vector.multi_reduction <add>, %60, %cst_29 [1] : vector<16x32xf32> to vector<16xf32>
    %62 = vector.shape_cast %61 : vector<16xf32> to vector<16x1xf32>
    %cst_30 = arith.constant 3.200000e+01 : f32
    %63 = vector.broadcast %cst_30 : f32 to vector<16x1xf32>
    %64 = arith.divf %62, %63 : vector<16x1xf32>
    %cst_31 = arith.constant 9.99999974E-6 : f32
    %65 = vector.broadcast %cst_31 : f32 to vector<16x1xf32>
    %66 = arith.addf %64, %65 : vector<16x1xf32>
    %67 = math.rsqrt %66 : vector<16x1xf32>
    %68 = vector.broadcast %67 : vector<16x1xf32> to vector<16x32xf32>
    %69 = arith.mulf %59, %68 : vector<16x32xf32>
    %c0_32 = arith.constant 0 : index
    %c0_33 = arith.constant 0 : index
    %70 = vector.load %arg6[%c0_32, %c0_33] : memref<1x32xf32, #tpu.memory_space<vmem>>, vector<1x32xf32>
    %71 = vector.broadcast %70 : vector<1x32xf32> to vector<16x32xf32>
    %72 = arith.mulf %69, %71 : vector<16x32xf32>
    %c0_34 = arith.constant 0 : index
    %c0_35 = arith.constant 0 : index
    %73 = vector.load %arg7[%c0_34, %c0_35] : memref<1x32xf32, #tpu.memory_space<vmem>>, vector<1x32xf32>
    %74 = vector.broadcast %73 : vector<1x32xf32> to vector<16x32xf32>
    %75 = arith.addf %72, %74 : vector<16x32xf32>
    %76 = vector.shape_cast %75 : vector<16x32xf32> to vector<1x16x32xf32>
    %c0_36 = arith.constant 0 : index
    %c0_37 = arith.constant 0 : index
    %c0_38 = arith.constant 0 : index
    %77 = vector.load %arg8[%c0_36, %c0_37, %c0_38] : memref<1x16x32xf32, #tpu.memory_space<vmem>>, vector<1x16x32xf32>
    tpu.vector_store %arg8[%c0_36, %c0_37, %c0_38], %76 {strides = array<i32>} : memref<1x16x32xf32, #tpu.memory_space<vmem>>, vector<1x16x32xf32>,
    return
  }
  func.func @transform_0(%arg0: i32) -> (i32, i32, i32) {
    %c0_i32 = arith.constant 0 : i32
    %c0_i32_0 = arith.constant 0 : i32
    %c0_i32_1 = arith.constant 0 : i32
    return %arg0, %c0_i32, %c0_i32_0 : i32, i32, i32
  }
  func.func @transform_1(%arg0: i32) -> (i32, i32) {
    %c0_i32 = arith.constant 0 : i32
    %c0_i32_0 = arith.constant 0 : i32
    %c0_i32_1 = arith.constant 0 : i32
    return %c0_i32, %c0_i32_0 : i32, i32
  }
  func.func @transform_2(%arg0: i32) -> (i32, i32) {
    %c0_i32 = arith.constant 0 : i32
    %c0_i32_0 = arith.constant 0 : i32
    %c0_i32_1 = arith.constant 0 : i32
    return %c0_i32, %c0_i32_0 : i32, i32
  }
  func.func @transform_3(%arg0: i32) -> (i32, i32) {
    %c0_i32 = arith.constant 0 : i32
    %c0_i32_0 = arith.constant 0 : i32
    %c0_i32_1 = arith.constant 0 : i32
    return %c0_i32, %c0_i32_0 : i32, i32
  }
  func.func @transform_4(%arg0: i32) -> (i32, i32) {
    %c0_i32 = arith.constant 0 : i32
    %c0_i32_0 = arith.constant 0 : i32
    %c0_i32_1 = arith.constant 0 : i32
    return %c0_i32, %c0_i32_0 : i32, i32
  }
  func.func @transform_5(%arg0: i32) -> (i32, i32) {
    %c0_i32 = arith.constant 0 : i32
    %c0_i32_0 = arith.constant 0 : i32
    %c0_i32_1 = arith.constant 0 : i32
    return %c0_i32, %c0_i32_0 : i32, i32
  }
  func.func @transform_6(%arg0: i32) -> (i32, i32) {
    %c0_i32 = arith.constant 0 : i32
    %c0_i32_0 = arith.constant 0 : i32
    %c0_i32_1 = arith.constant 0 : i32
    return %c0_i32, %c0_i32_0 : i32, i32
  }
  func.func @transform_7(%arg0: i32) -> (i32, i32, i32) {
    %c0_i32 = arith.constant 0 : i32
    %c0_i32_0 = arith.constant 0 : i32
    %c0_i32_1 = arith.constant 0 : i32
    return %arg0, %c0_i32, %c0_i32_0 : i32, i32, i32
  }
}

module attributes {stable_mosaic.version = 11 : i64} {
  func.func @_mha_ln_kernel(%arg0: i32, %arg1: memref<1x8x32xf32, #tpu.memory_space<vmem>>, %arg2: memref<1x8x32xf32, #tpu.memory_space<vmem>>, %arg3: memref<1x16x32xf32, #tpu.memory_space<vmem>>, %arg4: memref<1x16x32xf32, #tpu.memory_space<vmem>>, %arg5: memref<32x32xf32, #tpu.memory_space<vmem>>, %arg6: memref<32x32xf32, #tpu.memory_space<vmem>>, %arg7: memref<32x32xf32, #tpu.memory_space<vmem>>, %arg8: memref<32x32xf32, #tpu.memory_space<vmem>>, %arg9: memref<1x32xf32, #tpu.memory_space<vmem>>, %arg10: memref<1x32xf32, #tpu.memory_space<vmem>>, %arg11: memref<1x32xf32, #tpu.memory_space<vmem>>, %arg12: memref<1x32xf32, #tpu.memory_space<vmem>>, %arg13: memref<1x32xf32, #tpu.memory_space<vmem>>, %arg14: memref<1x32xf32, #tpu.memory_space<vmem>>, %arg15: memref<1x8x32xf32, #tpu.memory_space<vmem>>) attributes {dimension_semantics = [#tpu.dimension_semantics<parallel>], iteration_bounds = array<i64: 2>, scalar_prefetch = 0 : i64, scratch_operands = 0 : i64, tpu.core_type = #tpu.core_type<tc>, window_params = [{transform_indices = @transform_0, window_bounds = array<i64: 1, 8, 32>}, {transform_indices = @transform_1, window_bounds = array<i64: 1, 8, 32>}, {transform_indices = @transform_2, window_bounds = array<i64: 1, 16, 32>}, {transform_indices = @transform_3, window_bounds = array<i64: 1, 16, 32>}, {pipeline_mode = #tpu.pipeline_mode<synchronous>, transform_indices = @transform_4, window_bounds = array<i64: 32, 32>}, {pipeline_mode = #tpu.pipeline_mode<synchronous>, transform_indices = @transform_5, window_bounds = array<i64: 32, 32>}, {pipeline_mode = #tpu.pipeline_mode<synchronous>, transform_indices = @transform_6, window_bounds = array<i64: 32, 32>}, {pipeline_mode = #tpu.pipeline_mode<synchronous>, transform_indices = @transform_7, window_bounds = array<i64: 32, 32>}, {pipeline_mode = #tpu.pipeline_mode<synchronous>, transform_indices = @transform_8, window_bounds = array<i64: 1, 32>}, {pipeline_mode = #tpu.pipeline_mode<synchronous>, transform_indices = @transform_9, window_bounds = array<i64: 1, 32>}, {pipeline_mode = #tpu.pipeline_mode<synchronous>, transform_indices = @transform_10, window_bounds = array<i64: 1, 32>}, {pipeline_mode = #tpu.pipeline_mode<synchronous>, transform_indices = @transform_11, window_bounds = array<i64: 1, 32>}, {pipeline_mode = #tpu.pipeline_mode<synchronous>, transform_indices = @transform_12, window_bounds = array<i64: 1, 32>}, {pipeline_mode = #tpu.pipeline_mode<synchronous>, transform_indices = @transform_13, window_bounds = array<i64: 1, 32>}, {transform_indices = @transform_14, window_bounds = array<i64: 1, 8, 32>}]} {
    %c0 = arith.constant 0 : index
    %c0_0 = arith.constant 0 : index
    %c0_1 = arith.constant 0 : index
    %0 = vector.load %arg1[%c0, %c0_0, %c0_1] : memref<1x8x32xf32, #tpu.memory_space<vmem>>, vector<1x8x32xf32>
    %1 = vector.shape_cast %0 : vector<1x8x32xf32> to vector<8x32xf32>
    %c0_2 = arith.constant 0 : index
    %c0_3 = arith.constant 0 : index
    %c0_4 = arith.constant 0 : index
    %2 = vector.load %arg2[%c0_2, %c0_3, %c0_4] : memref<1x8x32xf32, #tpu.memory_space<vmem>>, vector<1x8x32xf32>
    %3 = vector.shape_cast %2 : vector<1x8x32xf32> to vector<8x32xf32>
    %4 = arith.addf %1, %3 : vector<8x32xf32>
    %c0_5 = arith.constant 0 : index
    %c0_6 = arith.constant 0 : index
    %c0_7 = arith.constant 0 : index
    %5 = vector.load %arg3[%c0_5, %c0_6, %c0_7] : memref<1x16x32xf32, #tpu.memory_space<vmem>>, vector<1x16x32xf32>
    %6 = vector.shape_cast %5 : vector<1x16x32xf32> to vector<16x32xf32>
    %c0_8 = arith.constant 0 : index
    %c0_9 = arith.constant 0 : index
    %c0_10 = arith.constant 0 : index
    %7 = vector.load %arg4[%c0_8, %c0_9, %c0_10] : memref<1x16x32xf32, #tpu.memory_space<vmem>>, vector<1x16x32xf32>
    %8 = vector.shape_cast %7 : vector<1x16x32xf32> to vector<16x32xf32>
    %9 = arith.addf %6, %8 : vector<16x32xf32>
    %c0_11 = arith.constant 0 : index
    %c0_12 = arith.constant 0 : index
    %10 = vector.load %arg5[%c0_11, %c0_12] : memref<32x32xf32, #tpu.memory_space<vmem>>, vector<32x32xf32>
    %cst = arith.constant dense<0.000000e+00> : vector<8x32xf32>
    %11 = tpu.matmul %4, %10, %cst {dimension_numbers = #tpu.dot_dimension_numbers<[1], [0], [0], [1], [0, 0, 1, 1], [], []>} : vector<8x32xf32>, vector<32x32xf32>, vector<8x32xf32> -> vector<8x32xf32>
    %c0_13 = arith.constant 0 : index
    %c0_14 = arith.constant 0 : index
    %12 = vector.load %arg9[%c0_13, %c0_14] : memref<1x32xf32, #tpu.memory_space<vmem>>, vector<1x32xf32>
    %13 = vector.broadcast %12 : vector<1x32xf32> to vector<8x32xf32>
    %14 = arith.addf %11, %13 : vector<8x32xf32>
    %c0_15 = arith.constant 0 : index
    %c0_16 = arith.constant 0 : index
    %15 = vector.load %arg6[%c0_15, %c0_16] : memref<32x32xf32, #tpu.memory_space<vmem>>, vector<32x32xf32>
    %cst_17 = arith.constant dense<0.000000e+00> : vector<16x32xf32>
    %16 = tpu.matmul %9, %15, %cst_17 {dimension_numbers = #tpu.dot_dimension_numbers<[1], [0], [0], [1], [0, 0, 1, 1], [], []>} : vector<16x32xf32>, vector<32x32xf32>, vector<16x32xf32> -> vector<16x32xf32>
    %c0_18 = arith.constant 0 : index
    %c0_19 = arith.constant 0 : index
    %17 = vector.load %arg10[%c0_18, %c0_19] : memref<1x32xf32, #tpu.memory_space<vmem>>, vector<1x32xf32>
    %18 = vector.broadcast %17 : vector<1x32xf32> to vector<16x32xf32>
    %19 = arith.addf %16, %18 : vector<16x32xf32>
    %c0_20 = arith.constant 0 : index
    %c0_21 = arith.constant 0 : index
    %20 = vector.load %arg7[%c0_20, %c0_21] : memref<32x32xf32, #tpu.memory_space<vmem>>, vector<32x32xf32>
    %cst_22 = arith.constant dense<0.000000e+00> : vector<16x32xf32>
    %21 = tpu.matmul %6, %20, %cst_22 {dimension_numbers = #tpu.dot_dimension_numbers<[1], [0], [0], [1], [0, 0, 1, 1], [], []>} : vector<16x32xf32>, vector<32x32xf32>, vector<16x32xf32> -> vector<16x32xf32>
    %c0_23 = arith.constant 0 : index
    %c0_24 = arith.constant 0 : index
    %22 = vector.load %arg11[%c0_23, %c0_24] : memref<1x32xf32, #tpu.memory_space<vmem>>, vector<1x32xf32>
    %23 = vector.broadcast %22 : vector<1x32xf32> to vector<16x32xf32>
    %24 = arith.addf %21, %23 : vector<16x32xf32>
    %25 = vector.extract_strided_slice %14 {offsets = [0, 0], sizes = [8, 8], strides = [1, 1]} : vector<8x32xf32> to vector<8x8xf32>
    %26 = vector.extract_strided_slice %19 {offsets = [0, 0], sizes = [16, 8], strides = [1, 1]} : vector<16x32xf32> to vector<16x8xf32>
    %27 = vector.extract_strided_slice %24 {offsets = [0, 0], sizes = [16, 8], strides = [1, 1]} : vector<16x32xf32> to vector<16x8xf32>
    %cst_25 = arith.constant dense<0.000000e+00> : vector<8x16xf32>
    %28 = tpu.matmul %25, %26, %cst_25 {dimension_numbers = #tpu.dot_dimension_numbers<[1], [1], [0], [0], [0, 0, 1, 0], [], []>} : vector<8x8xf32>, vector<16x8xf32>, vector<8x16xf32> -> vector<8x16xf32>
    %cst_26 = arith.constant 0.353553385 : f32
    %29 = vector.broadcast %cst_26 : f32 to vector<8x16xf32>
    %30 = arith.mulf %28, %29 : vector<8x16xf32>
    %cst_27 = arith.constant dense<0xFF800000> : vector<8xf32>
    %31 = vector.multi_reduction <maximumf>, %30, %cst_27 [1] : vector<8x16xf32> to vector<8xf32>
    %32 = vector.shape_cast %31 : vector<8xf32> to vector<8x1xf32>
    %33 = vector.broadcast %32 : vector<8x1xf32> to vector<8x16xf32>
    %34 = arith.subf %30, %33 : vector<8x16xf32>
    %35 = math.exp %34 : vector<8x16xf32>
    %cst_28 = arith.constant dense<0.000000e+00> : vector<8xf32>
    %36 = vector.multi_reduction <add>, %35, %cst_28 [1] : vector<8x16xf32> to vector<8xf32>
    %37 = vector.shape_cast %36 : vector<8xf32> to vector<8x1xf32>
    %38 = vector.broadcast %37 : vector<8x1xf32> to vector<8x16xf32>
    %39 = arith.divf %35, %38 : vector<8x16xf32>
    %cst_29 = arith.constant dense<0.000000e+00> : vector<8x8xf32>
    %40 = tpu.matmul %39, %27, %cst_29 {dimension_numbers = #tpu.dot_dimension_numbers<[1], [0], [0], [1], [0, 0, 1, 1], [], []>} : vector<8x16xf32>, vector<16x8xf32>, vector<8x8xf32> -> vector<8x8xf32>
    %41 = vector.extract_strided_slice %14 {offsets = [0, 8], sizes = [8, 8], strides = [1, 1]} : vector<8x32xf32> to vector<8x8xf32>
    %42 = vector.extract_strided_slice %19 {offsets = [0, 8], sizes = [16, 8], strides = [1, 1]} : vector<16x32xf32> to vector<16x8xf32>
    %43 = vector.extract_strided_slice %24 {offsets = [0, 8], sizes = [16, 8], strides = [1, 1]} : vector<16x32xf32> to vector<16x8xf32>
    %cst_30 = arith.constant dense<0.000000e+00> : vector<8x16xf32>
    %44 = tpu.matmul %41, %42, %cst_30 {dimension_numbers = #tpu.dot_dimension_numbers<[1], [1], [0], [0], [0, 0, 1, 0], [], []>} : vector<8x8xf32>, vector<16x8xf32>, vector<8x16xf32> -> vector<8x16xf32>
    %cst_31 = arith.constant 0.353553385 : f32
    %45 = vector.broadcast %cst_31 : f32 to vector<8x16xf32>
    %46 = arith.mulf %44, %45 : vector<8x16xf32>
    %cst_32 = arith.constant dense<0xFF800000> : vector<8xf32>
    %47 = vector.multi_reduction <maximumf>, %46, %cst_32 [1] : vector<8x16xf32> to vector<8xf32>
    %48 = vector.shape_cast %47 : vector<8xf32> to vector<8x1xf32>
    %49 = vector.broadcast %48 : vector<8x1xf32> to vector<8x16xf32>
    %50 = arith.subf %46, %49 : vector<8x16xf32>
    %51 = math.exp %50 : vector<8x16xf32>
    %cst_33 = arith.constant dense<0.000000e+00> : vector<8xf32>
    %52 = vector.multi_reduction <add>, %51, %cst_33 [1] : vector<8x16xf32> to vector<8xf32>
    %53 = vector.shape_cast %52 : vector<8xf32> to vector<8x1xf32>
    %54 = vector.broadcast %53 : vector<8x1xf32> to vector<8x16xf32>
    %55 = arith.divf %51, %54 : vector<8x16xf32>
    %cst_34 = arith.constant dense<0.000000e+00> : vector<8x8xf32>
    %56 = tpu.matmul %55, %43, %cst_34 {dimension_numbers = #tpu.dot_dimension_numbers<[1], [0], [0], [1], [0, 0, 1, 1], [], []>} : vector<8x16xf32>, vector<16x8xf32>, vector<8x8xf32> -> vector<8x8xf32>
    %57 = vector.extract_strided_slice %14 {offsets = [0, 16], sizes = [8, 8], strides = [1, 1]} : vector<8x32xf32> to vector<8x8xf32>
    %58 = vector.extract_strided_slice %19 {offsets = [0, 16], sizes = [16, 8], strides = [1, 1]} : vector<16x32xf32> to vector<16x8xf32>
    %59 = vector.extract_strided_slice %24 {offsets = [0, 16], sizes = [16, 8], strides = [1, 1]} : vector<16x32xf32> to vector<16x8xf32>
    %cst_35 = arith.constant dense<0.000000e+00> : vector<8x16xf32>
    %60 = tpu.matmul %57, %58, %cst_35 {dimension_numbers = #tpu.dot_dimension_numbers<[1], [1], [0], [0], [0, 0, 1, 0], [], []>} : vector<8x8xf32>, vector<16x8xf32>, vector<8x16xf32> -> vector<8x16xf32>
    %cst_36 = arith.constant 0.353553385 : f32
    %61 = vector.broadcast %cst_36 : f32 to vector<8x16xf32>
    %62 = arith.mulf %60, %61 : vector<8x16xf32>
    %cst_37 = arith.constant dense<0xFF800000> : vector<8xf32>
    %63 = vector.multi_reduction <maximumf>, %62, %cst_37 [1] : vector<8x16xf32> to vector<8xf32>
    %64 = vector.shape_cast %63 : vector<8xf32> to vector<8x1xf32>
    %65 = vector.broadcast %64 : vector<8x1xf32> to vector<8x16xf32>
    %66 = arith.subf %62, %65 : vector<8x16xf32>
    %67 = math.exp %66 : vector<8x16xf32>
    %cst_38 = arith.constant dense<0.000000e+00> : vector<8xf32>
    %68 = vector.multi_reduction <add>, %67, %cst_38 [1] : vector<8x16xf32> to vector<8xf32>
    %69 = vector.shape_cast %68 : vector<8xf32> to vector<8x1xf32>
    %70 = vector.broadcast %69 : vector<8x1xf32> to vector<8x16xf32>
    %71 = arith.divf %67, %70 : vector<8x16xf32>
    %cst_39 = arith.constant dense<0.000000e+00> : vector<8x8xf32>
    %72 = tpu.matmul %71, %59, %cst_39 {dimension_numbers = #tpu.dot_dimension_numbers<[1], [0], [0], [1], [0, 0, 1, 1], [], []>} : vector<8x16xf32>, vector<16x8xf32>, vector<8x8xf32> -> vector<8x8xf32>
    %73 = vector.extract_strided_slice %14 {offsets = [0, 24], sizes = [8, 8], strides = [1, 1]} : vector<8x32xf32> to vector<8x8xf32>
    %74 = vector.extract_strided_slice %19 {offsets = [0, 24], sizes = [16, 8], strides = [1, 1]} : vector<16x32xf32> to vector<16x8xf32>
    %75 = vector.extract_strided_slice %24 {offsets = [0, 24], sizes = [16, 8], strides = [1, 1]} : vector<16x32xf32> to vector<16x8xf32>
    %cst_40 = arith.constant dense<0.000000e+00> : vector<8x16xf32>
    %76 = tpu.matmul %73, %74, %cst_40 {dimension_numbers = #tpu.dot_dimension_numbers<[1], [1], [0], [0], [0, 0, 1, 0], [], []>} : vector<8x8xf32>, vector<16x8xf32>, vector<8x16xf32> -> vector<8x16xf32>
    %cst_41 = arith.constant 0.353553385 : f32
    %77 = vector.broadcast %cst_41 : f32 to vector<8x16xf32>
    %78 = arith.mulf %76, %77 : vector<8x16xf32>
    %cst_42 = arith.constant dense<0xFF800000> : vector<8xf32>
    %79 = vector.multi_reduction <maximumf>, %78, %cst_42 [1] : vector<8x16xf32> to vector<8xf32>
    %80 = vector.shape_cast %79 : vector<8xf32> to vector<8x1xf32>
    %81 = vector.broadcast %80 : vector<8x1xf32> to vector<8x16xf32>
    %82 = arith.subf %78, %81 : vector<8x16xf32>
    %83 = math.exp %82 : vector<8x16xf32>
    %cst_43 = arith.constant dense<0.000000e+00> : vector<8xf32>
    %84 = vector.multi_reduction <add>, %83, %cst_43 [1] : vector<8x16xf32> to vector<8xf32>
    %85 = vector.shape_cast %84 : vector<8xf32> to vector<8x1xf32>
    %86 = vector.broadcast %85 : vector<8x1xf32> to vector<8x16xf32>
    %87 = arith.divf %83, %86 : vector<8x16xf32>
    %cst_44 = arith.constant dense<0.000000e+00> : vector<8x8xf32>
    %88 = tpu.matmul %87, %75, %cst_44 {dimension_numbers = #tpu.dot_dimension_numbers<[1], [0], [0], [1], [0, 0, 1, 1], [], []>} : vector<8x16xf32>, vector<16x8xf32>, vector<8x8xf32> -> vector<8x8xf32>
    %89 = tpu.concatenate %40, %56, %72, %88 in 1 : vector<8x8xf32>, vector<8x8xf32>, vector<8x8xf32>, vector<8x8xf32> -> vector<8x32xf32>
    %c0_45 = arith.constant 0 : index
    %c0_46 = arith.constant 0 : index
    %90 = vector.load %arg8[%c0_45, %c0_46] : memref<32x32xf32, #tpu.memory_space<vmem>>, vector<32x32xf32>
    %cst_47 = arith.constant dense<0.000000e+00> : vector<8x32xf32>
    %91 = tpu.matmul %89, %90, %cst_47 {dimension_numbers = #tpu.dot_dimension_numbers<[1], [0], [0], [1], [0, 0, 1, 1], [], []>} : vector<8x32xf32>, vector<32x32xf32>, vector<8x32xf32> -> vector<8x32xf32>
    %c0_48 = arith.constant 0 : index
    %c0_49 = arith.constant 0 : index
    %92 = vector.load %arg12[%c0_48, %c0_49] : memref<1x32xf32, #tpu.memory_space<vmem>>, vector<1x32xf32>
    %93 = vector.broadcast %92 : vector<1x32xf32> to vector<8x32xf32>
    %94 = arith.addf %91, %93 : vector<8x32xf32>
    %95 = arith.addf %1, %94 : vector<8x32xf32>
    %cst_50 = arith.constant dense<0.000000e+00> : vector<8xf32>
    %96 = vector.multi_reduction <add>, %95, %cst_50 [1] : vector<8x32xf32> to vector<8xf32>
    %97 = vector.shape_cast %96 : vector<8xf32> to vector<8x1xf32>
    %cst_51 = arith.constant 3.200000e+01 : f32
    %98 = vector.broadcast %cst_51 : f32 to vector<8x1xf32>
    %99 = arith.divf %97, %98 : vector<8x1xf32>
    %100 = vector.broadcast %99 : vector<8x1xf32> to vector<8x32xf32>
    %101 = arith.subf %95, %100 : vector<8x32xf32>
    %102 = arith.mulf %101, %101 : vector<8x32xf32>
    %cst_52 = arith.constant dense<0.000000e+00> : vector<8xf32>
    %103 = vector.multi_reduction <add>, %102, %cst_52 [1] : vector<8x32xf32> to vector<8xf32>
    %104 = vector.shape_cast %103 : vector<8xf32> to vector<8x1xf32>
    %cst_53 = arith.constant 3.200000e+01 : f32
    %105 = vector.broadcast %cst_53 : f32 to vector<8x1xf32>
    %106 = arith.divf %104, %105 : vector<8x1xf32>
    %cst_54 = arith.constant 9.99999974E-6 : f32
    %107 = vector.broadcast %cst_54 : f32 to vector<8x1xf32>
    %108 = arith.addf %106, %107 : vector<8x1xf32>
    %109 = math.rsqrt %108 : vector<8x1xf32>
    %110 = vector.broadcast %109 : vector<8x1xf32> to vector<8x32xf32>
    %111 = arith.mulf %101, %110 : vector<8x32xf32>
    %c0_55 = arith.constant 0 : index
    %c0_56 = arith.constant 0 : index
    %112 = vector.load %arg13[%c0_55, %c0_56] : memref<1x32xf32, #tpu.memory_space<vmem>>, vector<1x32xf32>
    %113 = vector.broadcast %112 : vector<1x32xf32> to vector<8x32xf32>
    %114 = arith.mulf %111, %113 : vector<8x32xf32>
    %c0_57 = arith.constant 0 : index
    %c0_58 = arith.constant 0 : index
    %115 = vector.load %arg14[%c0_57, %c0_58] : memref<1x32xf32, #tpu.memory_space<vmem>>, vector<1x32xf32>
    %116 = vector.broadcast %115 : vector<1x32xf32> to vector<8x32xf32>
    %117 = arith.addf %114, %116 : vector<8x32xf32>
    %118 = vector.shape_cast %117 : vector<8x32xf32> to vector<1x8x32xf32>
    %c0_59 = arith.constant 0 : index
    %c0_60 = arith.constant 0 : index
    %c0_61 = arith.constant 0 : index
    %119 = vector.load %arg15[%c0_59, %c0_60, %c0_61] : memref<1x8x32xf32, #tpu.memory_space<vmem>>, vector<1x8x32xf32>
    tpu.vector_store %arg15[%c0_59, %c0_60, %c0_61], %118 {strides = array<i32>} : memref<1x8x32xf32, #tpu.memory_space<vmem>>, vector<1x8x32xf32>,
    return
  }
  func.func @transform_0(%arg0: i32) -> (i32, i32, i32) {
    %c0_i32 = arith.constant 0 : i32
    %c0_i32_0 = arith.constant 0 : i32
    %c0_i32_1 = arith.constant 0 : i32
    return %arg0, %c0_i32, %c0_i32_0 : i32, i32, i32
  }
  func.func @transform_1(%arg0: i32) -> (i32, i32, i32) {
    %c0_i32 = arith.constant 0 : i32
    %c0_i32_0 = arith.constant 0 : i32
    %c0_i32_1 = arith.constant 0 : i32
    return %arg0, %c0_i32, %c0_i32_0 : i32, i32, i32
  }
  func.func @transform_2(%arg0: i32) -> (i32, i32, i32) {
    %c0_i32 = arith.constant 0 : i32
    %c0_i32_0 = arith.constant 0 : i32
    %c0_i32_1 = arith.constant 0 : i32
    return %arg0, %c0_i32, %c0_i32_0 : i32, i32, i32
  }
  func.func @transform_3(%arg0: i32) -> (i32, i32, i32) {
    %c0_i32 = arith.constant 0 : i32
    %c0_i32_0 = arith.constant 0 : i32
    %c0_i32_1 = arith.constant 0 : i32
    return %arg0, %c0_i32, %c0_i32_0 : i32, i32, i32
  }
  func.func @transform_4(%arg0: i32) -> (i32, i32) {
    %c0_i32 = arith.constant 0 : i32
    %c0_i32_0 = arith.constant 0 : i32
    %c0_i32_1 = arith.constant 0 : i32
    return %c0_i32, %c0_i32_0 : i32, i32
  }
  func.func @transform_5(%arg0: i32) -> (i32, i32) {
    %c0_i32 = arith.constant 0 : i32
    %c0_i32_0 = arith.constant 0 : i32
    %c0_i32_1 = arith.constant 0 : i32
    return %c0_i32, %c0_i32_0 : i32, i32
  }
  func.func @transform_6(%arg0: i32) -> (i32, i32) {
    %c0_i32 = arith.constant 0 : i32
    %c0_i32_0 = arith.constant 0 : i32
    %c0_i32_1 = arith.constant 0 : i32
    return %c0_i32, %c0_i32_0 : i32, i32
  }
  func.func @transform_7(%arg0: i32) -> (i32, i32) {
    %c0_i32 = arith.constant 0 : i32
    %c0_i32_0 = arith.constant 0 : i32
    %c0_i32_1 = arith.constant 0 : i32
    return %c0_i32, %c0_i32_0 : i32, i32
  }
  func.func @transform_8(%arg0: i32) -> (i32, i32) {
    %c0_i32 = arith.constant 0 : i32
    %c0_i32_0 = arith.constant 0 : i32
    %c0_i32_1 = arith.constant 0 : i32
    return %c0_i32, %c0_i32_0 : i32, i32
  }
  func.func @transform_9(%arg0: i32) -> (i32, i32) {
    %c0_i32 = arith.constant 0 : i32
    %c0_i32_0 = arith.constant 0 : i32
    %c0_i32_1 = arith.constant 0 : i32
    return %c0_i32, %c0_i32_0 : i32, i32
  }
  func.func @transform_10(%arg0: i32) -> (i32, i32) {
    %c0_i32 = arith.constant 0 : i32
    %c0_i32_0 = arith.constant 0 : i32
    %c0_i32_1 = arith.constant 0 : i32
    return %c0_i32, %c0_i32_0 : i32, i32
  }
  func.func @transform_11(%arg0: i32) -> (i32, i32) {
    %c0_i32 = arith.constant 0 : i32
    %c0_i32_0 = arith.constant 0 : i32
    %c0_i32_1 = arith.constant 0 : i32
    return %c0_i32, %c0_i32_0 : i32, i32
  }
  func.func @transform_12(%arg0: i32) -> (i32, i32) {
    %c0_i32 = arith.constant 0 : i32
    %c0_i32_0 = arith.constant 0 : i32
    %c0_i32_1 = arith.constant 0 : i32
    return %c0_i32, %c0_i32_0 : i32, i32
  }
  func.func @transform_13(%arg0: i32) -> (i32, i32) {
    %c0_i32 = arith.constant 0 : i32
    %c0_i32_0 = arith.constant 0 : i32
    %c0_i32_1 = arith.constant 0 : i32
    return %c0_i32, %c0_i32_0 : i32, i32
  }
  func.func @transform_14(%arg0: i32) -> (i32, i32, i32) {
    %c0_i32 = arith.constant 0 : i32
    %c0_i32_0 = arith.constant 0 : i32
    %c0_i32_1 = arith.constant 0 : i32
    return %arg0, %c0_i32, %c0_i32_0 : i32, i32, i32
  }
}

module attributes {stable_mosaic.version = 11 : i64} {
  func.func @_ffn_ln_kernel(%arg0: i32, %arg1: memref<1x8x32xf32, #tpu.memory_space<vmem>>, %arg2: memref<32x64xf32, #tpu.memory_space<vmem>>, %arg3: memref<1x64xf32, #tpu.memory_space<vmem>>, %arg4: memref<64x32xf32, #tpu.memory_space<vmem>>, %arg5: memref<1x32xf32, #tpu.memory_space<vmem>>, %arg6: memref<1x32xf32, #tpu.memory_space<vmem>>, %arg7: memref<1x32xf32, #tpu.memory_space<vmem>>, %arg8: memref<1x8x32xf32, #tpu.memory_space<vmem>>) attributes {dimension_semantics = [#tpu.dimension_semantics<parallel>], iteration_bounds = array<i64: 2>, scalar_prefetch = 0 : i64, scratch_operands = 0 : i64, tpu.core_type = #tpu.core_type<tc>, window_params = [{transform_indices = @transform_0, window_bounds = array<i64: 1, 8, 32>}, {pipeline_mode = #tpu.pipeline_mode<synchronous>, transform_indices = @transform_1, window_bounds = array<i64: 32, 64>}, {pipeline_mode = #tpu.pipeline_mode<synchronous>, transform_indices = @transform_2, window_bounds = array<i64: 1, 64>}, {pipeline_mode = #tpu.pipeline_mode<synchronous>, transform_indices = @transform_3, window_bounds = array<i64: 64, 32>}, {pipeline_mode = #tpu.pipeline_mode<synchronous>, transform_indices = @transform_4, window_bounds = array<i64: 1, 32>}, {pipeline_mode = #tpu.pipeline_mode<synchronous>, transform_indices = @transform_5, window_bounds = array<i64: 1, 32>}, {pipeline_mode = #tpu.pipeline_mode<synchronous>, transform_indices = @transform_6, window_bounds = array<i64: 1, 32>}, {transform_indices = @transform_7, window_bounds = array<i64: 1, 8, 32>}]} {
    %c0 = arith.constant 0 : index
    %c0_0 = arith.constant 0 : index
    %c0_1 = arith.constant 0 : index
    %0 = vector.load %arg1[%c0, %c0_0, %c0_1] : memref<1x8x32xf32, #tpu.memory_space<vmem>>, vector<1x8x32xf32>
    %1 = vector.shape_cast %0 : vector<1x8x32xf32> to vector<8x32xf32>
    %c0_2 = arith.constant 0 : index
    %c0_3 = arith.constant 0 : index
    %2 = vector.load %arg2[%c0_2, %c0_3] : memref<32x64xf32, #tpu.memory_space<vmem>>, vector<32x64xf32>
    %cst = arith.constant dense<0.000000e+00> : vector<8x64xf32>
    %3 = tpu.matmul %1, %2, %cst {dimension_numbers = #tpu.dot_dimension_numbers<[1], [0], [0], [1], [0, 0, 1, 1], [], []>} : vector<8x32xf32>, vector<32x64xf32>, vector<8x64xf32> -> vector<8x64xf32>
    %c0_4 = arith.constant 0 : index
    %c0_5 = arith.constant 0 : index
    %4 = vector.load %arg3[%c0_4, %c0_5] : memref<1x64xf32, #tpu.memory_space<vmem>>, vector<1x64xf32>
    %5 = vector.broadcast %4 : vector<1x64xf32> to vector<8x64xf32>
    %6 = arith.addf %3, %5 : vector<8x64xf32>
    %cst_6 = arith.constant 5.000000e-01 : f32
    %7 = vector.broadcast %cst_6 : f32 to vector<8x64xf32>
    %8 = arith.mulf %7, %6 : vector<8x64xf32>
    %cst_7 = arith.constant 0.707106769 : f32
    %9 = vector.broadcast %cst_7 : f32 to vector<8x64xf32>
    %10 = arith.mulf %6, %9 : vector<8x64xf32>
    %cst_8 = arith.constant 0.000000e+00 : f32
    %11 = vector.broadcast %cst_8 : f32 to vector<8x64xf32>
    %12 = arith.cmpf oge, %10, %11 : vector<8x64xf32>
    %cst_9 = arith.constant 1.000000e+00 : f32
    %cst_10 = arith.constant -1.000000e+00 : f32
    %13 = vector.broadcast %cst_9 : f32 to vector<8x64xf32>
    %14 = vector.broadcast %cst_10 : f32 to vector<8x64xf32>
    %15 = arith.select %12, %13, %14 : vector<8x64xi1>, vector<8x64xf32>
    %16 = math.absf %10 : vector<8x64xf32>
    %cst_11 = arith.constant 0.327591091 : f32
    %17 = vector.broadcast %cst_11 : f32 to vector<8x64xf32>
    %18 = arith.mulf %17, %16 : vector<8x64xf32>
    %cst_12 = arith.constant 1.000000e+00 : f32
    %19 = vector.broadcast %cst_12 : f32 to vector<8x64xf32>
    %20 = arith.addf %19, %18 : vector<8x64xf32>
    %cst_13 = arith.constant 1.000000e+00 : f32
    %21 = vector.broadcast %cst_13 : f32 to vector<8x64xf32>
    %22 = arith.divf %21, %20 : vector<8x64xf32>
    %cst_14 = arith.constant 1.06140542 : f32
    %23 = vector.broadcast %cst_14 : f32 to vector<8x64xf32>
    %24 = arith.mulf %23, %22 : vector<8x64xf32>
    %cst_15 = arith.constant -1.45315206 : f32
    %25 = vector.broadcast %cst_15 : f32 to vector<8x64xf32>
    %26 = arith.addf %24, %25 : vector<8x64xf32>
    %27 = arith.mulf %26, %22 : vector<8x64xf32>
    %cst_16 = arith.constant 1.42141378 : f32
    %28 = vector.broadcast %cst_16 : f32 to vector<8x64xf32>
    %29 = arith.addf %27, %28 : vector<8x64xf32>
    %30 = arith.mulf %29, %22 : vector<8x64xf32>
    %cst_17 = arith.constant -0.284496725 : f32
    %31 = vector.broadcast %cst_17 : f32 to vector<8x64xf32>
    %32 = arith.addf %30, %31 : vector<8x64xf32>
    %33 = arith.mulf %32, %22 : vector<8x64xf32>
    %cst_18 = arith.constant 0.254829586 : f32
    %34 = vector.broadcast %cst_18 : f32 to vector<8x64xf32>
    %35 = arith.addf %33, %34 : vector<8x64xf32>
    %36 = arith.mulf %35, %22 : vector<8x64xf32>
    %cst_19 = arith.constant 0.000000e+00 : f32
    %37 = vector.broadcast %cst_19 : f32 to vector<8x64xf32>
    %38 = arith.subf %37, %16 : vector<8x64xf32>
    %39 = arith.mulf %38, %16 : vector<8x64xf32>
    %40 = math.exp %39 : vector<8x64xf32>
    %41 = arith.mulf %36, %40 : vector<8x64xf32>
    %cst_20 = arith.constant 1.000000e+00 : f32
    %42 = vector.broadcast %cst_20 : f32 to vector<8x64xf32>
    %43 = arith.subf %42, %41 : vector<8x64xf32>
    %44 = arith.mulf %15, %43 : vector<8x64xf32>
    %cst_21 = arith.constant 1.000000e+00 : f32
    %45 = vector.broadcast %cst_21 : f32 to vector<8x64xf32>
    %46 = arith.addf %45, %44 : vector<8x64xf32>
    %47 = arith.mulf %8, %46 : vector<8x64xf32>
    %c0_22 = arith.constant 0 : index
    %c0_23 = arith.constant 0 : index
    %48 = vector.load %arg4[%c0_22, %c0_23] : memref<64x32xf32, #tpu.memory_space<vmem>>, vector<64x32xf32>
    %cst_24 = arith.constant dense<0.000000e+00> : vector<8x32xf32>
    %49 = tpu.matmul %47, %48, %cst_24 {dimension_numbers = #tpu.dot_dimension_numbers<[1], [0], [0], [1], [0, 0, 1, 1], [], []>} : vector<8x64xf32>, vector<64x32xf32>, vector<8x32xf32> -> vector<8x32xf32>
    %c0_25 = arith.constant 0 : index
    %c0_26 = arith.constant 0 : index
    %50 = vector.load %arg5[%c0_25, %c0_26] : memref<1x32xf32, #tpu.memory_space<vmem>>, vector<1x32xf32>
    %51 = vector.broadcast %50 : vector<1x32xf32> to vector<8x32xf32>
    %52 = arith.addf %49, %51 : vector<8x32xf32>
    %53 = arith.addf %1, %52 : vector<8x32xf32>
    %cst_27 = arith.constant dense<0.000000e+00> : vector<8xf32>
    %54 = vector.multi_reduction <add>, %53, %cst_27 [1] : vector<8x32xf32> to vector<8xf32>
    %55 = vector.shape_cast %54 : vector<8xf32> to vector<8x1xf32>
    %cst_28 = arith.constant 3.200000e+01 : f32
    %56 = vector.broadcast %cst_28 : f32 to vector<8x1xf32>
    %57 = arith.divf %55, %56 : vector<8x1xf32>
    %58 = vector.broadcast %57 : vector<8x1xf32> to vector<8x32xf32>
    %59 = arith.subf %53, %58 : vector<8x32xf32>
    %60 = arith.mulf %59, %59 : vector<8x32xf32>
    %cst_29 = arith.constant dense<0.000000e+00> : vector<8xf32>
    %61 = vector.multi_reduction <add>, %60, %cst_29 [1] : vector<8x32xf32> to vector<8xf32>
    %62 = vector.shape_cast %61 : vector<8xf32> to vector<8x1xf32>
    %cst_30 = arith.constant 3.200000e+01 : f32
    %63 = vector.broadcast %cst_30 : f32 to vector<8x1xf32>
    %64 = arith.divf %62, %63 : vector<8x1xf32>
    %cst_31 = arith.constant 9.99999974E-6 : f32
    %65 = vector.broadcast %cst_31 : f32 to vector<8x1xf32>
    %66 = arith.addf %64, %65 : vector<8x1xf32>
    %67 = math.rsqrt %66 : vector<8x1xf32>
    %68 = vector.broadcast %67 : vector<8x1xf32> to vector<8x32xf32>
    %69 = arith.mulf %59, %68 : vector<8x32xf32>
    %c0_32 = arith.constant 0 : index
    %c0_33 = arith.constant 0 : index
    %70 = vector.load %arg6[%c0_32, %c0_33] : memref<1x32xf32, #tpu.memory_space<vmem>>, vector<1x32xf32>
    %71 = vector.broadcast %70 : vector<1x32xf32> to vector<8x32xf32>
    %72 = arith.mulf %69, %71 : vector<8x32xf32>
    %c0_34 = arith.constant 0 : index
    %c0_35 = arith.constant 0 : index
    %73 = vector.load %arg7[%c0_34, %c0_35] : memref<1x32xf32, #tpu.memory_space<vmem>>, vector<1x32xf32>
    %74 = vector.broadcast %73 : vector<1x32xf32> to vector<8x32xf32>
    %75 = arith.addf %72, %74 : vector<8x32xf32>
    %76 = vector.shape_cast %75 : vector<8x32xf32> to vector<1x8x32xf32>
    %c0_36 = arith.constant 0 : index
    %c0_37 = arith.constant 0 : index
    %c0_38 = arith.constant 0 : index
    %77 = vector.load %arg8[%c0_36, %c0_37, %c0_38] : memref<1x8x32xf32, #tpu.memory_space<vmem>>, vector<1x8x32xf32>
    tpu.vector_store %arg8[%c0_36, %c0_37, %c0_38], %76 {strides = array<i32>} : memref<1x8x32xf32, #tpu.memory_space<vmem>>, vector<1x8x32xf32>,
    return
  }
  func.func @transform_0(%arg0: i32) -> (i32, i32, i32) {
    %c0_i32 = arith.constant 0 : i32
    %c0_i32_0 = arith.constant 0 : i32
    %c0_i32_1 = arith.constant 0 : i32
    return %arg0, %c0_i32, %c0_i32_0 : i32, i32, i32
  }
  func.func @transform_1(%arg0: i32) -> (i32, i32) {
    %c0_i32 = arith.constant 0 : i32
    %c0_i32_0 = arith.constant 0 : i32
    %c0_i32_1 = arith.constant 0 : i32
    return %c0_i32, %c0_i32_0 : i32, i32
  }
  func.func @transform_2(%arg0: i32) -> (i32, i32) {
    %c0_i32 = arith.constant 0 : i32
    %c0_i32_0 = arith.constant 0 : i32
    %c0_i32_1 = arith.constant 0 : i32
    return %c0_i32, %c0_i32_0 : i32, i32
  }
  func.func @transform_3(%arg0: i32) -> (i32, i32) {
    %c0_i32 = arith.constant 0 : i32
    %c0_i32_0 = arith.constant 0 : i32
    %c0_i32_1 = arith.constant 0 : i32
    return %c0_i32, %c0_i32_0 : i32, i32
  }
  func.func @transform_4(%arg0: i32) -> (i32, i32) {
    %c0_i32 = arith.constant 0 : i32
    %c0_i32_0 = arith.constant 0 : i32
    %c0_i32_1 = arith.constant 0 : i32
    return %c0_i32, %c0_i32_0 : i32, i32
  }
  func.func @transform_5(%arg0: i32) -> (i32, i32) {
    %c0_i32 = arith.constant 0 : i32
    %c0_i32_0 = arith.constant 0 : i32
    %c0_i32_1 = arith.constant 0 : i32
    return %c0_i32, %c0_i32_0 : i32, i32
  }
  func.func @transform_6(%arg0: i32) -> (i32, i32) {
    %c0_i32 = arith.constant 0 : i32
    %c0_i32_0 = arith.constant 0 : i32
    %c0_i32_1 = arith.constant 0 : i32
    return %c0_i32, %c0_i32_0 : i32, i32
  }
  func.func @transform_7(%arg0: i32) -> (i32, i32, i32) {
    %c0_i32 = arith.constant 0 : i32
    %c0_i32_0 = arith.constant 0 : i32
    %c0_i32_1 = arith.constant 0 : i32
    return %arg0, %c0_i32, %c0_i32_0 : i32, i32, i32
  }
}

module attributes {stable_mosaic.version = 11 : i64} {
  func.func @_mha_ln_kernel(%arg0: i32, %arg1: memref<1x8x16xf32, #tpu.memory_space<vmem>>, %arg2: memref<1x8x16xf32, #tpu.memory_space<vmem>>, %arg3: memref<1x8x16xf32, #tpu.memory_space<vmem>>, %arg4: memref<1x8x16xf32, #tpu.memory_space<vmem>>, %arg5: memref<16x16xf32, #tpu.memory_space<vmem>>, %arg6: memref<16x16xf32, #tpu.memory_space<vmem>>, %arg7: memref<16x16xf32, #tpu.memory_space<vmem>>, %arg8: memref<16x16xf32, #tpu.memory_space<vmem>>, %arg9: memref<1x16xf32, #tpu.memory_space<vmem>>, %arg10: memref<1x16xf32, #tpu.memory_space<vmem>>, %arg11: memref<1x16xf32, #tpu.memory_space<vmem>>, %arg12: memref<1x16xf32, #tpu.memory_space<vmem>>, %arg13: memref<1x16xf32, #tpu.memory_space<vmem>>, %arg14: memref<1x16xf32, #tpu.memory_space<vmem>>, %arg15: memref<1x8x16xf32, #tpu.memory_space<vmem>>) attributes {dimension_semantics = [#tpu.dimension_semantics<parallel>], iteration_bounds = array<i64: 2>, scalar_prefetch = 0 : i64, scratch_operands = 0 : i64, tpu.core_type = #tpu.core_type<tc>, window_params = [{transform_indices = @transform_0, window_bounds = array<i64: 1, 8, 16>}, {transform_indices = @transform_1, window_bounds = array<i64: 1, 8, 16>}, {transform_indices = @transform_2, window_bounds = array<i64: 1, 8, 16>}, {transform_indices = @transform_3, window_bounds = array<i64: 1, 8, 16>}, {pipeline_mode = #tpu.pipeline_mode<synchronous>, transform_indices = @transform_4, window_bounds = array<i64: 16, 16>}, {pipeline_mode = #tpu.pipeline_mode<synchronous>, transform_indices = @transform_5, window_bounds = array<i64: 16, 16>}, {pipeline_mode = #tpu.pipeline_mode<synchronous>, transform_indices = @transform_6, window_bounds = array<i64: 16, 16>}, {pipeline_mode = #tpu.pipeline_mode<synchronous>, transform_indices = @transform_7, window_bounds = array<i64: 16, 16>}, {pipeline_mode = #tpu.pipeline_mode<synchronous>, transform_indices = @transform_8, window_bounds = array<i64: 1, 16>}, {pipeline_mode = #tpu.pipeline_mode<synchronous>, transform_indices = @transform_9, window_bounds = array<i64: 1, 16>}, {pipeline_mode = #tpu.pipeline_mode<synchronous>, transform_indices = @transform_10, window_bounds = array<i64: 1, 16>}, {pipeline_mode = #tpu.pipeline_mode<synchronous>, transform_indices = @transform_11, window_bounds = array<i64: 1, 16>}, {pipeline_mode = #tpu.pipeline_mode<synchronous>, transform_indices = @transform_12, window_bounds = array<i64: 1, 16>}, {pipeline_mode = #tpu.pipeline_mode<synchronous>, transform_indices = @transform_13, window_bounds = array<i64: 1, 16>}, {transform_indices = @transform_14, window_bounds = array<i64: 1, 8, 16>}]} {
    %c0 = arith.constant 0 : index
    %c0_0 = arith.constant 0 : index
    %c0_1 = arith.constant 0 : index
    %0 = vector.load %arg1[%c0, %c0_0, %c0_1] : memref<1x8x16xf32, #tpu.memory_space<vmem>>, vector<1x8x16xf32>
    %1 = vector.shape_cast %0 : vector<1x8x16xf32> to vector<8x16xf32>
    %c0_2 = arith.constant 0 : index
    %c0_3 = arith.constant 0 : index
    %c0_4 = arith.constant 0 : index
    %2 = vector.load %arg2[%c0_2, %c0_3, %c0_4] : memref<1x8x16xf32, #tpu.memory_space<vmem>>, vector<1x8x16xf32>
    %3 = vector.shape_cast %2 : vector<1x8x16xf32> to vector<8x16xf32>
    %4 = arith.addf %1, %3 : vector<8x16xf32>
    %c0_5 = arith.constant 0 : index
    %c0_6 = arith.constant 0 : index
    %c0_7 = arith.constant 0 : index
    %5 = vector.load %arg3[%c0_5, %c0_6, %c0_7] : memref<1x8x16xf32, #tpu.memory_space<vmem>>, vector<1x8x16xf32>
    %6 = vector.shape_cast %5 : vector<1x8x16xf32> to vector<8x16xf32>
    %c0_8 = arith.constant 0 : index
    %c0_9 = arith.constant 0 : index
    %c0_10 = arith.constant 0 : index
    %7 = vector.load %arg4[%c0_8, %c0_9, %c0_10] : memref<1x8x16xf32, #tpu.memory_space<vmem>>, vector<1x8x16xf32>
    %8 = vector.shape_cast %7 : vector<1x8x16xf32> to vector<8x16xf32>
    %9 = arith.addf %6, %8 : vector<8x16xf32>
    %c0_11 = arith.constant 0 : index
    %c0_12 = arith.constant 0 : index
    %10 = vector.load %arg5[%c0_11, %c0_12] : memref<16x16xf32, #tpu.memory_space<vmem>>, vector<16x16xf32>
    %cst = arith.constant dense<0.000000e+00> : vector<8x16xf32>
    %11 = tpu.matmul %4, %10, %cst {dimension_numbers = #tpu.dot_dimension_numbers<[1], [0], [0], [1], [0, 0, 1, 1], [], []>} : vector<8x16xf32>, vector<16x16xf32>, vector<8x16xf32> -> vector<8x16xf32>
    %c0_13 = arith.constant 0 : index
    %c0_14 = arith.constant 0 : index
    %12 = vector.load %arg9[%c0_13, %c0_14] : memref<1x16xf32, #tpu.memory_space<vmem>>, vector<1x16xf32>
    %13 = vector.broadcast %12 : vector<1x16xf32> to vector<8x16xf32>
    %14 = arith.addf %11, %13 : vector<8x16xf32>
    %c0_15 = arith.constant 0 : index
    %c0_16 = arith.constant 0 : index
    %15 = vector.load %arg6[%c0_15, %c0_16] : memref<16x16xf32, #tpu.memory_space<vmem>>, vector<16x16xf32>
    %cst_17 = arith.constant dense<0.000000e+00> : vector<8x16xf32>
    %16 = tpu.matmul %9, %15, %cst_17 {dimension_numbers = #tpu.dot_dimension_numbers<[1], [0], [0], [1], [0, 0, 1, 1], [], []>} : vector<8x16xf32>, vector<16x16xf32>, vector<8x16xf32> -> vector<8x16xf32>
    %c0_18 = arith.constant 0 : index
    %c0_19 = arith.constant 0 : index
    %17 = vector.load %arg10[%c0_18, %c0_19] : memref<1x16xf32, #tpu.memory_space<vmem>>, vector<1x16xf32>
    %18 = vector.broadcast %17 : vector<1x16xf32> to vector<8x16xf32>
    %19 = arith.addf %16, %18 : vector<8x16xf32>
    %c0_20 = arith.constant 0 : index
    %c0_21 = arith.constant 0 : index
    %20 = vector.load %arg7[%c0_20, %c0_21] : memref<16x16xf32, #tpu.memory_space<vmem>>, vector<16x16xf32>
    %cst_22 = arith.constant dense<0.000000e+00> : vector<8x16xf32>
    %21 = tpu.matmul %6, %20, %cst_22 {dimension_numbers = #tpu.dot_dimension_numbers<[1], [0], [0], [1], [0, 0, 1, 1], [], []>} : vector<8x16xf32>, vector<16x16xf32>, vector<8x16xf32> -> vector<8x16xf32>
    %c0_23 = arith.constant 0 : index
    %c0_24 = arith.constant 0 : index
    %22 = vector.load %arg11[%c0_23, %c0_24] : memref<1x16xf32, #tpu.memory_space<vmem>>, vector<1x16xf32>
    %23 = vector.broadcast %22 : vector<1x16xf32> to vector<8x16xf32>
    %24 = arith.addf %21, %23 : vector<8x16xf32>
    %25 = vector.extract_strided_slice %14 {offsets = [0, 0], sizes = [8, 4], strides = [1, 1]} : vector<8x16xf32> to vector<8x4xf32>
    %26 = vector.extract_strided_slice %19 {offsets = [0, 0], sizes = [8, 4], strides = [1, 1]} : vector<8x16xf32> to vector<8x4xf32>
    %27 = vector.extract_strided_slice %24 {offsets = [0, 0], sizes = [8, 4], strides = [1, 1]} : vector<8x16xf32> to vector<8x4xf32>
    %cst_25 = arith.constant dense<0.000000e+00> : vector<8x8xf32>
    %28 = tpu.matmul %25, %26, %cst_25 {dimension_numbers = #tpu.dot_dimension_numbers<[1], [1], [0], [0], [0, 0, 1, 0], [], []>} : vector<8x4xf32>, vector<8x4xf32>, vector<8x8xf32> -> vector<8x8xf32>
    %cst_26 = arith.constant 5.000000e-01 : f32
    %29 = vector.broadcast %cst_26 : f32 to vector<8x8xf32>
    %30 = arith.mulf %28, %29 : vector<8x8xf32>
    %cst_27 = arith.constant dense<0xFF800000> : vector<8xf32>
    %31 = vector.multi_reduction <maximumf>, %30, %cst_27 [1] : vector<8x8xf32> to vector<8xf32>
    %32 = vector.shape_cast %31 : vector<8xf32> to vector<8x1xf32>
    %33 = vector.broadcast %32 : vector<8x1xf32> to vector<8x8xf32>
    %34 = arith.subf %30, %33 : vector<8x8xf32>
    %35 = math.exp %34 : vector<8x8xf32>
    %cst_28 = arith.constant dense<0.000000e+00> : vector<8xf32>
    %36 = vector.multi_reduction <add>, %35, %cst_28 [1] : vector<8x8xf32> to vector<8xf32>
    %37 = vector.shape_cast %36 : vector<8xf32> to vector<8x1xf32>
    %38 = vector.broadcast %37 : vector<8x1xf32> to vector<8x8xf32>
    %39 = arith.divf %35, %38 : vector<8x8xf32>
    %cst_29 = arith.constant dense<0.000000e+00> : vector<8x4xf32>
    %40 = tpu.matmul %39, %27, %cst_29 {dimension_numbers = #tpu.dot_dimension_numbers<[1], [0], [0], [1], [0, 0, 1, 1], [], []>} : vector<8x8xf32>, vector<8x4xf32>, vector<8x4xf32> -> vector<8x4xf32>
    %41 = vector.extract_strided_slice %14 {offsets = [0, 4], sizes = [8, 4], strides = [1, 1]} : vector<8x16xf32> to vector<8x4xf32>
    %42 = vector.extract_strided_slice %19 {offsets = [0, 4], sizes = [8, 4], strides = [1, 1]} : vector<8x16xf32> to vector<8x4xf32>
    %43 = vector.extract_strided_slice %24 {offsets = [0, 4], sizes = [8, 4], strides = [1, 1]} : vector<8x16xf32> to vector<8x4xf32>
    %cst_30 = arith.constant dense<0.000000e+00> : vector<8x8xf32>
    %44 = tpu.matmul %41, %42, %cst_30 {dimension_numbers = #tpu.dot_dimension_numbers<[1], [1], [0], [0], [0, 0, 1, 0], [], []>} : vector<8x4xf32>, vector<8x4xf32>, vector<8x8xf32> -> vector<8x8xf32>
    %cst_31 = arith.constant 5.000000e-01 : f32
    %45 = vector.broadcast %cst_31 : f32 to vector<8x8xf32>
    %46 = arith.mulf %44, %45 : vector<8x8xf32>
    %cst_32 = arith.constant dense<0xFF800000> : vector<8xf32>
    %47 = vector.multi_reduction <maximumf>, %46, %cst_32 [1] : vector<8x8xf32> to vector<8xf32>
    %48 = vector.shape_cast %47 : vector<8xf32> to vector<8x1xf32>
    %49 = vector.broadcast %48 : vector<8x1xf32> to vector<8x8xf32>
    %50 = arith.subf %46, %49 : vector<8x8xf32>
    %51 = math.exp %50 : vector<8x8xf32>
    %cst_33 = arith.constant dense<0.000000e+00> : vector<8xf32>
    %52 = vector.multi_reduction <add>, %51, %cst_33 [1] : vector<8x8xf32> to vector<8xf32>
    %53 = vector.shape_cast %52 : vector<8xf32> to vector<8x1xf32>
    %54 = vector.broadcast %53 : vector<8x1xf32> to vector<8x8xf32>
    %55 = arith.divf %51, %54 : vector<8x8xf32>
    %cst_34 = arith.constant dense<0.000000e+00> : vector<8x4xf32>
    %56 = tpu.matmul %55, %43, %cst_34 {dimension_numbers = #tpu.dot_dimension_numbers<[1], [0], [0], [1], [0, 0, 1, 1], [], []>} : vector<8x8xf32>, vector<8x4xf32>, vector<8x4xf32> -> vector<8x4xf32>
    %57 = vector.extract_strided_slice %14 {offsets = [0, 8], sizes = [8, 4], strides = [1, 1]} : vector<8x16xf32> to vector<8x4xf32>
    %58 = vector.extract_strided_slice %19 {offsets = [0, 8], sizes = [8, 4], strides = [1, 1]} : vector<8x16xf32> to vector<8x4xf32>
    %59 = vector.extract_strided_slice %24 {offsets = [0, 8], sizes = [8, 4], strides = [1, 1]} : vector<8x16xf32> to vector<8x4xf32>
    %cst_35 = arith.constant dense<0.000000e+00> : vector<8x8xf32>
    %60 = tpu.matmul %57, %58, %cst_35 {dimension_numbers = #tpu.dot_dimension_numbers<[1], [1], [0], [0], [0, 0, 1, 0], [], []>} : vector<8x4xf32>, vector<8x4xf32>, vector<8x8xf32> -> vector<8x8xf32>
    %cst_36 = arith.constant 5.000000e-01 : f32
    %61 = vector.broadcast %cst_36 : f32 to vector<8x8xf32>
    %62 = arith.mulf %60, %61 : vector<8x8xf32>
    %cst_37 = arith.constant dense<0xFF800000> : vector<8xf32>
    %63 = vector.multi_reduction <maximumf>, %62, %cst_37 [1] : vector<8x8xf32> to vector<8xf32>
    %64 = vector.shape_cast %63 : vector<8xf32> to vector<8x1xf32>
    %65 = vector.broadcast %64 : vector<8x1xf32> to vector<8x8xf32>
    %66 = arith.subf %62, %65 : vector<8x8xf32>
    %67 = math.exp %66 : vector<8x8xf32>
    %cst_38 = arith.constant dense<0.000000e+00> : vector<8xf32>
    %68 = vector.multi_reduction <add>, %67, %cst_38 [1] : vector<8x8xf32> to vector<8xf32>
    %69 = vector.shape_cast %68 : vector<8xf32> to vector<8x1xf32>
    %70 = vector.broadcast %69 : vector<8x1xf32> to vector<8x8xf32>
    %71 = arith.divf %67, %70 : vector<8x8xf32>
    %cst_39 = arith.constant dense<0.000000e+00> : vector<8x4xf32>
    %72 = tpu.matmul %71, %59, %cst_39 {dimension_numbers = #tpu.dot_dimension_numbers<[1], [0], [0], [1], [0, 0, 1, 1], [], []>} : vector<8x8xf32>, vector<8x4xf32>, vector<8x4xf32> -> vector<8x4xf32>
    %73 = vector.extract_strided_slice %14 {offsets = [0, 12], sizes = [8, 4], strides = [1, 1]} : vector<8x16xf32> to vector<8x4xf32>
    %74 = vector.extract_strided_slice %19 {offsets = [0, 12], sizes = [8, 4], strides = [1, 1]} : vector<8x16xf32> to vector<8x4xf32>
    %75 = vector.extract_strided_slice %24 {offsets = [0, 12], sizes = [8, 4], strides = [1, 1]} : vector<8x16xf32> to vector<8x4xf32>
    %cst_40 = arith.constant dense<0.000000e+00> : vector<8x8xf32>
    %76 = tpu.matmul %73, %74, %cst_40 {dimension_numbers = #tpu.dot_dimension_numbers<[1], [1], [0], [0], [0, 0, 1, 0], [], []>} : vector<8x4xf32>, vector<8x4xf32>, vector<8x8xf32> -> vector<8x8xf32>
    %cst_41 = arith.constant 5.000000e-01 : f32
    %77 = vector.broadcast %cst_41 : f32 to vector<8x8xf32>
    %78 = arith.mulf %76, %77 : vector<8x8xf32>
    %cst_42 = arith.constant dense<0xFF800000> : vector<8xf32>
    %79 = vector.multi_reduction <maximumf>, %78, %cst_42 [1] : vector<8x8xf32> to vector<8xf32>
    %80 = vector.shape_cast %79 : vector<8xf32> to vector<8x1xf32>
    %81 = vector.broadcast %80 : vector<8x1xf32> to vector<8x8xf32>
    %82 = arith.subf %78, %81 : vector<8x8xf32>
    %83 = math.exp %82 : vector<8x8xf32>
    %cst_43 = arith.constant dense<0.000000e+00> : vector<8xf32>
    %84 = vector.multi_reduction <add>, %83, %cst_43 [1] : vector<8x8xf32> to vector<8xf32>
    %85 = vector.shape_cast %84 : vector<8xf32> to vector<8x1xf32>
    %86 = vector.broadcast %85 : vector<8x1xf32> to vector<8x8xf32>
    %87 = arith.divf %83, %86 : vector<8x8xf32>
    %cst_44 = arith.constant dense<0.000000e+00> : vector<8x4xf32>
    %88 = tpu.matmul %87, %75, %cst_44 {dimension_numbers = #tpu.dot_dimension_numbers<[1], [0], [0], [1], [0, 0, 1, 1], [], []>} : vector<8x8xf32>, vector<8x4xf32>, vector<8x4xf32> -> vector<8x4xf32>
    %89 = tpu.concatenate %40, %56, %72, %88 in 1 : vector<8x4xf32>, vector<8x4xf32>, vector<8x4xf32>, vector<8x4xf32> -> vector<8x16xf32>
    %c0_45 = arith.constant 0 : index
    %c0_46 = arith.constant 0 : index
    %90 = vector.load %arg8[%c0_45, %c0_46] : memref<16x16xf32, #tpu.memory_space<vmem>>, vector<16x16xf32>
    %cst_47 = arith.constant dense<0.000000e+00> : vector<8x16xf32>
    %91 = tpu.matmul %89, %90, %cst_47 {dimension_numbers = #tpu.dot_dimension_numbers<[1], [0], [0], [1], [0, 0, 1, 1], [], []>} : vector<8x16xf32>, vector<16x16xf32>, vector<8x16xf32> -> vector<8x16xf32>
    %c0_48 = arith.constant 0 : index
    %c0_49 = arith.constant 0 : index
    %92 = vector.load %arg12[%c0_48, %c0_49] : memref<1x16xf32, #tpu.memory_space<vmem>>, vector<1x16xf32>
    %93 = vector.broadcast %92 : vector<1x16xf32> to vector<8x16xf32>
    %94 = arith.addf %91, %93 : vector<8x16xf32>
    %95 = arith.addf %1, %94 : vector<8x16xf32>
    %cst_50 = arith.constant dense<0.000000e+00> : vector<8xf32>
    %96 = vector.multi_reduction <add>, %95, %cst_50 [1] : vector<8x16xf32> to vector<8xf32>
    %97 = vector.shape_cast %96 : vector<8xf32> to vector<8x1xf32>
    %cst_51 = arith.constant 1.600000e+01 : f32
    %98 = vector.broadcast %cst_51 : f32 to vector<8x1xf32>
    %99 = arith.divf %97, %98 : vector<8x1xf32>
    %100 = vector.broadcast %99 : vector<8x1xf32> to vector<8x16xf32>
    %101 = arith.subf %95, %100 : vector<8x16xf32>
    %102 = arith.mulf %101, %101 : vector<8x16xf32>
    %cst_52 = arith.constant dense<0.000000e+00> : vector<8xf32>
    %103 = vector.multi_reduction <add>, %102, %cst_52 [1] : vector<8x16xf32> to vector<8xf32>
    %104 = vector.shape_cast %103 : vector<8xf32> to vector<8x1xf32>
    %cst_53 = arith.constant 1.600000e+01 : f32
    %105 = vector.broadcast %cst_53 : f32 to vector<8x1xf32>
    %106 = arith.divf %104, %105 : vector<8x1xf32>
    %cst_54 = arith.constant 9.99999974E-6 : f32
    %107 = vector.broadcast %cst_54 : f32 to vector<8x1xf32>
    %108 = arith.addf %106, %107 : vector<8x1xf32>
    %109 = math.rsqrt %108 : vector<8x1xf32>
    %110 = vector.broadcast %109 : vector<8x1xf32> to vector<8x16xf32>
    %111 = arith.mulf %101, %110 : vector<8x16xf32>
    %c0_55 = arith.constant 0 : index
    %c0_56 = arith.constant 0 : index
    %112 = vector.load %arg13[%c0_55, %c0_56] : memref<1x16xf32, #tpu.memory_space<vmem>>, vector<1x16xf32>
    %113 = vector.broadcast %112 : vector<1x16xf32> to vector<8x16xf32>
    %114 = arith.mulf %111, %113 : vector<8x16xf32>
    %c0_57 = arith.constant 0 : index
    %c0_58 = arith.constant 0 : index
    %115 = vector.load %arg14[%c0_57, %c0_58] : memref<1x16xf32, #tpu.memory_space<vmem>>, vector<1x16xf32>
    %116 = vector.broadcast %115 : vector<1x16xf32> to vector<8x16xf32>
    %117 = arith.addf %114, %116 : vector<8x16xf32>
    %118 = vector.shape_cast %117 : vector<8x16xf32> to vector<1x8x16xf32>
    %c0_59 = arith.constant 0 : index
    %c0_60 = arith.constant 0 : index
    %c0_61 = arith.constant 0 : index
    %119 = vector.load %arg15[%c0_59, %c0_60, %c0_61] : memref<1x8x16xf32, #tpu.memory_space<vmem>>, vector<1x8x16xf32>
    tpu.vector_store %arg15[%c0_59, %c0_60, %c0_61], %118 {strides = array<i32>} : memref<1x8x16xf32, #tpu.memory_space<vmem>>, vector<1x8x16xf32>,
    return
  }
  func.func @transform_0(%arg0: i32) -> (i32, i32, i32) {
    %c0_i32 = arith.constant 0 : i32
    %c0_i32_0 = arith.constant 0 : i32
    %c0_i32_1 = arith.constant 0 : i32
    return %arg0, %c0_i32, %c0_i32_0 : i32, i32, i32
  }
  func.func @transform_1(%arg0: i32) -> (i32, i32, i32) {
    %c0_i32 = arith.constant 0 : i32
    %c0_i32_0 = arith.constant 0 : i32
    %c0_i32_1 = arith.constant 0 : i32
    return %arg0, %c0_i32, %c0_i32_0 : i32, i32, i32
  }
  func.func @transform_2(%arg0: i32) -> (i32, i32, i32) {
    %c0_i32 = arith.constant 0 : i32
    %c0_i32_0 = arith.constant 0 : i32
    %c0_i32_1 = arith.constant 0 : i32
    return %arg0, %c0_i32, %c0_i32_0 : i32, i32, i32
  }
  func.func @transform_3(%arg0: i32) -> (i32, i32, i32) {
    %c0_i32 = arith.constant 0 : i32
    %c0_i32_0 = arith.constant 0 : i32
    %c0_i32_1 = arith.constant 0 : i32
    return %arg0, %c0_i32, %c0_i32_0 : i32, i32, i32
  }
  func.func @transform_4(%arg0: i32) -> (i32, i32) {
    %c0_i32 = arith.constant 0 : i32
    %c0_i32_0 = arith.constant 0 : i32
    %c0_i32_1 = arith.constant 0 : i32
    return %c0_i32, %c0_i32_0 : i32, i32
  }
  func.func @transform_5(%arg0: i32) -> (i32, i32) {
    %c0_i32 = arith.constant 0 : i32
    %c0_i32_0 = arith.constant 0 : i32
    %c0_i32_1 = arith.constant 0 : i32
    return %c0_i32, %c0_i32_0 : i32, i32
  }
  func.func @transform_6(%arg0: i32) -> (i32, i32) {
    %c0_i32 = arith.constant 0 : i32
    %c0_i32_0 = arith.constant 0 : i32
    %c0_i32_1 = arith.constant 0 : i32
    return %c0_i32, %c0_i32_0 : i32, i32
  }
  func.func @transform_7(%arg0: i32) -> (i32, i32) {
    %c0_i32 = arith.constant 0 : i32
    %c0_i32_0 = arith.constant 0 : i32
    %c0_i32_1 = arith.constant 0 : i32
    return %c0_i32, %c0_i32_0 : i32, i32
  }
  func.func @transform_8(%arg0: i32) -> (i32, i32) {
    %c0_i32 = arith.constant 0 : i32
    %c0_i32_0 = arith.constant 0 : i32
    %c0_i32_1 = arith.constant 0 : i32
    return %c0_i32, %c0_i32_0 : i32, i32
  }
  func.func @transform_9(%arg0: i32) -> (i32, i32) {
    %c0_i32 = arith.constant 0 : i32
    %c0_i32_0 = arith.constant 0 : i32
    %c0_i32_1 = arith.constant 0 : i32
    return %c0_i32, %c0_i32_0 : i32, i32
  }
  func.func @transform_10(%arg0: i32) -> (i32, i32) {
    %c0_i32 = arith.constant 0 : i32
    %c0_i32_0 = arith.constant 0 : i32
    %c0_i32_1 = arith.constant 0 : i32
    return %c0_i32, %c0_i32_0 : i32, i32
  }
  func.func @transform_11(%arg0: i32) -> (i32, i32) {
    %c0_i32 = arith.constant 0 : i32
    %c0_i32_0 = arith.constant 0 : i32
    %c0_i32_1 = arith.constant 0 : i32
    return %c0_i32, %c0_i32_0 : i32, i32
  }
  func.func @transform_12(%arg0: i32) -> (i32, i32) {
    %c0_i32 = arith.constant 0 : i32
    %c0_i32_0 = arith.constant 0 : i32
    %c0_i32_1 = arith.constant 0 : i32
    return %c0_i32, %c0_i32_0 : i32, i32
  }
  func.func @transform_13(%arg0: i32) -> (i32, i32) {
    %c0_i32 = arith.constant 0 : i32
    %c0_i32_0 = arith.constant 0 : i32
    %c0_i32_1 = arith.constant 0 : i32
    return %c0_i32, %c0_i32_0 : i32, i32
  }
  func.func @transform_14(%arg0: i32) -> (i32, i32, i32) {
    %c0_i32 = arith.constant 0 : i32
    %c0_i32_0 = arith.constant 0 : i32
    %c0_i32_1 = arith.constant 0 : i32
    return %arg0, %c0_i32, %c0_i32_0 : i32, i32, i32
  }
}

module attributes {stable_mosaic.version = 11 : i64} {
  func.func @_ffn_ln_kernel(%arg0: i32, %arg1: memref<1x8x16xf32, #tpu.memory_space<vmem>>, %arg2: memref<16x64xf32, #tpu.memory_space<vmem>>, %arg3: memref<1x64xf32, #tpu.memory_space<vmem>>, %arg4: memref<64x16xf32, #tpu.memory_space<vmem>>, %arg5: memref<1x16xf32, #tpu.memory_space<vmem>>, %arg6: memref<1x16xf32, #tpu.memory_space<vmem>>, %arg7: memref<1x16xf32, #tpu.memory_space<vmem>>, %arg8: memref<1x8x16xf32, #tpu.memory_space<vmem>>) attributes {dimension_semantics = [#tpu.dimension_semantics<parallel>], iteration_bounds = array<i64: 2>, scalar_prefetch = 0 : i64, scratch_operands = 0 : i64, tpu.core_type = #tpu.core_type<tc>, window_params = [{transform_indices = @transform_0, window_bounds = array<i64: 1, 8, 16>}, {pipeline_mode = #tpu.pipeline_mode<synchronous>, transform_indices = @transform_1, window_bounds = array<i64: 16, 64>}, {pipeline_mode = #tpu.pipeline_mode<synchronous>, transform_indices = @transform_2, window_bounds = array<i64: 1, 64>}, {pipeline_mode = #tpu.pipeline_mode<synchronous>, transform_indices = @transform_3, window_bounds = array<i64: 64, 16>}, {pipeline_mode = #tpu.pipeline_mode<synchronous>, transform_indices = @transform_4, window_bounds = array<i64: 1, 16>}, {pipeline_mode = #tpu.pipeline_mode<synchronous>, transform_indices = @transform_5, window_bounds = array<i64: 1, 16>}, {pipeline_mode = #tpu.pipeline_mode<synchronous>, transform_indices = @transform_6, window_bounds = array<i64: 1, 16>}, {transform_indices = @transform_7, window_bounds = array<i64: 1, 8, 16>}]} {
    %c0 = arith.constant 0 : index
    %c0_0 = arith.constant 0 : index
    %c0_1 = arith.constant 0 : index
    %0 = vector.load %arg1[%c0, %c0_0, %c0_1] : memref<1x8x16xf32, #tpu.memory_space<vmem>>, vector<1x8x16xf32>
    %1 = vector.shape_cast %0 : vector<1x8x16xf32> to vector<8x16xf32>
    %c0_2 = arith.constant 0 : index
    %c0_3 = arith.constant 0 : index
    %2 = vector.load %arg2[%c0_2, %c0_3] : memref<16x64xf32, #tpu.memory_space<vmem>>, vector<16x64xf32>
    %cst = arith.constant dense<0.000000e+00> : vector<8x64xf32>
    %3 = tpu.matmul %1, %2, %cst {dimension_numbers = #tpu.dot_dimension_numbers<[1], [0], [0], [1], [0, 0, 1, 1], [], []>} : vector<8x16xf32>, vector<16x64xf32>, vector<8x64xf32> -> vector<8x64xf32>
    %c0_4 = arith.constant 0 : index
    %c0_5 = arith.constant 0 : index
    %4 = vector.load %arg3[%c0_4, %c0_5] : memref<1x64xf32, #tpu.memory_space<vmem>>, vector<1x64xf32>
    %5 = vector.broadcast %4 : vector<1x64xf32> to vector<8x64xf32>
    %6 = arith.addf %3, %5 : vector<8x64xf32>
    %cst_6 = arith.constant 5.000000e-01 : f32
    %7 = vector.broadcast %cst_6 : f32 to vector<8x64xf32>
    %8 = arith.mulf %7, %6 : vector<8x64xf32>
    %cst_7 = arith.constant 0.707106769 : f32
    %9 = vector.broadcast %cst_7 : f32 to vector<8x64xf32>
    %10 = arith.mulf %6, %9 : vector<8x64xf32>
    %cst_8 = arith.constant 0.000000e+00 : f32
    %11 = vector.broadcast %cst_8 : f32 to vector<8x64xf32>
    %12 = arith.cmpf oge, %10, %11 : vector<8x64xf32>
    %cst_9 = arith.constant 1.000000e+00 : f32
    %cst_10 = arith.constant -1.000000e+00 : f32
    %13 = vector.broadcast %cst_9 : f32 to vector<8x64xf32>
    %14 = vector.broadcast %cst_10 : f32 to vector<8x64xf32>
    %15 = arith.select %12, %13, %14 : vector<8x64xi1>, vector<8x64xf32>
    %16 = math.absf %10 : vector<8x64xf32>
    %cst_11 = arith.constant 0.327591091 : f32
    %17 = vector.broadcast %cst_11 : f32 to vector<8x64xf32>
    %18 = arith.mulf %17, %16 : vector<8x64xf32>
    %cst_12 = arith.constant 1.000000e+00 : f32
    %19 = vector.broadcast %cst_12 : f32 to vector<8x64xf32>
    %20 = arith.addf %19, %18 : vector<8x64xf32>
    %cst_13 = arith.constant 1.000000e+00 : f32
    %21 = vector.broadcast %cst_13 : f32 to vector<8x64xf32>
    %22 = arith.divf %21, %20 : vector<8x64xf32>
    %cst_14 = arith.constant 1.06140542 : f32
    %23 = vector.broadcast %cst_14 : f32 to vector<8x64xf32>
    %24 = arith.mulf %23, %22 : vector<8x64xf32>
    %cst_15 = arith.constant -1.45315206 : f32
    %25 = vector.broadcast %cst_15 : f32 to vector<8x64xf32>
    %26 = arith.addf %24, %25 : vector<8x64xf32>
    %27 = arith.mulf %26, %22 : vector<8x64xf32>
    %cst_16 = arith.constant 1.42141378 : f32
    %28 = vector.broadcast %cst_16 : f32 to vector<8x64xf32>
    %29 = arith.addf %27, %28 : vector<8x64xf32>
    %30 = arith.mulf %29, %22 : vector<8x64xf32>
    %cst_17 = arith.constant -0.284496725 : f32
    %31 = vector.broadcast %cst_17 : f32 to vector<8x64xf32>
    %32 = arith.addf %30, %31 : vector<8x64xf32>
    %33 = arith.mulf %32, %22 : vector<8x64xf32>
    %cst_18 = arith.constant 0.254829586 : f32
    %34 = vector.broadcast %cst_18 : f32 to vector<8x64xf32>
    %35 = arith.addf %33, %34 : vector<8x64xf32>
    %36 = arith.mulf %35, %22 : vector<8x64xf32>
    %cst_19 = arith.constant 0.000000e+00 : f32
    %37 = vector.broadcast %cst_19 : f32 to vector<8x64xf32>
    %38 = arith.subf %37, %16 : vector<8x64xf32>
    %39 = arith.mulf %38, %16 : vector<8x64xf32>
    %40 = math.exp %39 : vector<8x64xf32>
    %41 = arith.mulf %36, %40 : vector<8x64xf32>
    %cst_20 = arith.constant 1.000000e+00 : f32
    %42 = vector.broadcast %cst_20 : f32 to vector<8x64xf32>
    %43 = arith.subf %42, %41 : vector<8x64xf32>
    %44 = arith.mulf %15, %43 : vector<8x64xf32>
    %cst_21 = arith.constant 1.000000e+00 : f32
    %45 = vector.broadcast %cst_21 : f32 to vector<8x64xf32>
    %46 = arith.addf %45, %44 : vector<8x64xf32>
    %47 = arith.mulf %8, %46 : vector<8x64xf32>
    %c0_22 = arith.constant 0 : index
    %c0_23 = arith.constant 0 : index
    %48 = vector.load %arg4[%c0_22, %c0_23] : memref<64x16xf32, #tpu.memory_space<vmem>>, vector<64x16xf32>
    %cst_24 = arith.constant dense<0.000000e+00> : vector<8x16xf32>
    %49 = tpu.matmul %47, %48, %cst_24 {dimension_numbers = #tpu.dot_dimension_numbers<[1], [0], [0], [1], [0, 0, 1, 1], [], []>} : vector<8x64xf32>, vector<64x16xf32>, vector<8x16xf32> -> vector<8x16xf32>
    %c0_25 = arith.constant 0 : index
    %c0_26 = arith.constant 0 : index
    %50 = vector.load %arg5[%c0_25, %c0_26] : memref<1x16xf32, #tpu.memory_space<vmem>>, vector<1x16xf32>
    %51 = vector.broadcast %50 : vector<1x16xf32> to vector<8x16xf32>
    %52 = arith.addf %49, %51 : vector<8x16xf32>
    %53 = arith.addf %1, %52 : vector<8x16xf32>
    %cst_27 = arith.constant dense<0.000000e+00> : vector<8xf32>
    %54 = vector.multi_reduction <add>, %53, %cst_27 [1] : vector<8x16xf32> to vector<8xf32>
    %55 = vector.shape_cast %54 : vector<8xf32> to vector<8x1xf32>
    %cst_28 = arith.constant 1.600000e+01 : f32
    %56 = vector.broadcast %cst_28 : f32 to vector<8x1xf32>
    %57 = arith.divf %55, %56 : vector<8x1xf32>
    %58 = vector.broadcast %57 : vector<8x1xf32> to vector<8x16xf32>
    %59 = arith.subf %53, %58 : vector<8x16xf32>
    %60 = arith.mulf %59, %59 : vector<8x16xf32>
    %cst_29 = arith.constant dense<0.000000e+00> : vector<8xf32>
    %61 = vector.multi_reduction <add>, %60, %cst_29 [1] : vector<8x16xf32> to vector<8xf32>
    %62 = vector.shape_cast %61 : vector<8xf32> to vector<8x1xf32>
    %cst_30 = arith.constant 1.600000e+01 : f32
    %63 = vector.broadcast %cst_30 : f32 to vector<8x1xf32>
    %64 = arith.divf %62, %63 : vector<8x1xf32>
    %cst_31 = arith.constant 9.99999974E-6 : f32
    %65 = vector.broadcast %cst_31 : f32 to vector<8x1xf32>
    %66 = arith.addf %64, %65 : vector<8x1xf32>
    %67 = math.rsqrt %66 : vector<8x1xf32>
    %68 = vector.broadcast %67 : vector<8x1xf32> to vector<8x16xf32>
    %69 = arith.mulf %59, %68 : vector<8x16xf32>
    %c0_32 = arith.constant 0 : index
    %c0_33 = arith.constant 0 : index
    %70 = vector.load %arg6[%c0_32, %c0_33] : memref<1x16xf32, #tpu.memory_space<vmem>>, vector<1x16xf32>
    %71 = vector.broadcast %70 : vector<1x16xf32> to vector<8x16xf32>
    %72 = arith.mulf %69, %71 : vector<8x16xf32>
    %c0_34 = arith.constant 0 : index
    %c0_35 = arith.constant 0 : index
    %73 = vector.load %arg7[%c0_34, %c0_35] : memref<1x16xf32, #tpu.memory_space<vmem>>, vector<1x16xf32>
    %74 = vector.broadcast %73 : vector<1x16xf32> to vector<8x16xf32>
    %75 = arith.addf %72, %74 : vector<8x16xf32>
    %76 = vector.shape_cast %75 : vector<8x16xf32> to vector<1x8x16xf32>
    %c0_36 = arith.constant 0 : index
    %c0_37 = arith.constant 0 : index
    %c0_38 = arith.constant 0 : index
    %77 = vector.load %arg8[%c0_36, %c0_37, %c0_38] : memref<1x8x16xf32, #tpu.memory_space<vmem>>, vector<1x8x16xf32>
    tpu.vector_store %arg8[%c0_36, %c0_37, %c0_38], %76 {strides = array<i32>} : memref<1x8x16xf32, #tpu.memory_space<vmem>>, vector<1x8x16xf32>,
    return
  }
  func.func @transform_0(%arg0: i32) -> (i32, i32, i32) {
    %c0_i32 = arith.constant 0 : i32
    %c0_i32_0 = arith.constant 0 : i32
    %c0_i32_1 = arith.constant 0 : i32
    return %arg0, %c0_i32, %c0_i32_0 : i32, i32, i32
  }
  func.func @transform_1(%arg0: i32) -> (i32, i32) {
    %c0_i32 = arith.constant 0 : i32
    %c0_i32_0 = arith.constant 0 : i32
    %c0_i32_1 = arith.constant 0 : i32
    return %c0_i32, %c0_i32_0 : i32, i32
  }
  func.func @transform_2(%arg0: i32) -> (i32, i32) {
    %c0_i32 = arith.constant 0 : i32
    %c0_i32_0 = arith.constant 0 : i32
    %c0_i32_1 = arith.constant 0 : i32
    return %c0_i32, %c0_i32_0 : i32, i32
  }
  func.func @transform_3(%arg0: i32) -> (i32, i32) {
    %c0_i32 = arith.constant 0 : i32
    %c0_i32_0 = arith.constant 0 : i32
    %c0_i32_1 = arith.constant 0 : i32
    return %c0_i32, %c0_i32_0 : i32, i32
  }
  func.func @transform_4(%arg0: i32) -> (i32, i32) {
    %c0_i32 = arith.constant 0 : i32
    %c0_i32_0 = arith.constant 0 : i32
    %c0_i32_1 = arith.constant 0 : i32
    return %c0_i32, %c0_i32_0 : i32, i32
  }
  func.func @transform_5(%arg0: i32) -> (i32, i32) {
    %c0_i32 = arith.constant 0 : i32
    %c0_i32_0 = arith.constant 0 : i32
    %c0_i32_1 = arith.constant 0 : i32
    return %c0_i32, %c0_i32_0 : i32, i32
  }
  func.func @transform_6(%arg0: i32) -> (i32, i32) {
    %c0_i32 = arith.constant 0 : i32
    %c0_i32_0 = arith.constant 0 : i32
    %c0_i32_1 = arith.constant 0 : i32
    return %c0_i32, %c0_i32_0 : i32, i32
  }
  func.func @transform_7(%arg0: i32) -> (i32, i32, i32) {
    %c0_i32 = arith.constant 0 : i32
    %c0_i32_0 = arith.constant 0 : i32
    %c0_i32_1 = arith.constant 0 : i32
    return %arg0, %c0_i32, %c0_i32_0 : i32, i32, i32
  }
}

</mosaic_0001>

<bundles_post_ra>
// kernel: dca_encoder_layer_forward.11
= control target key start
LH: loop header
LB: loop body
LE: loop exit
PB: predicated region body
PF: predicated region fallthrough
CT: control target
= control target key end

     0   :  { %s790_s24 = smov 0   ;;  %s878_s0 = inlined_call_operand.vmem [shape: f32[2,16,32], index: 0, kind: input, shape index: {}]   ;;  %s879_s1 = inlined_call_operand.vmem [shape: f32[32,64], index: 1, kind: input, shape index: {}]   ;;  %s880_s2 = inlined_call_operand.vmem [shape: f32[1,64], index: 2, kind: input, shape index: {}]   ;;  %s881_s3 = inlined_call_operand.vmem [shape: f32[64,32], index: 3, kind: input, shape index: {}]   ;;  %s882_s4 = inlined_call_operand.vmem [shape: f32[1,32], index: 4, kind: input, shape index: {}]   ;;  %s883_s5 = inlined_call_operand.vmem [shape: f32[1,32], index: 5, kind: input, shape index: {}]   ;;  %s884_s6 = inlined_call_operand.vmem [shape: f32[1,32], index: 6, kind: input, shape index: {}]   ;;  %s885_s7 = inlined_call_operand.vmem [shape: f32[2,16,32], index: 7, kind: output, shape index: {}]  }
   0x1 LB: > { %s629_s25 = sadd.s32 4294967295, %s747_s24   ;;  %p633_p0 = scmp.ge.s32.totalorder %s747_s24, 1  ;;  %s747_s24 = sphi %s790_s24, %s17_s24  }
   0x2   : > { %p237_p1 = scmp.lt.s32.totalorder %s747_s24, 3 }
   0x4   : > { %p238_p2 = pnand %p633_p0, %p237_p1 }
   0x5   : > { %v281_v0 = vld [vmem:[%s879_s1] sm:$0xff] (!%p238_p2)  ;;  %v282_v1 = vld [vmem:[%s879_s1 + $0x8] sm:$0xff] (!%p238_p2)  ;;  %v283_v2 = vld [vmem:[%s879_s1 + $0x10] sm:$0xff] (!%p238_p2)  ;;  %p269_p3 = scmp.lt.s32.totalorder (!%p238_p2), %s629_s25, 1  ;;  %vm292_vm0 = vcmask (!%p238_p2), 261120   ;;  %vm443_vm3 = vcmask (!%p238_p2), 523264  }
   0x6   : > { %241 = sbr.rel (%p238_p2) target bundleno = 816 (0x330), region = 48  ;;  %v696_v3 = vpack.c.bf16 (!%p238_p2), %v282_v1, %v281_v0  ;;  %v284_v4 = vld [vmem:[%s879_s1 + $0x18] sm:$0xff] (!%p238_p2)  ;;  %v428_v8 = vld [vmem:[%s881_s3] sm:$0xff] (!%p238_p2)  ;;  %v429_v9 = vld [vmem:[%s881_s3 + $0x8] sm:$0xff] (!%p238_p2)  ;;  %v749_v0 = vmov (!%p238_p2), -1.0  }
   0x7   : > { %v700_v5 = vpack.c.bf16 (!%p238_p2), %v284_v4, %v283_v2  ;;  %v704_v10 = vpack.c.bf16 (!%p238_p2), %v429_v9, %v428_v8  ;;  %v430_v11 = vld [vmem:[%s881_s3 + $0x10] sm:$0xff] (!%p238_p2)  ;;  %v431_v12 = vld [vmem:[%s881_s3 + $0x18] sm:$0xff] (!%p238_p2)  ;;  %v432_v14 = vld [vmem:[%s881_s3 + $0x20] sm:$0xff] (!%p238_p2) }
   0x8   : > { %697 = vmatprep.subr.bf16.mxu0 (!%p238_p2), %v696_v3  ;;  %v708_v13 = vpack.c.bf16 (!%p238_p2), %v431_v12, %v430_v11  ;;  %v433_v15 = vld [vmem:[%s881_s3 + $0x28] sm:$0xff] (!%p238_p2)  ;;  %v434_v17 = vld [vmem:[%s881_s3 + $0x30] sm:$0xff] (!%p238_p2)  ;;  %v435_v18 = vld [vmem:[%s881_s3 + $0x38] sm:$0xff] (!%p238_p2) }
   0x9   : > { %699 = vmatpush3.bf16.msra.mxu0 (!%p238_p2), %v696_v3  ;;  %705 = vmatprep.subr.bf16.mxu1 (!%p238_p2), %v704_v10  ;;  %v712_v16 = vpack.c.bf16 (!%p238_p2), %v433_v15, %v432_v14  ;;  %v716_v19 = vpack.c.bf16 (!%p238_p2), %v435_v18, %v434_v17  ;;  %v638_v20 = vld [vmem:[%s880_s2] ss:$0 sm:$0xff] (!%p238_p2) }
   0xa   : > { %701 = vmatprep.subr.bf16.mxu0 (!%p238_p2), %v700_v5  ;;  %707 = vmatpush3.bf16.msra.mxu1 (!%p238_p2), %v704_v10  ;;  %v641_v14 = vld [vmem:[%s882_s4] ss:$0 sm:$0xff] (!%p238_p2) }
   0xb   : > { %709 = vmatprep.subr.bf16.mxu1 (!%p238_p2), %v708_v13 }
   0xd   : > { %s887_s25 = smov (!%p269_p3, %s629_s25), 1  ;;  %703 = vmatpush3.bf16.msra.mxu0 %v700_v5 }
   0xe   : > { %s648_s11 = sshll.u32 %s887_s25, 4  ;;  %711 = vmatpush3.bf16.msra.mxu1 %v708_v13 }
   0xf   : > { %s273_s14 = scalar_lea.vmem %s878_s0, %s648_s11  ;;  %713 = vmatprep.subr.bf16.mxu1 %v712_v16  ;;  %s278_s21 = scalar_lea.vmem %s885_s7, %s648_s11 }
  0x10   : > { %v818_v6 = vld [vmem:[%s273_s14] sm:$0xff]  ;;  %v822_v7 = vld [vmem:[%s273_s14 + $0x8] sm:$0xff] }
  0x11   : > { %674 = vmatprep.mubr.msk.f32.mxu0 %vm292_vm0, %v818_v6 }
  0x12   : > { %675 = vmatmul.mubr.msk.f32.vlgmr.msra.gmra.mrb[0].mxu0 %vm292_vm0, %v822_v7  ;;  %715 = vmatpush3.bf16.msra.mxu1 %v712_v16 }
  0x13   : > { %717 = vmatprep.subr.bf16.mxu1 %v716_v19 }
  0x16   : > { %719 = vmatpush3.bf16.msra.mxu1 %v716_v19 }
  0xe5   : > { %v676_v21 = vpop.f32.mrb[0].mxu0 }
  0xe6   : > { %v371_v22 = vadd.f32 %v676_v21, %v638_v20  ;;  %v365_v23 = vpop.f32.mrb[1].mxu0 }
  0xe7   : > { %v366_v24 = vadd.f32 %v638_v20, %v365_v23 }
  0xe8   : > { %v377_v25 = vmul.f32 0.70710677, %v371_v22  ;;  %v375_v11 = vmul.f32 0.5, %v371_v22 }
  0xe9   : > { %v376_v26 = vmul.f32 0.70710677, %v366_v24  ;;  %v374_v9 = vmul.f32 0.5, %v366_v24 }
  0xea   : > { %v383_v27 = vand.u32 2147483647, %v377_v25  ;;  %vm379_vm1 = vcmp.ge.f32.partialorder %v377_v25, 0.0 }
  0xeb   : > { %v382_v28 = vand.u32 2147483647, %v376_v26  ;;  %vm378_vm2 = vcmp.ge.f32.partialorder %v376_v26, 0.0  ;;  %v381_v1 = vsel %vm379_vm1, 1.0, %v749_v0 }
  0xec   : > { %v385_v29 = vmul.f32 0.3275911, %v383_v27  ;;  %v411_v33 = vsub.f32 0.0, %v383_v27  ;;  %v380_v4 = vsel %vm378_vm2, 1.0, %v749_v0 }
  0xed   : > { %v384_v30 = vmul.f32 0.3275911, %v382_v28  ;;  %v410_v34 = vsub.f32 0.0, %v382_v28 }
  0xee   : > { %v387_v31 = vadd.f32 1.0, %v385_v29  ;;  %v413_v36 = vmul.f32 %v411_v33, %v383_v27 }
  0xef   : > { %v386_v32 = vadd.f32 1.0, %v384_v30  ;;  %v412_v39 = vmul.f32 %v410_v34, %v382_v28 }
  0xf0   : > { %729 = vrcp.f32 %v387_v31  ;;  %v416_v42 = vmul.f32 1.442695, %v413_v36 }
  0xf1   : > { %731 = vrcp.f32 %v386_v32  ;;  %v414_v45 = vmul.f32 1.442695, %v412_v39 }
  0xf2   : > { %733 = vpow2.f32 %v416_v42 }
  0xf3   : > { %735 = vpow2.f32 %v414_v45 }
  0xfa   : > { %v730_v35 = vpop.eup %729 }
  0xfb   : > { %v732_v37 = vpop.eup %731  ;;  %v393_v38 = vmul.f32 1.0614054, %v730_v35 }
  0xfc   : > { %v392_v40 = vmul.f32 1.0614054, %v732_v37  ;;  %v734_v58 = vpop.eup %733 }
  0xfd   : > { %v395_v41 = vadd.f32 -1.4531521, %v393_v38  ;;  %v736_v60 = vpop.eup %735  ;;  %v644_v38 = vld [vmem:[%s883_s5] ss:$0 sm:$0xff] }
  0xfe   : > { %v394_v43 = vadd.f32 -1.4531521, %v392_v40  ;;  %v645_v40 = vld [vmem:[%s884_s6] ss:$0 sm:$0xff] }
  0xff   : > { %v397_v44 = vmul.f32 %v730_v35, %v395_v41 }
 0x100   : > { %v396_v46 = vmul.f32 %v732_v37, %v394_v43 }
 0x101   : > { %v399_v47 = vadd.f32 1.4214138, %v397_v44 }
 0x102   : > { %v398_v48 = vadd.f32 1.4214138, %v396_v46 }
 0x103   : > { %v401_v49 = vmul.f32 %v730_v35, %v399_v47 }
 0x104   : > { %v400_v50 = vmul.f32 %v732_v37, %v398_v48 }
 0x105   : > { %v403_v51 = vadd.f32 -0.28449672, %v401_v49 }
 0x106   : > { %v402_v52 = vadd.f32 -0.28449672, %v400_v50 }
 0x107   : > { %v405_v53 = vmul.f32 %v730_v35, %v403_v51 }
 0x108   : > { %v404_v54 = vmul.f32 %v732_v37, %v402_v52 }
 0x109   : > { %v407_v55 = vadd.f32 0.2548296, %v405_v53 }
 0x10a   : > { %v406_v56 = vadd.f32 0.2548296, %v404_v54 }
 0x10b   : > { %v409_v57 = vmul.f32 %v730_v35, %v407_v55 }
 0x10c   : > { %v408_v59 = vmul.f32 %v732_v37, %v406_v56 }
 0x10d   : > { %v419_v61 = vmul.f32 %v734_v58, %v409_v57 }
 0x10e   : > { %v418_v62 = vmul.f32 %v736_v60, %v408_v59 }
 0x10f   : > { %v421_v63 = vsub.f32 1.0, %v419_v61 }
 0x110   : > { %v420_v2 = vsub.f32 1.0, %v418_v62 }
 0x111   : > { %v423_v3 = vmul.f32 %v421_v63, %v381_v1 }
 0x112   : > { %v422_v5 = vmul.f32 %v420_v2, %v380_v4 }
 0x113   : > { %v425_v8 = vadd.f32 1.0, %v423_v3 }
 0x114   : > { %v424_v10 = vadd.f32 1.0, %v422_v5 }
 0x115   : > { %v427_v13 = vmul.f32 %v425_v8, %v375_v11 }
 0x116   : > { %v426_v12 = vmul.f32 %v424_v10, %v374_v9 }
 0x118   : > { %693 = vmatprep.mubr.msk.f32.mxu1 %vm443_vm3, %v426_v12 }
 0x119   : > { %694 = vmatmul.mubr.msk.f32.vlgmr.msra.gmra.mrb[0].mxu1 %vm443_vm3, %v427_v13 }
 0x1ec   : > { %v695_v15 = vpop.f32.mrb[0].mxu1 }
 0x1ed   : > { %v516_v16 = vpop.f32.mrb[1].mxu1  ;;  %v522_v17 = vadd.f32 %v695_v15, %v641_v14 }
 0x1ee   : > { %v517_v18 = vadd.f32 %v641_v14, %v516_v16 }
 0x1ef   : > { %v526_v21 = vadd.f32 %v522_v17, %v822_v7 }
 0x1f0   : > { %v525_v19 = vadd.f32 %v517_v18, %v818_v6 }
 0x1f1   : > { %v530_v22 = vsel %vm292_vm0, %v526_v21, 0.0 }
 0x1f2   : > { %v527_v20 = vsel %vm292_vm0, %v525_v19, 0.0 }
 0x1f3   : > { %528 = vadd.xlane.f32.xlu0 %v527_v20 }
 0x1f7   : > { %531 = vadd.xlane.f32.xlu0 %v530_v22 }
 0x280   : > { %v529_v23 = vpop.xlane.xlu0 %528 }
 0x281   : > { %v534_v24 = vmul.f32 0.03125, %v529_v23 }
 0x283   : > { %v536_v25 = vsub.f32 %v525_v19, %v534_v24 }
 0x284   : > { %v532_v26 = vpop.xlane.xlu0 %531 }
 0x285   : > { %v535_v27 = vmul.f32 0.03125, %v532_v26  ;;  %v538_v28 = vmul.f32 %v536_v25, %v536_v25 }
 0x287   : > { %v537_v29 = vsub.f32 %v526_v21, %v535_v27  ;;  %v540_v30 = vsel %vm292_vm0, %v538_v28, 0.0 }
 0x288   : > { %541 = vadd.xlane.f32.xlu1 %v540_v30 }
 0x289   : > { %v539_v31 = vmul.f32 %v537_v29, %v537_v29 }
 0x28b   : > { %v543_v6 = vsel %vm292_vm0, %v539_v31, 0.0 }
 0x28c   : > { %544 = vadd.xlane.f32.xlu1 %v543_v6 }
 0x315   : > { %v542_v7 = vpop.xlane.xlu1 %541 }
 0x316   : > { %v546_v32 = vmul.f32 0.03125, %v542_v7 }
 0x318   : > { %v548_v33 = vadd.f32 1e-05, %v546_v32 }
 0x319   : > { %v545_v34 = vpop.xlane.xlu1 %544 }
 0x31a   : > { %737 = vrsqrt.f32 %v548_v33  ;;  %v547_v35 = vmul.f32 0.03125, %v545_v34 }
 0x31c   : > { %v549_v36 = vadd.f32 1e-05, %v547_v35 }
 0x31e   : > { %739 = vrsqrt.f32 %v549_v36 }
 0x324   : > { %v738_v37 = vpop.eup %737 }
 0x325   : > { %v552_v39 = vmul.f32 %v738_v37, %v536_v25 }
 0x327   : > { %v561_v41 = vmul.f32 %v644_v38, %v552_v39 }
 0x328   : > { %v740_v42 = vpop.eup %739 }
 0x329   : > { %v570_v43 = vadd.f32 %v645_v40, %v561_v41  ;;  %v553_v44 = vmul.f32 %v740_v42, %v537_v29 }
 0x32b   : > { %572 = vst.msk [vmem:[%s278_s21] sm:$0xff] %vm292_vm0, %v570_v43  ;;  %v562_v45 = vmul.f32 %v644_v38, %v553_v44 }
 0x32d   : > { %v571_v46 = vadd.f32 %v645_v40, %v562_v45 }
 0x32f   : > { %573 = vst.msk [vmem:[%s278_s21 + $0x8] sm:$0xff] %vm292_vm0, %v571_v46 }
 0x330 PF: > { %s17_s24 = sadd.s32 1, %s747_s24  }
 0x331   : > { %p14_p4 = scmp.ge.s32.totalorder %s17_s24, 4  }
 0x333   :  { %16 = sbr.rel (!%p14_p4) target bundleno = 1 (0x1), region = 78 }

// kernel: dca_encoder_layer_forward.9
= control target key start
LH: loop header
LB: loop body
LE: loop exit
PB: predicated region body
PF: predicated region fallthrough
CT: control target
= control target key end

     0   :  { %s1961_s29 = smov 0   ;;  %s2150_s0 = inlined_call_operand.vmem [shape: f32[2,8,32], index: 0, kind: input, shape index: {}, may-alias: {0,2}]   ;;  %s2151_s1 = inlined_call_operand.vmem [shape: f32[2,8,32], index: 1, kind: input, shape index: {}, may-alias: {1,3}]   ;;  %s2152_s2 = inlined_call_operand.vmem [shape: f32[2,8,32], index: 2, kind: input, shape index: {}, may-alias: {0,2}]   ;;  %s2153_s3 = inlined_call_operand.vmem [shape: f32[2,8,32], index: 3, kind: input, shape index: {}, may-alias: {1,3}]   ;;  %s2154_s4 = inlined_call_operand.vmem [shape: f32[32,32], index: 4, kind: input, shape index: {}]   ;;  %s2155_s5 = inlined_call_operand.vmem [shape: f32[32,32], index: 5, kind: input, shape index: {}]   ;;  %s2156_s6 = inlined_call_operand.vmem [shape: f32[32,32], index: 6, kind: input, shape index: {}]   ;;  %s2157_s7 = inlined_call_operand.vmem [shape: f32[32,32], index: 7, kind: input, shape index: {}]   ;;  %s2158_s8 = inlined_call_operand.vmem [shape: f32[1,32], index: 8, kind: input, shape index: {}]   ;;  %s2159_s9 = inlined_call_operand.vmem [shape: f32[1,32], index: 9, kind: input, shape index: {}]   ;;  %s2160_s10 = inlined_call_operand.vmem [shape: f32[1,32], index: 10, kind: input, shape index: {}]   ;;  %s2161_s11 = inlined_call_operand.vmem [shape: f32[1,32], index: 11, kind: input, shape index: {}]   ;;  %s2162_s12 = inlined_call_operand.vmem [shape: f32[1,32], index: 12, kind: input, shape index: {}]   ;;  %s2163_s13 = inlined_call_operand.vmem [shape: f32[1,32], index: 13, kind: input, shape index: {}]   ;;  %s2164_s14 = inlined_call_operand.vmem [shape: f32[2,8,32], index: 14, kind: output, shape index: {}]  }
   0x1 LB: > { %s1656_s30 = sadd.s32 4294967295, %s1875_s29   ;;  %p1660_p0 = scmp.ge.s32.totalorder %s1875_s29, 1  ;;  %s1875_s29 = sphi %s1961_s29, %s24_s29  }
   0x2   : > { %p438_p1 = scmp.lt.s32.totalorder %s1875_s29, 3 }
   0x4   : > { %p439_p2 = pnand %p1660_p0, %p438_p1 }
   0x5   : > { %v605_v0 = vld [vmem:[%s2155_s5] sm:$0xff] (!%p439_p2)  ;;  %v606_v1 = vld [vmem:[%s2155_s5 + $0x8] sm:$0xff] (!%p439_p2)  ;;  %v1877_v3 = vmov (!%p439_p2), 0.0|0.0   ;;  %v607_v6 = vld [vmem:[%s2155_s5 + $0x10] sm:$0xff] (!%p439_p2)  ;;  %p494_p3 = scmp.lt.s32.totalorder (!%p439_p2), %s1656_s30, 1  ;;  %vm1878_vm0 = vmmov (!%p439_p2), 0  }
   0x6   : > { %442 = sbr.rel (%p439_p2) target bundleno = 2220 (0x8ac), region = 76  ;;  %v520_v2 = vld [vmem:[%s2154_s4] sm:$0xff] (!%p439_p2)  ;;  %1816 = vmatprep.subr.bf16.mxu1 (!%p439_p2), %v1877_v3  ;;  %v1817_v4 = vpack.c.bf16 (!%p439_p2), %v606_v1, %v605_v0  ;;  %1810 = vmatprep.subr.bf16.mxu0 (!%p439_p2), %v1877_v3  ;;  %v521_v5 = vld [vmem:[%s2154_s4 + $0x8] sm:$0xff] (!%p439_p2)  ;;  %v608_v7 = vld [vmem:[%s2155_s5 + $0x18] sm:$0xff] (!%p439_p2)  ;;  %v1879_v9 = vmov (!%p439_p2), 0.0   ;;  %vm531_vm1 = vcmask (!%p439_p2), 261120  }
   0x7   : > { %v1811_v8 = vpack.c.bf16 (!%p439_p2), %v521_v5, %v520_v2  ;;  %1745 = vmatprep.mubr.msk.f32.mxu1 (!%p439_p2), %vm1878_vm0, %v1879_v9  ;;  %v522_v10 = vld [vmem:[%s2154_s4 + $0x10] sm:$0xff] (!%p439_p2)  ;;  %v523_v11 = vld [vmem:[%s2154_s4 + $0x18] sm:$0xff] (!%p439_p2)  ;;  %1734 = vmatprep.mubr.msk.f32.mxu0 (!%p439_p2), %vm1878_vm0, %v1879_v9  ;;  %v1820_v12 = vpack.c.bf16 (!%p439_p2), %v608_v7, %v607_v6  ;;  %v1668_v20 = vld [vmem:[%s2159_s9] ss:$0 sm:$0xff] (!%p439_p2)  ;;  %vm773_vm2 = vcmask (!%p439_p2), 64512   ;;  %s1881_s21 = smov (!%p439_p2), 112  }
   0x8   : > { %1818 = vmatpush3.bf16.msra.mxu1 (!%p439_p2), %v1817_v4  ;;  %v1814_v13 = vpack.c.bf16 (!%p439_p2), %v523_v11, %v522_v10  ;;  %v1666_v22 = vld [vmem:[%s2158_s8] ss:$0 sm:$0xff] (!%p439_p2)  ;;  %s1882_s22 = smov (!%p439_p2), 104   ;;  %v690_v29 = vld [vmem:[%s2156_s6 + $0x8] sm:$0xff] (!%p439_p2)  ;;  %v691_v30 = vld [vmem:[%s2156_s6 + $0x10] sm:$0xff] (!%p439_p2)  ;;  %s1883_s26 = smov (!%p439_p2), 8  }
   0x9   : > { %1812 = vmatpush3.bf16.msra.mxu0 (!%p439_p2), %v1811_v8  ;;  %1819 = vmatprep.subr.bf16.mxu1 (!%p439_p2), %v1877_v3  ;;  %v689_v28 = vld [vmem:[%s2156_s6] sm:$0xff] (!%p439_p2)  ;;  %v692_v32 = vld [vmem:[%s2156_s6 + $0x18] sm:$0xff] (!%p439_p2)  ;;  %s1884_s27 = smov (!%p439_p2), 16   ;;  %vm1447_vm3 = vcmask (!%p439_p2), 130048   ;;  %vm1449_vm4 = vcmask (!%p439_p2), 195584  }
   0xa   : > { %1813 = vmatprep.subr.bf16.mxu0 (!%p439_p2), %v1877_v3  ;;  %v1823_v31 = vpack.c.bf16 (!%p439_p2), %v690_v29, %v689_v28  ;;  %v1826_v33 = vpack.c.bf16 (!%p439_p2), %v692_v32, %v691_v30  ;;  %v1670_v43 = vld [vmem:[%s2160_s10] ss:$0 sm:$0xff] (!%p439_p2) }
   0xc   : > { %1821 = vmatpush3.bf16.msra.mxu1 (!%p439_p2), %v1820_v12 }
   0xd   : > { %s2166_s30 = smov (!%p494_p3, %s1656_s30), 1  ;;  %1815 = vmatpush3.bf16.msra.mxu0 %v1814_v13  ;;  %1759 = vmatprep.subr.mxu1 %v1879_v9 }
   0xe   : > { %s2001_s17 = sshll.u32 %s2166_s30, 3  ;;  %1822 = vmatprep.subr.bf16.mxu0 %v1877_v3 }
   0xf   : > { %s505_s20 = scalar_lea.vmem %s2152_s2, %s2001_s17  ;;  %s509_s23 = scalar_lea.vmem %s2153_s3, %s2001_s17 }
  0x10   : > { %v517_v14 = vld [vmem:[%s505_s20] sm:$0xff]  ;;  %s497_s30 = scalar_lea.vmem %s2150_s0, %s2001_s17  ;;  %s501_s28 = scalar_lea.vmem %s2151_s1, %s2001_s17 }
  0x11   : > { %v518_v15 = vld [vmem:[%s509_s23] sm:$0xff]  ;;  %s1880_s20 = smov 120   ;;  %s513_s24 = scalar_lea.vmem %s2164_s14, %s2001_s17 }
  0x12   : > { %v519_v16 = vadd.f32 %v518_v15, %v517_v14  ;;  %v2019_v17 = vld [vmem:[%s497_s30] sm:$0xff] }
  0x13   : > { %v515_v18 = vld [vmem:[%s501_s28] sm:$0xff]  ;;  %s1885_s28 = smov 24  }
  0x14   : > { %1746 = vmatmul.mubr.msk.f32.vlgmr.msra.gmra.mrb[0].mxu1 %vm531_vm1, %v519_v16  ;;  %v516_v19 = vadd.f32 %v515_v18, %v2019_v17 }
  0x15   : > { %1761 = vmatprep.mubr.msk.f32.mxu1 %vm1878_vm0, %v1879_v9 }
  0x16   : > { %1735 = vmatmul.mubr.msk.f32.vlgmr.msra.gmra.mrb[0].mxu0 %vm531_vm1, %v516_v19 }
  0x17   : > { %1756 = vmatprep.mubr.msk.f32.mxu0 %vm1878_vm0, %v1879_v9  ;;  %1824 = vmatpush3.bf16.msra.mxu0 %v1823_v31 }
  0x18   : > { %1825 = vmatprep.subr.bf16.mxu0 %v1877_v3 }
  0x1b   : > { %1827 = vmatpush3.bf16.msra.mxu0 %v1826_v33 }
  0x1c   : > { %1779 = vmatprep.subr.mxu0 %v1879_v9 }
  0x1e   : > { %1757 = vmatmul.mubr.msk.f32.vlgmr.msra.gmra.mrb[2].mxu0 %vm531_vm1, %v517_v14 }
  0x1f   : > { %1781 = vmatprep.mubr.msk.f32.mxu0 %vm1878_vm0, %v1879_v9 }
  0xe7   : > { %v685_v21 = vpop.f32.mrb[0].mxu1 }
  0xe8   : > { %v686_v23 = vadd.f32 %v1668_v20, %v685_v21  ;;  %v1747_v24 = vpop.f32.mrb[1].mxu1 }
  0xe9   : > { %v601_v25 = vpop.f32.mrb[0].mxu0 }
  0xea   : > { %937 = vrot.lane.b32.xlu1 %v686_v23, %s1880_s20  ;;  %v602_v26 = vadd.f32 %v1666_v22, %v601_v25  ;;  %1760 = vmatpush3.xpose.msk.msra.mxu1 %vm773_vm2, %v686_v23  ;;  %v1736_v27 = vpop.f32.mrb[1].mxu0 }
  0xeb   : > { %1764 = vmatprep.subr.mxu1 %v1879_v9 }
  0xed   : > { %1762 = vmatmul.mubr.msk.f32.vlgmr.msra.gmra.mrb[2].mxu1 %vm773_vm2, %v602_v26 }
  0xee   : > { %935 = vrot.lane.b32.xlu1 %v602_v26, %s1880_s20  ;;  %1766 = vmatprep.mubr.msk.f32.mxu1 %vm1878_vm0, %v1879_v9 }
  0xf1   : > { %v769_v44 = vpop.f32.mrb[2].mxu0 }
  0xf2   : > { %1102 = vrot.lane.b32.xlu1 %v602_v26, %s1881_s21  ;;  %v2068_v45 = vadd.f32 %v1670_v43, %v769_v44  ;;  %v1758_v46 = vpop.f32.mrb[3].mxu0 }
  0xf4   : > { %1765 = vmatpush3.msra.mxu1 %v2068_v45 }
  0xf5   : > { %1769 = vmatprep.subr.mxu1 %v1879_v9 }
  0xf6   : > { %1270 = vrot.lane.b32.xlu1 %v686_v23, %s1882_s22 }
  0xfa   : > { %1268 = vrot.lane.b32.xlu1 %v602_v26, %s1882_s22 }
 0x15c   : > { %v938_v47 = vpop.permute.xlu1 %937 }
 0x160   : > { %v936_v48 = vpop.permute.xlu1 %935 }
 0x164   : > { %v1103_v49 = vpop.permute.xlu1 %1102 }
 0x168   : > { %v1271_v52 = vpop.permute.xlu1 %1270 }
 0x16c   : > { %v1269_v54 = vpop.permute.xlu1 %1268 }
 0x1c0   : > { %v846_v34 = vpop.f32.mrb[2].mxu1 }
 0x1c1   : > { %v850_v35 = vmul.f32 0.35355338, %v846_v34  ;;  %v1763_v36 = vpop.f32.mrb[3].mxu1 }
 0x1c2   : > { %v1451_v36 = vld [vmem:[%s2157_s7] sm:$0xff] }
 0x1c3   : > { %v851_v37 = vsel %vm773_vm2, %v850_v35, -inf }
 0x1c4   : > { %852 = vmax.xlane.f32.xlu0 %v851_v37  ;;  %v1452_v37 = vld [vmem:[%s2157_s7 + $0x8] sm:$0xff] }
 0x251   : > { %v853_v38 = vpop.xlane.xlu0 %852 }
 0x252   : > { %v854_v39 = vsub.f32 %v850_v35, %v853_v38  ;;  %v1829_v38 = vpack.c.bf16 %v1452_v37, %v1451_v36 }
 0x254   : > { %v855_v40 = vmul.f32 1.442695, %v854_v39  ;;  %v1453_v39 = vld [vmem:[%s2157_s7 + $0x10] sm:$0xff] }
 0x256   : > { %1851 = vpow2.f32 %v855_v40 }
 0x260   : > { %v1852_v41 = vpop.eup %1851 }
 0x261   : > { %v857_v42 = vsel %vm773_vm2, %v1852_v41, 0.0 }
 0x262   : > { %858 = vadd.xlane.f32.xlu0 %v857_v42 }
 0x278   : > { %1104 = vrot.lane.b32.xlu0 %v686_v23, %s1881_s21 }
 0x2ef   : > { %v859_v50 = vpop.xlane.xlu0 %858 }
 0x2f0   : > { %1853 = vrcp.f32 %v859_v50 }
 0x2f3   : > { %v1105_v51 = vpop.permute.xlu0 %1104 }
 0x2f4   : > { %1780 = vmatpush3.xpose.msk.msra.mxu0 %vm773_vm2, %v1105_v51 }
 0x2f5   : > { %1789 = vmatprep.subr.mxu0 %v1879_v9 }
 0x2f7   : > { %1782 = vmatmul.mubr.msk.f32.vlgmr.msra.gmra.mrb[4].mxu0 %vm773_vm2, %v1103_v49 }
 0x2f8   : > { %1790 = vmatpush3.xpose.msk.msra.mxu0 %vm773_vm2, %v1271_v52  ;;  %1791 = vmatprep.mubr.msk.f32.mxu0 %vm1878_vm0, %v1879_v9  ;;  %v1684_v52 = vld [vmem:[%s2161_s11] ss:$0 sm:$0xff] }
 0x2f9   : > { %1828 = vmatprep.subr.bf16.mxu0 %v1877_v3 }
 0x2fa   : > { %v1854_v53 = vpop.eup %1853 }
 0x2fb   : > { %v861_v55 = vmul.f32 %v1854_v53, %v1852_v41  ;;  %1792 = vmatmul.mubr.msk.f32.vlgmr.msra.gmra.mrb[6].mxu0 %vm773_vm2, %v1269_v54 }
 0x2fc   : > { %1807 = vmatprep.mubr.msk.f32.mxu0 %vm1878_vm0, %v1879_v9  ;;  %1830 = vmatpush3.bf16.msra.mxu0 %v1829_v38 }
 0x2fd   : > { %1767 = vmatmul.mubr.msk.f32.vlgmr.msra.gmra.mrb[4].mxu1 %vm773_vm2, %v861_v55  ;;  %1831 = vmatprep.subr.bf16.mxu0 %v1877_v3 }
 0x2fe   : > { %1770 = vmatpush3.xpose.msk.msra.mxu1 %vm773_vm2, %v938_v47  ;;  %1771 = vmatprep.mubr.msk.f32.mxu1 %vm1878_vm0, %v1879_v9 }
 0x2ff   : > { %1774 = vmatprep.subr.mxu1 %v1879_v9 }
 0x301   : > { %1772 = vmatmul.mubr.msk.f32.vlgmr.msra.gmra.mrb[6].mxu1 %vm773_vm2, %v936_v48 }
 0x302   : > { %1776 = vmatprep.mubr.msk.f32.mxu1 %vm1878_vm0, %v1879_v9 }
 0x3ca   : > { %v1176_v56 = vpop.f32.mrb[4].mxu0 }
 0x3cb   : > { %v1180_v57 = vmul.f32 0.35355338, %v1176_v56  ;;  %v1783_v58 = vpop.f32.mrb[5].mxu0 }
 0x3cd   : > { %v1181_v59 = vsel %vm773_vm2, %v1180_v57, -inf }
 0x3ce   : > { %1182 = vmax.xlane.f32.xlu0 %v1181_v59  ;;  %v1342_v60 = vpop.f32.mrb[6].mxu0 }
 0x3cf   : > { %v1793_v61 = vpop.f32.mrb[7].mxu0  ;;  %v1346_v4 = vmul.f32 0.35355338, %v1342_v60 }
 0x3d0   : > { %v2092_v62 = vpop.f32.mrb[4].mxu1 }
 0x3d1   : > { %v1768_v63 = vpop.f32.mrb[5].mxu1  ;;  %v1347_v6 = vsel %vm773_vm2, %v1346_v4, -inf }
 0x3d4   : > { %v1009_v0 = vpop.f32.mrb[6].mxu1 }
 0x3d5   : > { %v1013_v1 = vmul.f32 0.35355338, %v1009_v0  ;;  %v1773_v2 = vpop.f32.mrb[7].mxu1 }
 0x3d7   : > { %v1014_v5 = vsel %vm773_vm2, %v1013_v1, -inf }
 0x3d8   : > { %1015 = vmax.xlane.f32.xlu1 %v1014_v5  ;;  %v1687_v5 = vld [vmem:[%s2163_s13] ss:$0 sm:$0xff] }
 0x3dc   : > { %1348 = vmax.xlane.f32.xlu1 %v1347_v6 }
 0x45b   : > { %v1183_v7 = vpop.xlane.xlu0 %1182 }
 0x45c   : > { %v1184_v8 = vsub.f32 %v1180_v57, %v1183_v7 }
 0x45e   : > { %v1185_v10 = vmul.f32 1.442695, %v1184_v8 }
 0x460   : > { %1855 = vpow2.f32 %v1185_v10 }
 0x465   : > { %v1016_v11 = vpop.xlane.xlu1 %1015 }
 0x466   : > { %v1017_v20 = vsub.f32 %v1013_v1, %v1016_v11 }
 0x468   : > { %v1018_v21 = vmul.f32 1.442695, %v1017_v20 }
 0x469   : > { %v1349_v12 = vpop.xlane.xlu1 %1348 }
 0x46a   : > { %v1856_v13 = vpop.eup %1855  ;;  %v1350_v14 = vsub.f32 %v1346_v4, %v1349_v12 }
 0x46b   : > { %v1187_v15 = vsel %vm773_vm2, %v1856_v13, 0.0 }
 0x46c   : > { %v1351_v16 = vmul.f32 1.442695, %v1350_v14  ;;  %1188 = vadd.xlane.f32.xlu0 %v1187_v15 }
 0x46e   : > { %1857 = vpow2.f32 %v1351_v16 }
 0x46f   : > { %1859 = vpow2.f32 %v1018_v21 }
 0x478   : > { %v1858_v18 = vpop.eup %1857 }
 0x479   : > { %v1353_v19 = vsel %vm773_vm2, %v1858_v18, 0.0  ;;  %v1860_v22 = vpop.eup %1859 }
 0x47a   : > { %1354 = vadd.xlane.f32.xlu1 %v1353_v19  ;;  %v1020_v23 = vsel %vm773_vm2, %v1860_v22, 0.0 }
 0x482   : > { %1026 = vrot.lane.b32.xlu0 %v2068_v45, %s1880_s20 }
 0x48b   : > { %1192 = vrot.lane.b32.xlu1 %v2068_v45, %s1881_s21 }
 0x4af   : > { %1021 = vadd.xlane.f32.xlu1 %v1020_v23 }
 0x4c0   : > { %1358 = vrot.lane.b32.xlu1 %v2068_v45, %s1882_s22 }
 0x4f9   : > { %v1189_v24 = vpop.xlane.xlu0 %1188 }
 0x4fd   : > { %v1027_v25 = vpop.permute.xlu0 %1026 }
 0x4fe   : > { %1775 = vmatpush3.msra.mxu1 %v1027_v25 }
 0x4ff   : > { %1784 = vmatprep.subr.mxu1 %v1879_v9 }
 0x507   : > { %v1355_v26 = vpop.xlane.xlu1 %1354 }
 0x50b   : > { %v1193_v27 = vpop.permute.xlu1 %1192 }
 0x53c   : > { %v1022_v28 = vpop.xlane.xlu1 %1021 }
 0x53d   : > { %1861 = vrcp.f32 %v1022_v28 }
 0x53e   : > { %1863 = vrcp.f32 %v1189_v24 }
 0x53f   : > { %1865 = vrcp.f32 %v1355_v26 }
 0x540   : > { %v1359_v34 = vpop.permute.xlu1 %1358 }
 0x547   : > { %v1862_v29 = vpop.eup %1861 }
 0x548   : > { %v1024_v30 = vmul.f32 %v1862_v29, %v1860_v22  ;;  %v1864_v31 = vpop.eup %1863 }
 0x549   : > { %v1191_v32 = vmul.f32 %v1864_v31, %v1856_v13  ;;  %v1866_v33 = vpop.eup %1865 }
 0x54a   : > { %1777 = vmatmul.mubr.msk.f32.vlgmr.msra.gmra.mrb[8].mxu1 %vm773_vm2, %v1024_v30  ;;  %v1357_v35 = vmul.f32 %v1866_v33, %v1858_v18 }
 0x54b   : > { %1785 = vmatpush3.msra.mxu1 %v1193_v27  ;;  %1786 = vmatprep.mubr.msk.f32.mxu1 %vm1878_vm0, %v1879_v9 }
 0x54c   : > { %1794 = vmatprep.subr.mxu1 %v1879_v9 }
 0x54e   : > { %1787 = vmatmul.mubr.msk.f32.vlgmr.msra.gmra.mrb[10].mxu1 %vm773_vm2, %v1191_v32 }
 0x54f   : > { %1795 = vmatpush3.msra.mxu1 %v1359_v34  ;;  %1796 = vmatprep.mubr.msk.f32.mxu1 %vm1878_vm0, %v1879_v9  ;;  %v1454_v9 = vld [vmem:[%s2157_s7 + $0x18] sm:$0xff] }
 0x550   : > { %v1832_v40 = vpack.c.bf16 %v1454_v9, %v1453_v39 }
 0x552   : > { %1797 = vmatmul.mubr.msk.f32.vlgmr.msra.gmra.mrb[12].mxu1 %vm773_vm2, %v1357_v35  ;;  %1833 = vmatpush3.bf16.msra.mxu0 %v1832_v40 }
 0x61d   : > { %v1098_v41 = vpop.f32.mrb[8].mxu1 }
 0x61e   : > { %1435 = vrot.lane.b32.xlu0 %v1098_v41, %s1883_s26  ;;  %v1778_v42 = vpop.f32.mrb[9].mxu1 }
 0x621   : > { %v1264_v43 = vpop.f32.mrb[10].mxu1 }
 0x622   : > { %1439 = vrot.lane.b32.xlu1 %v1264_v43, %s1884_s27  ;;  %v1788_v44 = vpop.f32.mrb[11].mxu1 }
 0x625   : > { %v1430_v45 = vpop.f32.mrb[12].mxu1 }
 0x626   : > { %1443 = vrot.lane.b32.xlu0 %v1430_v45, %s1885_s28  ;;  %v1798_v3 = vpop.f32.mrb[13].mxu1 }
 0x690   : > { %v1436_v46 = vpop.permute.xlu0 %1435 }
 0x691   : > { %v1446_v48 = vsel %vm773_vm2, %v2092_v62, %v1436_v46 }
 0x694   : > { %v1440_v47 = vpop.permute.xlu1 %1439 }
 0x695   : > { %v1448_v49 = vsel %vm1447_vm3, %v1446_v48, %v1440_v47 }
 0x698   : > { %v1444_v50 = vpop.permute.xlu0 %1443 }
 0x699   : > { %v1450_v51 = vsel %vm1449_vm4, %v1448_v49, %v1444_v50 }
 0x69a   : > { %1808 = vmatmul.mubr.msk.f32.vlgmr.msra.gmra.mrb[8].mxu0 %vm531_vm1, %v1450_v51 }
 0x76d   : > { %v1531_v53 = vpop.f32.mrb[8].mxu0 }
 0x76e   : > { %v1532_v54 = vadd.f32 %v1684_v52, %v1531_v53  ;;  %v1809_v55 = vpop.f32.mrb[9].mxu0 }
 0x770   : > { %v1535_v56 = vadd.f32 %v1532_v54, %v2019_v17  ;;  %v1686_v17 = vld [vmem:[%s2162_s12] ss:$0 sm:$0xff] }
 0x772   : > { %v1536_v57 = vsel %vm531_vm1, %v1535_v56, 0.0 }
 0x773   : > { %1537 = vadd.xlane.f32.xlu1 %v1536_v57 }
 0x800   : > { %v1538_v58 = vpop.xlane.xlu1 %1537 }
 0x801   : > { %v1540_v59 = vmul.f32 0.03125, %v1538_v58 }
 0x803   : > { %v1541_v60 = vsub.f32 %v1535_v56, %v1540_v59 }
 0x805   : > { %v1542_v61 = vmul.f32 %v1541_v60, %v1541_v60 }
 0x807   : > { %v1543_v62 = vsel %vm531_vm1, %v1542_v61, 0.0 }
 0x808   : > { %1544 = vadd.xlane.f32.xlu0 %v1543_v62 }
 0x895   : > { %v1545_v63 = vpop.xlane.xlu0 %1544 }
 0x896   : > { %v1546_v0 = vmul.f32 0.03125, %v1545_v63 }
 0x898   : > { %v1547_v1 = vadd.f32 1e-05, %v1546_v0 }
 0x89a   : > { %1867 = vrsqrt.f32 %v1547_v1 }
 0x8a4   : > { %v1868_v2 = vpop.eup %1867 }
 0x8a5   : > { %v1549_v4 = vmul.f32 %v1868_v2, %v1541_v60 }
 0x8a7   : > { %v1557_v6 = vmul.f32 %v1686_v17, %v1549_v4 }
 0x8a9   : > { %v1565_v7 = vadd.f32 %v1687_v5, %v1557_v6 }
 0x8ab   : > { %1566 = vst.msk [vmem:[%s513_s24] sm:$0xff] %vm531_vm1, %v1565_v7 }
 0x8ac PF: > { %s24_s29 = sadd.s32 1, %s1875_s29  }
 0x8ad   : > { %p21_p4 = scmp.ge.s32.totalorder %s24_s29, 4  }
 0x8af   :  { %23 = sbr.rel (!%p21_p4) target bundleno = 1 (0x1), region = 115 }

// kernel: dca_encoder_layer_forward.8
= control target key start
LH: loop header
LB: loop body
LE: loop exit
PB: predicated region body
PF: predicated region fallthrough
CT: control target
= control target key end

     0   :  { %s2339_s29 = smov 0   ;;  %s2564_s0 = inlined_call_operand.vmem [shape: f32[2,16,32], index: 0, kind: input, shape index: {}, may-alias: {0,2}]   ;;  %s2565_s1 = inlined_call_operand.vmem [shape: f32[2,16,32], index: 1, kind: input, shape index: {}, may-alias: {1,3}]   ;;  %s2566_s2 = inlined_call_operand.vmem [shape: f32[2,16,32], index: 2, kind: input, shape index: {}, may-alias: {0,2}]   ;;  %s2567_s3 = inlined_call_operand.vmem [shape: f32[2,16,32], index: 3, kind: input, shape index: {}, may-alias: {1,3}]   ;;  %s2568_s4 = inlined_call_operand.vmem [shape: f32[32,32], index: 4, kind: input, shape index: {}]   ;;  %s2569_s5 = inlined_call_operand.vmem [shape: f32[32,32], index: 5, kind: input, shape index: {}]   ;;  %s2570_s6 = inlined_call_operand.vmem [shape: f32[32,32], index: 6, kind: input, shape index: {}]   ;;  %s2571_s7 = inlined_call_operand.vmem [shape: f32[32,32], index: 7, kind: input, shape index: {}]   ;;  %s2572_s8 = inlined_call_operand.vmem [shape: f32[1,32], index: 8, kind: input, shape index: {}]   ;;  %s2573_s9 = inlined_call_operand.vmem [shape: f32[1,32], index: 9, kind: input, shape index: {}]   ;;  %s2574_s10 = inlined_call_operand.vmem [shape: f32[1,32], index: 10, kind: input, shape index: {}]   ;;  %s2575_s11 = inlined_call_operand.vmem [shape: f32[1,32], index: 11, kind: input, shape index: {}]   ;;  %s2576_s12 = inlined_call_operand.vmem [shape: f32[1,32], index: 12, kind: input, shape index: {}]   ;;  %s2577_s13 = inlined_call_operand.vmem [shape: f32[1,32], index: 13, kind: input, shape index: {}]   ;;  %s2578_s14 = inlined_call_operand.vmem [shape: f32[2,16,32], index: 14, kind: output, shape index: {}]  }
   0x1 LB: > { %s1882_s30 = sadd.s32 4294967295, %s2256_s29   ;;  %p1886_p0 = scmp.ge.s32.totalorder %s2256_s29, 1  ;;  %s2256_s29 = sphi %s2339_s29, %s24_s29  }
   0x2   : > { %p442_p1 = scmp.lt.s32.totalorder %s2256_s29, 3 }
   0x4   : > { %p443_p2 = pnand %p1886_p0, %p442_p1 }
   0x5   : > { %v633_v0 = vld [vmem:[%s2569_s5] sm:$0xff] (!%p443_p2)  ;;  %v634_v1 = vld [vmem:[%s2569_s5 + $0x8] sm:$0xff] (!%p443_p2)  ;;  %v635_v2 = vld [vmem:[%s2569_s5 + $0x10] sm:$0xff] (!%p443_p2)  ;;  %p503_p3 = scmp.lt.s32.totalorder (!%p443_p2), %s1882_s30, 1  ;;  %vm551_vm0 = vcmask (!%p443_p2), 261120   ;;  %vm817_vm1 = vcmask (!%p443_p2), 64512  }
   0x6   : > { %446 = sbr.rel (%p443_p2) target bundleno = 3273 (0xcc9), region = 76  ;;  %v2106_v3 = vpack.c.bf16 (!%p443_p2), %v634_v1, %v633_v0  ;;  %v636_v4 = vld [vmem:[%s2569_s5 + $0x18] sm:$0xff] (!%p443_p2)  ;;  %v540_v5 = vld [vmem:[%s2568_s4] sm:$0xff] (!%p443_p2)  ;;  %v541_v6 = vld [vmem:[%s2568_s4 + $0x8] sm:$0xff] (!%p443_p2)  ;;  %s2258_s27 = smov (!%p443_p2), 120   ;;  %vm907_vm3 = vcmask (!%p443_p2), 130048  }
   0x7   : > { %v2110_v7 = vpack.c.bf16 (!%p443_p2), %v636_v4, %v635_v2  ;;  %v2098_v8 = vpack.c.bf16 (!%p443_p2), %v541_v6, %v540_v5  ;;  %v542_v9 = vld [vmem:[%s2568_s4 + $0x10] sm:$0xff] (!%p443_p2)  ;;  %v543_v10 = vld [vmem:[%s2568_s4 + $0x18] sm:$0xff] (!%p443_p2)  ;;  %v725_v24 = vld [vmem:[%s2570_s6] sm:$0xff] (!%p443_p2)  ;;  %s2259_s16 = smov (!%p443_p2), 112   ;;  %s2260_s18 = smov (!%p443_p2), 104   ;;  %vm1647_vm4 = vcmask (!%p443_p2), 195584  }
   0x8   : > { %2107 = vmatprep.subr.bf16.mxu1 (!%p443_p2), %v2106_v3  ;;  %v2102_v11 = vpack.c.bf16 (!%p443_p2), %v543_v10, %v542_v9  ;;  %v726_v25 = vld [vmem:[%s2570_s6 + $0x8] sm:$0xff] (!%p443_p2)  ;;  %v727_v26 = vld [vmem:[%s2570_s6 + $0x10] sm:$0xff] (!%p443_p2)  ;;  %v728_v28 = vld [vmem:[%s2570_s6 + $0x18] sm:$0xff] (!%p443_p2)  ;;  %s2261_s19 = smov (!%p443_p2), 8  }
   0x9   : > { %2109 = vmatpush3.bf16.msra.mxu1 (!%p443_p2), %v2106_v3  ;;  %2099 = vmatprep.subr.bf16.mxu0 (!%p443_p2), %v2098_v8  ;;  %v2114_v27 = vpack.c.bf16 (!%p443_p2), %v726_v25, %v725_v24  ;;  %v2118_v29 = vpack.c.bf16 (!%p443_p2), %v728_v28, %v727_v26  ;;  %v1900_v30 = vld [vmem:[%s2573_s9] ss:$0 sm:$0xff] (!%p443_p2)  ;;  %vm2421_vm2 = vmpackc.low (!%p443_p2), %vm817_vm1, %vm817_vm1 }
   0xa   : > { %2111 = vmatprep.subr.bf16.mxu1 (!%p443_p2), %v2110_v7  ;;  %2101 = vmatpush3.bf16.msra.mxu0 (!%p443_p2), %v2098_v8  ;;  %v1897_v32 = vld [vmem:[%s2572_s8] ss:$0 sm:$0xff] (!%p443_p2) }
   0xb   : > { %2103 = vmatprep.subr.bf16.mxu0 (!%p443_p2), %v2102_v11  ;;  %v1903_v50 = vld [vmem:[%s2574_s10] ss:$0 sm:$0xff] (!%p443_p2) }
   0xd   : > { %s2582_s30 = smov (!%p503_p3, %s1882_s30), 1  ;;  %2113 = vmatpush3.bf16.msra.mxu1 %v2110_v7 }
   0xe   : > { %s2371_s17 = sshll.u32 %s2582_s30, 4  ;;  %2105 = vmatpush3.bf16.msra.mxu0 %v2102_v11 }
   0xf   : > { %s517_s20 = scalar_lea.vmem %s2566_s2, %s2371_s17  ;;  %s522_s23 = scalar_lea.vmem %s2567_s3, %s2371_s17  ;;  %2115 = vmatprep.subr.bf16.mxu0 %v2114_v27 }
  0x10   : > { %v534_v12 = vld [vmem:[%s517_s20] sm:$0xff]  ;;  %v535_v13 = vld [vmem:[%s517_s20 + $0x8] sm:$0xff]  ;;  %s507_s25 = scalar_lea.vmem %s2564_s0, %s2371_s17  ;;  %s512_s28 = scalar_lea.vmem %s2565_s1, %s2371_s17 }
  0x11   : > { %v536_v14 = vld [vmem:[%s522_s23] sm:$0xff]  ;;  %v537_v15 = vld [vmem:[%s522_s23 + $0x8] sm:$0xff]  ;;  %s2262_s20 = smov 16   ;;  %s527_s30 = scalar_lea.vmem %s2578_s14, %s2371_s17 }
  0x12   : > { %v538_v16 = vadd.f32 %v536_v14, %v534_v12  ;;  %v2389_v17 = vld [vmem:[%s507_s25] sm:$0xff]  ;;  %v2391_v18 = vld [vmem:[%s507_s25 + $0x8] sm:$0xff]  ;;  %v539_v19 = vadd.f32 %v537_v15, %v535_v13 }
  0x13   : > { %v530_v20 = vld [vmem:[%s512_s28] sm:$0xff]  ;;  %v531_v21 = vld [vmem:[%s512_s28 + $0x8] sm:$0xff]  ;;  %s2263_s28 = smov 24  }
  0x14   : > { %2017 = vmatprep.mubr.msk.f32.mxu1 %vm551_vm0, %v538_v16  ;;  %v532_v22 = vadd.f32 %v530_v20, %v2389_v17  ;;  %v533_v23 = vadd.f32 %v531_v21, %v2391_v18 }
  0x15   : > { %2018 = vmatmul.mubr.msk.f32.vlgmr.msra.gmra.mrb[0].mxu1 %vm551_vm0, %v539_v19 }
  0x16   : > { %2006 = vmatprep.mubr.msk.f32.mxu0 %vm551_vm0, %v532_v22 }
  0x17   : > { %2007 = vmatmul.mubr.msk.f32.vlgmr.msra.gmra.mrb[0].mxu0 %vm551_vm0, %v533_v23 }
  0x18   : > { %2028 = vmatprep.mubr.msk.f32.mxu0 %vm551_vm0, %v534_v12  ;;  %2117 = vmatpush3.bf16.msra.mxu0 %v2114_v27 }
  0x19   : > { %2119 = vmatprep.subr.bf16.mxu0 %v2118_v29 }
  0x1c   : > { %2121 = vmatpush3.bf16.msra.mxu0 %v2118_v29 }
  0x1f   : > { %2029 = vmatmul.mubr.msk.f32.vlgmr.msra.gmra.mrb[2].mxu0 %vm551_vm0, %v535_v13 }
  0xe8   : > { %v2019_v31 = vpop.f32.mrb[0].mxu1 }
  0xe9   : > { %v722_v33 = vadd.f32 %v2019_v31, %v1900_v30  ;;  %v716_v34 = vpop.f32.mrb[1].mxu1 }
  0xea   : > { %v2008_v35 = vpop.f32.mrb[0].mxu0  ;;  %v717_v36 = vadd.f32 %v1900_v30, %v716_v34 }
  0xeb   : > { %v624_v37 = vpop.f32.mrb[1].mxu0  ;;  %v2437_v42 = vadd.f32 %v2008_v35, %v1897_v32 }
  0xec   : > { %v2425_v39 = vadd.f32 %v1897_v32, %v624_v37  ;;  %v2122_v40 = vpack.c.bf16 %v722_v33, %v717_v36  ;;  %v2427_v41 = vpack.i.bf16 %v722_v33, %v717_v36 }
  0xee   : > { %1011 = vrot.lane.b32.xlu1 %v2425_v39, %s2258_s27  ;;  %2035 = vmatprep.mubr.msk.f32.mxu1 %vm817_vm1, %v2425_v39 }
  0xef   : > { %2124 = vmatprep.subr.msk.bf16.mxu1 %vm2421_vm2, %v2122_v40 }
  0xf0   : > { %2127 = vmatpush3.bf16.xpose.msk.msra.mxu1 %vm2421_vm2, %v2122_v40 }
  0xf2   : > { %v2030_v49 = vpop.f32.mrb[2].mxu0 }
  0xf3   : > { %v808_v51 = vpop.f32.mrb[3].mxu0  ;;  %v814_v52 = vadd.f32 %v2030_v49, %v1903_v50 }
  0xf4   : > { %v809_v53 = vadd.f32 %v1903_v50, %v808_v51 }
  0xf6   : > { %v2128_v54 = vpack.c.bf16 %v814_v52, %v809_v53  ;;  %v2466_v23 = vpack.i.bf16 %v814_v52, %v809_v53 }
  0xf7   : > { %2036 = vmatmul.mubr.msk.f32.vlgmr.msra.gmra.mrb[2].mxu1 %vm817_vm1, %v2437_v42 }
  0xf8   : > { %2129 = vmatprep.subr.bf16.mxu1 %v2128_v54 }
  0xf9   : > { %2131 = vmatpush3.bf16.msra.mxu1 %v2128_v54 }
 0x160   : > { %v1012_v5 = vpop.permute.xlu1 %1011 }
 0x1ca   : > { %v2037_v43 = vpop.f32.mrb[2].mxu1 }
 0x1cb   : > { %v896_v44 = vpop.f32.mrb[3].mxu1  ;;  %v906_v46 = vmul.f32 0.35355338, %v2037_v43 }
 0x1cc   : > { %v905_v45 = vmul.f32 0.35355338, %v896_v44 }
 0x1cd   : > { %v911_v48 = vsel %vm907_vm3, %v906_v46, -inf }
 0x1ce   : > { %v908_v47 = vsel %vm907_vm3, %v905_v45, -inf }
 0x1cf   : > { %909 = vmax.xlane.f32.xlu0 %v908_v47 }
 0x1d3   : > { %912 = vmax.xlane.f32.xlu0 %v911_v48 }
 0x1e9   : > { %2185 = vrot.lane.b32.xlu0 %v2427_v41, %s2258_s27 }
 0x25c   : > { %v910_v55 = vpop.xlane.xlu0 %909 }
 0x25d   : > { %v914_v56 = vsub.f32 %v905_v45, %v910_v55 }
 0x25f   : > { %v916_v59 = vmul.f32 1.442695, %v914_v56 }
 0x260   : > { %v913_v57 = vpop.xlane.xlu0 %912 }
 0x261   : > { %v915_v58 = vsub.f32 %v906_v46, %v913_v57 }
 0x263   : > { %v918_v60 = vmul.f32 1.442695, %v915_v58 }
 0x264   : > { %v2186_v61 = vpop.permute.xlu0 %2185 }
 0x265   : > { %2214 = vpow2.f32 %v918_v60  ;;  %v2188_v62 = vunpack.i.h.bf16 %v2186_v61  ;;  %v2187_v63 = vunpack.i.l.bf16 %v2186_v61 }
 0x266   : > { %2216 = vpow2.f32 %v916_v59 }
 0x267   : > { %v2132_v0 = vpack.c.bf16 %v2188_v62, %v2187_v63 }
 0x269   : > { %2134 = vmatprep.subr.msk.bf16.mxu1 %vm2421_vm2, %v2132_v0 }
 0x26f   : > { %v2215_v1 = vpop.eup %2214 }
 0x270   : > { %v923_v2 = vsel %vm907_vm3, %v2215_v1, 0.0  ;;  %v2217_v3 = vpop.eup %2216 }
 0x271   : > { %924 = vadd.xlane.f32.xlu1 %v923_v2  ;;  %v920_v4 = vsel %vm907_vm3, %v2217_v3, 0.0 }
 0x275   : > { %921 = vadd.xlane.f32.xlu1 %v920_v4 }
 0x286   : > { %1013 = vrot.lane.b32.xlu1 %v2437_v42, %s2258_s27 }
 0x2fe   : > { %v925_v6 = vpop.xlane.xlu1 %924 }
 0x2ff   : > { %2218 = vrcp.f32 %v925_v6 }
 0x302   : > { %v922_v7 = vpop.xlane.xlu1 %921 }
 0x303   : > { %2220 = vrcp.f32 %v922_v7 }
 0x306   : > { %v1014_v12 = vpop.permute.xlu1 %1013 }
 0x309   : > { %v2219_v8 = vpop.eup %2218 }
 0x30a   : > { %v929_v11 = vmul.f32 %v2219_v8, %v2215_v1 }
 0x30d   : > { %v2221_v9 = vpop.eup %2220 }
 0x30e   : > { %v927_v10 = vmul.f32 %v2221_v9, %v2217_v3 }
 0x310   : > { %2042 = vmatprep.mubr.msk.f32.mxu1 %vm907_vm3, %v927_v10 }
 0x311   : > { %2043 = vmatmul.mubr.msk.f32.vlgmr.msra.gmra.mrb[4].mxu1 %vm907_vm3, %v929_v11 }
 0x312   : > { %2137 = vmatpush3.bf16.xpose.msk.msra.mxu1 %vm2421_vm2, %v2132_v0  ;;  %2049 = vmatprep.mubr.msk.f32.mxu1 %vm817_vm1, %v1012_v5 }
 0x319   : > { %2050 = vmatmul.mubr.msk.f32.vlgmr.msra.gmra.mrb[6].mxu1 %vm817_vm1, %v1014_v12 }
 0x3e4   : > { %v2460_v13 = vpop.f32.mrb[4].mxu1 }
 0x3e5   : > { %v2462_v14 = vpop.f32.mrb[5].mxu1 }
 0x3ec   : > { %v2051_v15 = vpop.f32.mrb[6].mxu1 }
 0x3ed   : > { %v1103_v16 = vmul.f32 0.35355338, %v2051_v15  ;;  %v1093_v19 = vpop.f32.mrb[7].mxu1 }
 0x3ee   : > { %v1102_v20 = vmul.f32 0.35355338, %v1093_v19 }
 0x3ef   : > { %v1107_v21 = vsel %vm907_vm3, %v1103_v16, -inf }
 0x3f0   : > { %1108 = vmax.xlane.f32.xlu0 %v1107_v21  ;;  %v1104_v22 = vsel %vm907_vm3, %v1102_v20, -inf }
 0x3f1   : > { %1105 = vmax.xlane.f32.xlu1 %v1104_v22 }
 0x402   : > { %2190 = vrot.lane.b32.xlu1 %v2466_v23, %s2258_s27 }
 0x406   : > { %1215 = vrot.lane.b32.xlu1 %v2425_v39, %s2259_s16 }
 0x40a   : > { %1217 = vrot.lane.b32.xlu1 %v2437_v42, %s2259_s16 }
 0x47d   : > { %v1109_v24 = vpop.xlane.xlu0 %1108 }
 0x47e   : > { %v1111_v25 = vsub.f32 %v1103_v16, %v1109_v24  ;;  %v1106_v26 = vpop.xlane.xlu1 %1105 }
 0x47f   : > { %v1110_v27 = vsub.f32 %v1102_v20, %v1106_v26 }
 0x480   : > { %v1114_v28 = vmul.f32 1.442695, %v1111_v25 }
 0x481   : > { %v1112_v29 = vmul.f32 1.442695, %v1110_v27 }
 0x482   : > { %2222 = vpow2.f32 %v1114_v28  ;;  %v2191_v30 = vpop.permute.xlu1 %2190 }
 0x483   : > { %v2193_v31 = vunpack.i.h.bf16 %v2191_v30  ;;  %v2192_v32 = vunpack.i.l.bf16 %v2191_v30  ;;  %2224 = vpow2.f32 %v1112_v29 }
 0x485   : > { %v2138_v33 = vpack.c.bf16 %v2193_v31, %v2192_v32 }
 0x486   : > { %v1216_v52 = vpop.permute.xlu1 %1215 }
 0x487   : > { %2139 = vmatprep.subr.bf16.mxu0 %v2138_v33 }
 0x488   : > { %2141 = vmatpush3.bf16.msra.mxu0 %v2138_v33 }
 0x48a   : > { %v1218_v53 = vpop.permute.xlu1 %1217 }
 0x48c   : > { %v2223_v34 = vpop.eup %2222 }
 0x48d   : > { %v1119_v35 = vsel %vm907_vm3, %v2223_v34, 0.0  ;;  %v2225_v36 = vpop.eup %2224 }
 0x48e   : > { %1120 = vadd.xlane.f32.xlu0 %v1119_v35  ;;  %v1116_v37 = vsel %vm907_vm3, %v2225_v36, 0.0 }
 0x492   : > { %1117 = vadd.xlane.f32.xlu0 %v1116_v37 }
 0x4a8   : > { %2195 = vrot.lane.b32.xlu0 %v2427_v41, %s2259_s16 }
 0x51b   : > { %v1121_v40 = vpop.xlane.xlu0 %1120 }
 0x51c   : > { %2226 = vrcp.f32 %v1121_v40 }
 0x51f   : > { %v1118_v43 = vpop.xlane.xlu0 %1117 }
 0x520   : > { %2228 = vrcp.f32 %v1118_v43 }
 0x523   : > { %v2196_v44 = vpop.permute.xlu0 %2195 }
 0x524   : > { %v2198_v45 = vunpack.i.h.bf16 %v2196_v44  ;;  %v2197_v46 = vunpack.i.l.bf16 %v2196_v44 }
 0x526   : > { %v2142_v47 = vpack.c.bf16 %v2198_v45, %v2197_v46  ;;  %v2227_v48 = vpop.eup %2226 }
 0x527   : > { %v1125_v51 = vmul.f32 %v2227_v48, %v2223_v34 }
 0x528   : > { %2144 = vmatprep.subr.msk.bf16.mxu0 %vm2421_vm2, %v2142_v47 }
 0x52a   : > { %v2229_v49 = vpop.eup %2228 }
 0x52b   : > { %v1123_v50 = vmul.f32 %v2229_v49, %v2225_v36 }
 0x52d   : > { %2056 = vmatprep.mubr.msk.f32.mxu0 %vm907_vm3, %v1123_v50 }
 0x52e   : > { %2057 = vmatmul.mubr.msk.f32.vlgmr.msra.gmra.mrb[4].mxu0 %vm907_vm3, %v1125_v51 }
 0x52f   : > { %2147 = vmatpush3.bf16.xpose.msk.msra.mxu0 %vm2421_vm2, %v2142_v47  ;;  %2063 = vmatprep.mubr.msk.f32.mxu0 %vm817_vm1, %v1216_v52 }
 0x536   : > { %2064 = vmatmul.mubr.msk.f32.vlgmr.msra.gmra.mrb[6].mxu0 %vm817_vm1, %v1218_v53 }
 0x601   : > { %v2486_v54 = vpop.f32.mrb[4].mxu0 }
 0x602   : > { %v2488_v55 = vpop.f32.mrb[5].mxu0 }
 0x609   : > { %v2065_v56 = vpop.f32.mrb[6].mxu0 }
 0x60a   : > { %v1307_v57 = vmul.f32 0.35355338, %v2065_v56  ;;  %v1297_v58 = vpop.f32.mrb[7].mxu0 }
 0x60b   : > { %v1306_v59 = vmul.f32 0.35355338, %v1297_v58  ;;  %v1652_v58 = vld [vmem:[%s2571_s7 + $0x10] sm:$0xff] }
 0x60c   : > { %v1311_v60 = vsel %vm907_vm3, %v1307_v57, -inf }
 0x60d   : > { %1312 = vmax.xlane.f32.xlu0 %v1311_v60  ;;  %v1308_v61 = vsel %vm907_vm3, %v1306_v59, -inf  ;;  %v1653_v60 = vld [vmem:[%s2571_s7 + $0x18] sm:$0xff] }
 0x60e   : > { %1309 = vmax.xlane.f32.xlu1 %v1308_v61  ;;  %v2166_v61 = vpack.c.bf16 %v1653_v60, %v1652_v58 }
 0x61f   : > { %2200 = vrot.lane.b32.xlu1 %v2466_v23, %s2259_s16 }
 0x623   : > { %1417 = vrot.lane.b32.xlu1 %v2425_v39, %s2260_s18 }
 0x627   : > { %1419 = vrot.lane.b32.xlu1 %v2437_v42, %s2260_s18 }
 0x69a   : > { %v1313_v62 = vpop.xlane.xlu0 %1312 }
 0x69b   : > { %v1315_v63 = vsub.f32 %v1307_v57, %v1313_v62  ;;  %v1310_v0 = vpop.xlane.xlu1 %1309  ;;  %v1650_v57 = vld [vmem:[%s2571_s7] sm:$0xff] }
 0x69c   : > { %v1314_v1 = vsub.f32 %v1306_v59, %v1310_v0 }
 0x69d   : > { %v1318_v2 = vmul.f32 1.442695, %v1315_v63 }
 0x69e   : > { %v1316_v3 = vmul.f32 1.442695, %v1314_v1 }
 0x69f   : > { %2230 = vpow2.f32 %v1318_v2  ;;  %v2201_v4 = vpop.permute.xlu1 %2200 }
 0x6a0   : > { %v2203_v5 = vunpack.i.h.bf16 %v2201_v4  ;;  %v2202_v6 = vunpack.i.l.bf16 %v2201_v4  ;;  %2232 = vpow2.f32 %v1316_v3 }
 0x6a2   : > { %v2148_v7 = vpack.c.bf16 %v2203_v5, %v2202_v6 }
 0x6a3   : > { %v1418_v25 = vpop.permute.xlu1 %1417 }
 0x6a4   : > { %2149 = vmatprep.subr.bf16.mxu1 %v2148_v7 }
 0x6a5   : > { %2151 = vmatpush3.bf16.msra.mxu1 %v2148_v7 }
 0x6a9   : > { %v2231_v8 = vpop.eup %2230 }
 0x6aa   : > { %v1323_v39 = vsel %vm907_vm3, %v2231_v8, 0.0  ;;  %v2233_v9 = vpop.eup %2232 }
 0x6ab   : > { %1324 = vadd.xlane.f32.xlu0 %v1323_v39  ;;  %v1320_v42 = vsel %vm907_vm3, %v2233_v9, 0.0 }
 0x6af   : > { %1321 = vadd.xlane.f32.xlu0 %v1320_v42 }
 0x6c5   : > { %2205 = vrot.lane.b32.xlu0 %v2427_v41, %s2260_s18  ;;  %v1420_v41 = vpop.permute.xlu1 %1419 }
 0x738   : > { %v1325_v10 = vpop.xlane.xlu0 %1324 }
 0x739   : > { %2234 = vrcp.f32 %v1325_v10 }
 0x73c   : > { %v1322_v11 = vpop.xlane.xlu0 %1321 }
 0x73d   : > { %2236 = vrcp.f32 %v1322_v11 }
 0x740   : > { %v2206_v12 = vpop.permute.xlu0 %2205 }
 0x741   : > { %v2208_v15 = vunpack.i.h.bf16 %v2206_v12  ;;  %v2207_v16 = vunpack.i.l.bf16 %v2206_v12 }
 0x743   : > { %v2152_v19 = vpack.c.bf16 %v2208_v15, %v2207_v16  ;;  %v2235_v20 = vpop.eup %2234 }
 0x744   : > { %v1329_v24 = vmul.f32 %v2235_v20, %v2231_v8 }
 0x745   : > { %2154 = vmatprep.subr.msk.bf16.mxu1 %vm2421_vm2, %v2152_v19 }
 0x747   : > { %v2237_v21 = vpop.eup %2236 }
 0x748   : > { %v1327_v22 = vmul.f32 %v2237_v21, %v2233_v9 }
 0x74a   : > { %2070 = vmatprep.mubr.msk.f32.mxu1 %vm907_vm3, %v1327_v22 }
 0x74b   : > { %2071 = vmatmul.mubr.msk.f32.vlgmr.msra.gmra.mrb[8].mxu1 %vm907_vm3, %v1329_v24 }
 0x74c   : > { %2157 = vmatpush3.bf16.xpose.msk.msra.mxu1 %vm2421_vm2, %v2152_v19  ;;  %2077 = vmatprep.mubr.msk.f32.mxu1 %vm817_vm1, %v1418_v25 }
 0x753   : > { %2078 = vmatmul.mubr.msk.f32.vlgmr.msra.gmra.mrb[10].mxu1 %vm817_vm1, %v1420_v41 }
 0x81e   : > { %v2072_v26 = vpop.f32.mrb[8].mxu1 }
 0x81f   : > { %v1408_v27 = vpop.f32.mrb[9].mxu1 }
 0x826   : > { %v2079_v28 = vpop.f32.mrb[10].mxu1 }
 0x827   : > { %v1509_v29 = vmul.f32 0.35355338, %v2079_v28  ;;  %v1499_v30 = vpop.f32.mrb[11].mxu1 }
 0x828   : > { %v1508_v31 = vmul.f32 0.35355338, %v1499_v30 }
 0x829   : > { %v1513_v32 = vsel %vm907_vm3, %v1509_v29, -inf }
 0x82a   : > { %1514 = vmax.xlane.f32.xlu0 %v1513_v32  ;;  %v1510_v33 = vsel %vm907_vm3, %v1508_v31, -inf }
 0x82b   : > { %1511 = vmax.xlane.f32.xlu1 %v1510_v33 }
 0x83c   : > { %2210 = vrot.lane.b32.xlu1 %v2466_v23, %s2260_s18 }
 0x840   : > { %1623 = vrot.lane.b32.xlu1 %v2486_v54, %s2261_s19 }
 0x844   : > { %1629 = vrot.lane.b32.xlu1 %v1408_v27, %s2262_s20 }
 0x848   : > { %1631 = vrot.lane.b32.xlu1 %v2072_v26, %s2262_s20 }
 0x8b7   : > { %v1515_v38 = vpop.xlane.xlu0 %1514 }
 0x8b8   : > { %v1517_v34 = vsub.f32 %v1509_v29, %v1515_v38  ;;  %v1512_v35 = vpop.xlane.xlu1 %1511 }
 0x8b9   : > { %v1516_v36 = vsub.f32 %v1508_v31, %v1512_v35  ;;  %v1933_v35 = vld [vmem:[%s2576_s12] ss:$0 sm:$0xff] }
 0x8ba   : > { %v1520_v37 = vmul.f32 1.442695, %v1517_v34 }
 0x8bb   : > { %v1518_v40 = vmul.f32 1.442695, %v1516_v36 }
 0x8bc   : > { %v2211_v43 = vpop.permute.xlu1 %2210 }
 0x8bd   : > { %2238 = vpow2.f32 %v1518_v40  ;;  %v2213_v44 = vunpack.i.h.bf16 %v2211_v43  ;;  %v2212_v45 = vunpack.i.l.bf16 %v2211_v43 }
 0x8be   : > { %2240 = vpow2.f32 %v1520_v37  ;;  %v1934_v37 = vld [vmem:[%s2577_s13] ss:$0 sm:$0xff] }
 0x8bf   : > { %v2158_v46 = vpack.c.bf16 %v2213_v44, %v2212_v45 }
 0x8c0   : > { %v1624_v0 = vpop.permute.xlu1 %1623 }
 0x8c1   : > { %2159 = vmatprep.subr.bf16.mxu0 %v2158_v46  ;;  %v1644_v6 = vsel %vm817_vm1, %v2460_v13, %v1624_v0 }
 0x8c2   : > { %2161 = vmatpush3.bf16.msra.mxu0 %v2158_v46 }
 0x8c4   : > { %v1630_v1 = vpop.permute.xlu1 %1629 }
 0x8c7   : > { %v2239_v23 = vpop.eup %2238 }
 0x8c8   : > { %v1522_v47 = vsel %vm907_vm3, %v2239_v23, 0.0  ;;  %v2241_v48 = vpop.eup %2240  ;;  %v1632_v3 = vpop.permute.xlu1 %1631 }
 0x8c9   : > { %1523 = vadd.xlane.f32.xlu0 %v1522_v47  ;;  %v1525_v49 = vsel %vm907_vm3, %v2241_v48, 0.0  ;;  %v1646_v39 = vsel %vm907_vm3, %v1644_v6, %v1632_v3 }
 0x8cd   : > { %1526 = vadd.xlane.f32.xlu0 %v1525_v49 }
 0x8e3   : > { %1621 = vrot.lane.b32.xlu0 %v2488_v55, %s2261_s19  ;;  %v1651_v55 = vld [vmem:[%s2571_s7 + $0x8] sm:$0xff] }
 0x8e4   : > { %v2162_v59 = vpack.c.bf16 %v1651_v55, %v1650_v57 }
 0x8e6   : > { %2163 = vmatprep.subr.bf16.mxu0 %v2162_v59 }
 0x956   : > { %v1524_v50 = vpop.xlane.xlu0 %1523 }
 0x957   : > { %2242 = vrcp.f32 %v1524_v50 }
 0x95a   : > { %v1527_v51 = vpop.xlane.xlu0 %1526 }
 0x95b   : > { %2244 = vrcp.f32 %v1527_v51 }
 0x95e   : > { %v1622_v2 = vpop.permute.xlu0 %1621 }
 0x95f   : > { %v1643_v4 = vsel %vm817_vm1, %v2462_v14, %v1622_v2  ;;  %v1930_v14 = vld [vmem:[%s2575_s11] ss:$0 sm:$0xff] }
 0x960   : > { %v1645_v7 = vsel %vm907_vm3, %v1643_v4, %v1630_v1 }
 0x961   : > { %v2243_v52 = vpop.eup %2242 }
 0x962   : > { %v1529_v53 = vmul.f32 %v2243_v52, %v2239_v23 }
 0x964   : > { %2084 = vmatprep.mubr.msk.f32.mxu0 %vm907_vm3, %v1529_v53 }
 0x965   : > { %v2245_v54 = vpop.eup %2244 }
 0x966   : > { %v1531_v56 = vmul.f32 %v2245_v54, %v2241_v48 }
 0x968   : > { %2085 = vmatmul.mubr.msk.f32.vlgmr.msra.gmra.mrb[8].mxu0 %vm907_vm3, %v1531_v56 }
 0x969   : > { %2165 = vmatpush3.bf16.msra.mxu0 %v2162_v59 }
 0x96a   : > { %2167 = vmatprep.subr.bf16.mxu0 %v2166_v61 }
 0x96d   : > { %2169 = vmatpush3.bf16.msra.mxu0 %v2166_v61 }
 0xa3b   : > { %v2086_v62 = vpop.f32.mrb[8].mxu0 }
 0xa3c   : > { %1639 = vrot.lane.b32.xlu1 %v2086_v62, %s2263_s28  ;;  %v1610_v63 = vpop.f32.mrb[9].mxu0 }
 0xa3d   : > { %1637 = vrot.lane.b32.xlu0 %v1610_v63, %s2263_s28 }
 0xaae   : > { %v1640_v5 = vpop.permute.xlu1 %1639 }
 0xaaf   : > { %v1638_v8 = vpop.permute.xlu0 %1637  ;;  %v1649_v42 = vsel %vm1647_vm4, %v1646_v39, %v1640_v5 }
 0xab0   : > { %v1648_v9 = vsel %vm1647_vm4, %v1645_v7, %v1638_v8 }
 0xab1   : > { %2095 = vmatprep.mubr.msk.f32.mxu0 %vm551_vm0, %v1648_v9 }
 0xab2   : > { %2096 = vmatmul.mubr.msk.f32.vlgmr.msra.gmra.mrb[10].mxu0 %vm551_vm0, %v1649_v42 }
 0xb85   : > { %v2097_v10 = vpop.f32.mrb[10].mxu0 }
 0xb86   : > { %v1739_v11 = vadd.f32 %v2097_v10, %v1930_v14  ;;  %v1733_v12 = vpop.f32.mrb[11].mxu0 }
 0xb87   : > { %v1734_v15 = vadd.f32 %v1930_v14, %v1733_v12 }
 0xb88   : > { %v1743_v13 = vadd.f32 %v1739_v11, %v2391_v18 }
 0xb89   : > { %v1742_v16 = vadd.f32 %v1734_v15, %v2389_v17 }
 0xb8a   : > { %v1747_v19 = vsel %vm551_vm0, %v1743_v13, 0.0 }
 0xb8b   : > { %1748 = vadd.xlane.f32.xlu1 %v1747_v19  ;;  %v1744_v20 = vsel %vm551_vm0, %v1742_v16, 0.0 }
 0xb8c   : > { %1745 = vadd.xlane.f32.xlu0 %v1744_v20 }
 0xc18   : > { %v1749_v21 = vpop.xlane.xlu1 %1748 }
 0xc19   : > { %v1752_v22 = vmul.f32 0.03125, %v1749_v21  ;;  %v1746_v24 = vpop.xlane.xlu0 %1745 }
 0xc1a   : > { %v1751_v25 = vmul.f32 0.03125, %v1746_v24 }
 0xc1b   : > { %v1754_v41 = vsub.f32 %v1743_v13, %v1752_v22 }
 0xc1c   : > { %v1753_v26 = vsub.f32 %v1742_v16, %v1751_v25 }
 0xc1d   : > { %v1756_v29 = vmul.f32 %v1754_v41, %v1754_v41 }
 0xc1e   : > { %v1755_v27 = vmul.f32 %v1753_v26, %v1753_v26 }
 0xc1f   : > { %v1760_v18 = vsel %vm551_vm0, %v1756_v29, 0.0 }
 0xc20   : > { %v1757_v28 = vsel %vm551_vm0, %v1755_v27, 0.0 }
 0xc21   : > { %1758 = vadd.xlane.f32.xlu0 %v1757_v28 }
 0xc25   : > { %1761 = vadd.xlane.f32.xlu0 %v1760_v18 }
 0xcae   : > { %v1759_v17 = vpop.xlane.xlu0 %1758 }
 0xcaf   : > { %v1763_v30 = vmul.f32 0.03125, %v1759_v17 }
 0xcb1   : > { %v1765_v31 = vadd.f32 1e-05, %v1763_v30 }
 0xcb2   : > { %v1762_v32 = vpop.xlane.xlu0 %1761 }
 0xcb3   : > { %2246 = vrsqrt.f32 %v1765_v31  ;;  %v1764_v33 = vmul.f32 0.03125, %v1762_v32 }
 0xcb5   : > { %v1766_v38 = vadd.f32 1e-05, %v1764_v33 }
 0xcb7   : > { %2248 = vrsqrt.f32 %v1766_v38 }
 0xcbd   : > { %v2247_v34 = vpop.eup %2246 }
 0xcbe   : > { %v1769_v36 = vmul.f32 %v2247_v34, %v1753_v26 }
 0xcc0   : > { %v1778_v40 = vmul.f32 %v1933_v35, %v1769_v36 }
 0xcc1   : > { %v2249_v43 = vpop.eup %2248 }
 0xcc2   : > { %v1787_v44 = vadd.f32 %v1934_v37, %v1778_v40  ;;  %v1770_v45 = vmul.f32 %v2249_v43, %v1754_v41 }
 0xcc4   : > { %1789 = vst.msk [vmem:[%s527_s30] sm:$0xff] %vm551_vm0, %v1787_v44  ;;  %v1779_v46 = vmul.f32 %v1933_v35, %v1770_v45 }
 0xcc6   : > { %v1788_v23 = vadd.f32 %v1934_v37, %v1779_v46 }
 0xcc8   : > { %1790 = vst.msk [vmem:[%s527_s30 + $0x8] sm:$0xff] %vm551_vm0, %v1788_v23 }
 0xcc9 PF: > { %s24_s29 = sadd.s32 1, %s2256_s29  }
 0xcca   : > { %p21_p4 = scmp.ge.s32.totalorder %s24_s29, 4  }
 0xccc   :  { %23 = sbr.rel (!%p21_p4) target bundleno = 1 (0x1), region = 115 }

// kernel: dca_encoder_layer_forward.10
= control target key start
LH: loop header
LB: loop body
LE: loop exit
PB: predicated region body
PF: predicated region fallthrough
CT: control target
= control target key end

     0   :  { %s2185_s29 = smov 0   ;;  %s2377_s0 = inlined_call_operand.vmem [shape: f32[2,16,32], index: 0, kind: input, shape index: {}]   ;;  %s2378_s1 = inlined_call_operand.vmem [shape: f32[2,16,32], index: 1, kind: input, shape index: {}]   ;;  %s2379_s2 = inlined_call_operand.vmem [shape: f32[2,8,32], index: 2, kind: input, shape index: {}]   ;;  %s2380_s3 = inlined_call_operand.vmem [shape: f32[2,8,32], index: 3, kind: input, shape index: {}]   ;;  %s2381_s4 = inlined_call_operand.vmem [shape: f32[32,32], index: 4, kind: input, shape index: {}]   ;;  %s2382_s5 = inlined_call_operand.vmem [shape: f32[32,32], index: 5, kind: input, shape index: {}]   ;;  %s2383_s6 = inlined_call_operand.vmem [shape: f32[32,32], index: 6, kind: input, shape index: {}]   ;;  %s2384_s7 = inlined_call_operand.vmem [shape: f32[32,32], index: 7, kind: input, shape index: {}]   ;;  %s2385_s8 = inlined_call_operand.vmem [shape: f32[1,32], index: 8, kind: input, shape index: {}]   ;;  %s2386_s9 = inlined_call_operand.vmem [shape: f32[1,32], index: 9, kind: input, shape index: {}]   ;;  %s2387_s10 = inlined_call_operand.vmem [shape: f32[1,32], index: 10, kind: input, shape index: {}]   ;;  %s2388_s11 = inlined_call_operand.vmem [shape: f32[1,32], index: 11, kind: input, shape index: {}]   ;;  %s2389_s12 = inlined_call_operand.vmem [shape: f32[1,32], index: 12, kind: input, shape index: {}]   ;;  %s2390_s13 = inlined_call_operand.vmem [shape: f32[1,32], index: 13, kind: input, shape index: {}]   ;;  %s2391_s14 = inlined_call_operand.vmem [shape: f32[2,16,32], index: 14, kind: output, shape index: {}]  }
   0x1 LB: > { %s1832_s30 = sadd.s32 4294967295, %s2099_s29   ;;  %p1836_p0 = scmp.ge.s32.totalorder %s2099_s29, 1  ;;  %s2099_s29 = sphi %s2185_s29, %s24_s29  }
   0x2   : > { %p440_p1 = scmp.lt.s32.totalorder %s2099_s29, 3 }
   0x4   : > { %p441_p2 = pnand %p1836_p0, %p440_p1 }
   0x5   : > { %v531_v0 = vld [vmem:[%s2381_s4] sm:$0xff] (!%p441_p2)  ;;  %v532_v1 = vld [vmem:[%s2381_s4 + $0x8] sm:$0xff] (!%p441_p2)  ;;  %v2101_v3 = vmov (!%p441_p2), 0.0|0.0   ;;  %v533_v6 = vld [vmem:[%s2381_s4 + $0x10] sm:$0xff] (!%p441_p2)  ;;  %vm2102_vm0 = vmmov (!%p441_p2), 0   ;;  %v2103_v8 = vmov (!%p441_p2), 0.0  }
   0x6   : > { %444 = sbr.rel (%p441_p2) target bundleno = 2247 (0x8c7), region = 76  ;;  %v624_v2 = vld [vmem:[%s2382_s5] sm:$0xff] (!%p441_p2)  ;;  %2020 = vmatprep.subr.bf16.mxu1 (!%p441_p2), %v2101_v3  ;;  %v2012_v4 = vpack.c.bf16 (!%p441_p2), %v532_v1, %v531_v0  ;;  %v625_v5 = vld [vmem:[%s2382_s5 + $0x8] sm:$0xff] (!%p441_p2)  ;;  %v534_v7 = vld [vmem:[%s2381_s4 + $0x18] sm:$0xff] (!%p441_p2)  ;;  %1947 = vmatprep.mubr.msk.f32.mxu1 (!%p441_p2), %vm2102_vm0, %v2103_v8  ;;  %p499_p3 = scmp.lt.s32.totalorder (!%p441_p2), %s1832_s30, 1  ;;  %vm542_vm1 = vcmask (!%p441_p2), 261120  }
   0x7   : > { %v2021_v9 = vpack.c.bf16 (!%p441_p2), %v625_v5, %v624_v2  ;;  %v2016_v10 = vpack.c.bf16 (!%p441_p2), %v534_v7, %v533_v6  ;;  %v626_v11 = vld [vmem:[%s2382_s5 + $0x10] sm:$0xff] (!%p441_p2)  ;;  %v627_v12 = vld [vmem:[%s2382_s5 + $0x18] sm:$0xff] (!%p441_p2)  ;;  %v708_v23 = vld [vmem:[%s2383_s6] sm:$0xff] (!%p441_p2)  ;;  %vm792_vm2 = vcmask (!%p441_p2), 64512   ;;  %s2104_s28 = smov (!%p441_p2), 120   ;;  %s2106_s20 = smov (!%p441_p2), 104  }
   0x8   : > { %2013 = vmatprep.subr.bf16.mxu0 (!%p441_p2), %v2012_v4  ;;  %v2024_v13 = vpack.c.bf16 (!%p441_p2), %v627_v12, %v626_v11  ;;  %v709_v24 = vld [vmem:[%s2383_s6 + $0x8] sm:$0xff] (!%p441_p2)  ;;  %v710_v26 = vld [vmem:[%s2383_s6 + $0x10] sm:$0xff] (!%p441_p2)  ;;  %v711_v27 = vld [vmem:[%s2383_s6 + $0x18] sm:$0xff] (!%p441_p2)  ;;  %vm1594_vm3 = vcmask (!%p441_p2), 130048   ;;  %vm1597_vm4 = vcmask (!%p441_p2), 195584  }
   0x9   : > { %2022 = vmatpush3.bf16.msra.mxu1 (!%p441_p2), %v2021_v9  ;;  %2015 = vmatpush3.bf16.msra.mxu0 (!%p441_p2), %v2012_v4  ;;  %v2027_v25 = vpack.c.bf16 (!%p441_p2), %v709_v24, %v708_v23  ;;  %v2030_v28 = vpack.c.bf16 (!%p441_p2), %v711_v27, %v710_v26  ;;  %v1848_v29 = vld [vmem:[%s2386_s9] ss:$0 sm:$0xff] (!%p441_p2) }
   0xa   : > { %2023 = vmatprep.subr.bf16.mxu1 (!%p441_p2), %v2101_v3  ;;  %2017 = vmatprep.subr.bf16.mxu0 (!%p441_p2), %v2016_v10  ;;  %v1845_v30 = vld [vmem:[%s2385_s8] ss:$0 sm:$0xff] (!%p441_p2) }
   0xb   : > { %v1850_v47 = vld [vmem:[%s2387_s10] ss:$0 sm:$0xff] (!%p441_p2) }
   0xd   : > { %s2393_s30 = smov (!%p499_p3, %s1832_s30), 1  ;;  %2025 = vmatpush3.bf16.msra.mxu1 %v2024_v13  ;;  %2019 = vmatpush3.bf16.msra.mxu0 %v2016_v10 }
   0xe   : > { %s2218_s17 = sshll.u32 %s2393_s30, 4  ;;  %s1841_s18 = sshll.u32 %s2393_s30, 3  ;;  %2026 = vmatprep.subr.bf16.mxu0 %v2101_v3 }
   0xf   : > { %s503_s21 = scalar_lea.vmem %s2377_s0, %s2218_s17  ;;  %s508_s24 = scalar_lea.vmem %s2378_s1, %s2218_s17 }
  0x10   : > { %v2228_v14 = vld [vmem:[%s503_s21] sm:$0xff]  ;;  %v2230_v15 = vld [vmem:[%s503_s21 + $0x8] sm:$0xff]  ;;  %s512_s27 = scalar_lea.vmem %s2379_s2, %s1841_s18  ;;  %s516_s15 = scalar_lea.vmem %s2380_s3, %s1841_s18 }
  0x11   : > { %v524_v16 = vld [vmem:[%s508_s24] sm:$0xff]  ;;  %v525_v17 = vld [vmem:[%s508_s24 + $0x8] sm:$0xff]  ;;  %s2107_s30 = smov 8   ;;  %s521_s25 = scalar_lea.vmem %s2391_s14, %s2218_s17 }
  0x12   : > { %v526_v18 = vadd.f32 %v524_v16, %v2228_v14  ;;  %v528_v19 = vld [vmem:[%s512_s27] sm:$0xff]  ;;  %v527_v20 = vadd.f32 %v525_v17, %v2230_v15 }
  0x13   : > { %v529_v21 = vld [vmem:[%s516_s15] sm:$0xff]  ;;  %s2105_s15 = smov 112  }
  0x14   : > { %1936 = vmatprep.mubr.msk.f32.mxu0 %vm542_vm1, %v526_v18  ;;  %v530_v22 = vadd.f32 %v529_v21, %v528_v19 }
  0x15   : > { %1937 = vmatmul.mubr.msk.f32.vlgmr.msra.gmra.mrb[0].mxu0 %vm542_vm1, %v527_v20 }
  0x16   : > { %1948 = vmatmul.mubr.msk.f32.vlgmr.msra.gmra.mrb[0].mxu1 %vm542_vm1, %v530_v22  ;;  %1958 = vmatprep.mubr.msk.f32.mxu0 %vm2102_vm0, %v2103_v8 }
  0x17   : > { %2028 = vmatpush3.bf16.msra.mxu0 %v2027_v25 }
  0x18   : > { %2029 = vmatprep.subr.bf16.mxu0 %v2101_v3 }
  0x1b   : > { %2031 = vmatpush3.bf16.msra.mxu0 %v2030_v28 }
  0x1e   : > { %1959 = vmatmul.mubr.msk.f32.vlgmr.msra.gmra.mrb[2].mxu0 %vm542_vm1, %v528_v19 }
  0xe8   : > { %v1938_v31 = vpop.f32.mrb[0].mxu0 }
  0xe9   : > { %v704_v32 = vpop.f32.mrb[0].mxu1  ;;  %v615_v33 = vpop.f32.mrb[1].mxu0  ;;  %v621_v37 = vadd.f32 %v1938_v31, %v1845_v30 }
  0xea   : > { %v705_v34 = vadd.f32 %v1848_v29, %v704_v32  ;;  %v1949_v35 = vpop.f32.mrb[1].mxu1  ;;  %v616_v36 = vadd.f32 %v1845_v30, %v615_v33 }
  0xec   : > { %1961 = vmatprep.subr.msk.mxu1 %vm792_vm2, %v705_v34  ;;  %982 = vrot.lane.b32.xlu1 %v616_v36, %s2104_s28 }
  0xed   : > { %1962 = vmatpush3.xpose.msk.msra.mxu1 %vm792_vm2, %v705_v34  ;;  %1963 = vmatprep.mubr.msk.f32.mxu1 %vm792_vm2, %v616_v36 }
  0xf0   : > { %1964 = vmatmul.mubr.msk.f32.vlgmr.msra.gmra.mrb[2].mxu1 %vm792_vm2, %v621_v37  ;;  %984 = vrot.lane.b32.xlu1 %v621_v37, %s2104_s28 }
  0xf1   : > { %v788_v48 = vpop.f32.mrb[2].mxu0 }
  0xf2   : > { %v2281_v49 = vadd.f32 %v1850_v47, %v788_v48  ;;  %v1960_v50 = vpop.f32.mrb[3].mxu0 }
  0xf4   : > { %1182 = vrot.lane.b32.xlu1 %v705_v34, %s2105_s15  ;;  %1966 = vmatprep.subr.mxu1 %v2281_v49 }
  0xf5   : > { %1967 = vmatpush3.msra.mxu1 %v2281_v49 }
 0x15e   : > { %v2270_v38 = vpop.permute.xlu1 %982 }
 0x162   : > { %v2272_v39 = vpop.permute.xlu1 %984 }
 0x166   : > { %v1183_v40 = vpop.permute.xlu1 %1182 }
 0x167   : > { %1981 = vmatprep.subr.msk.mxu0 %vm792_vm2, %v1183_v40 }
 0x168   : > { %1982 = vmatpush3.xpose.msk.msra.mxu0 %vm792_vm2, %v1183_v40 }
 0x1c3   : > { %v1965_v41 = vpop.f32.mrb[2].mxu1 }
 0x1c4   : > { %v868_v42 = vpop.f32.mrb[3].mxu1  ;;  %v878_v44 = vmul.f32 0.35355338, %v1965_v41 }
 0x1c5   : > { %v877_v43 = vmul.f32 0.35355338, %v868_v42 }
 0x1c6   : > { %v882_v46 = vsel %vm792_vm2, %v878_v44, -inf }
 0x1c7   : > { %v879_v45 = vsel %vm792_vm2, %v877_v43, -inf }
 0x1c8   : > { %880 = vmax.xlane.f32.xlu0 %v879_v45 }
 0x1cc   : > { %883 = vmax.xlane.f32.xlu0 %v882_v46 }
 0x1e2   : > { %986 = vrot.lane.b32.xlu0 %v705_v34, %s2104_s28 }
 0x1e6   : > { %1178 = vrot.lane.b32.xlu0 %v616_v36, %s2105_s15 }
 0x1ea   : > { %1377 = vrot.lane.b32.xlu0 %v705_v34, %s2106_s20 }
 0x1ee   : > { %1375 = vrot.lane.b32.xlu0 %v621_v37, %s2106_s20 }
 0x255   : > { %v881_v51 = vpop.xlane.xlu0 %880 }
 0x256   : > { %v885_v52 = vsub.f32 %v877_v43, %v881_v51 }
 0x258   : > { %v887_v55 = vmul.f32 1.442695, %v885_v52 }
 0x259   : > { %v884_v53 = vpop.xlane.xlu0 %883 }
 0x25a   : > { %v886_v54 = vsub.f32 %v878_v44, %v884_v53 }
 0x25c   : > { %v889_v56 = vmul.f32 1.442695, %v886_v54 }
 0x25d   : > { %v987_v57 = vpop.permute.xlu0 %986 }
 0x25e   : > { %2057 = vpow2.f32 %v889_v56  ;;  %1971 = vmatprep.subr.msk.mxu1 %vm792_vm2, %v987_v57 }
 0x25f   : > { %2059 = vpow2.f32 %v887_v55 }
 0x261   : > { %v1179_v58 = vpop.permute.xlu0 %1178 }
 0x262   : > { %1983 = vmatprep.mubr.msk.f32.mxu0 %vm792_vm2, %v1179_v58 }
 0x265   : > { %v1378_v59 = vpop.permute.xlu0 %1377 }
 0x266   : > { %1991 = vmatprep.subr.msk.mxu0 %vm792_vm2, %v1378_v59 }
 0x268   : > { %v2058_v60 = vpop.eup %2057 }
 0x269   : > { %v894_v61 = vsel %vm792_vm2, %v2058_v60, 0.0  ;;  %v2060_v62 = vpop.eup %2059  ;;  %v1376_v4 = vpop.permute.xlu0 %1375 }
 0x26a   : > { %895 = vadd.xlane.f32.xlu1 %v894_v61  ;;  %v891_v63 = vsel %vm792_vm2, %v2060_v62, 0.0 }
 0x26e   : > { %892 = vadd.xlane.f32.xlu1 %v891_v63 }
 0x27f   : > { %1180 = vrot.lane.b32.xlu1 %v621_v37, %s2105_s15 }
 0x283   : > { %1373 = vrot.lane.b32.xlu1 %v616_v36, %s2106_s20 }
 0x2f7   : > { %v896_v0 = vpop.xlane.xlu1 %895 }
 0x2f8   : > { %2061 = vrcp.f32 %v896_v0 }
 0x2fb   : > { %v893_v1 = vpop.xlane.xlu1 %892 }
 0x2fc   : > { %2063 = vrcp.f32 %v893_v1 }
 0x2ff   : > { %v1181_v2 = vpop.permute.xlu1 %1180 }
 0x300   : > { %1984 = vmatmul.mubr.msk.f32.vlgmr.msra.gmra.mrb[4].mxu0 %vm792_vm2, %v1181_v2 }
 0x301   : > { %1992 = vmatpush3.xpose.msk.msra.mxu0 %vm792_vm2, %v1378_v59 }
 0x302   : > { %v2062_v5 = vpop.eup %2061 }
 0x303   : > { %v1374_v3 = vpop.permute.xlu1 %1373  ;;  %v900_v8 = vmul.f32 %v2062_v5, %v2058_v60 }
 0x304   : > { %1993 = vmatprep.mubr.msk.f32.mxu0 %vm792_vm2, %v1374_v3 }
 0x305   : > { %1994 = vmatmul.mubr.msk.f32.vlgmr.msra.gmra.mrb[6].mxu0 %vm792_vm2, %v1376_v4 }
 0x306   : > { %v2064_v6 = vpop.eup %2063 }
 0x307   : > { %v898_v7 = vmul.f32 %v2064_v6, %v2060_v62 }
 0x309   : > { %1968 = vmatprep.mubr.msk.f32.mxu1 %vm792_vm2, %v898_v7 }
 0x30a   : > { %1969 = vmatmul.mubr.msk.f32.vlgmr.msra.gmra.mrb[4].mxu1 %vm792_vm2, %v900_v8 }
 0x30b   : > { %1972 = vmatpush3.xpose.msk.msra.mxu1 %vm792_vm2, %v987_v57  ;;  %1973 = vmatprep.mubr.msk.f32.mxu1 %vm792_vm2, %v2270_v38 }
 0x30e   : > { %1974 = vmatmul.mubr.msk.f32.vlgmr.msra.gmra.mrb[6].mxu1 %vm792_vm2, %v2272_v39 }
 0x3d3   : > { %v1985_v9 = vpop.f32.mrb[4].mxu0 }
 0x3d4   : > { %v1256_v10 = vpop.f32.mrb[5].mxu0  ;;  %v1266_v25 = vmul.f32 0.35355338, %v1985_v9 }
 0x3d5   : > { %v1265_v21 = vmul.f32 0.35355338, %v1256_v10 }
 0x3d6   : > { %v1270_v29 = vsel %vm792_vm2, %v1266_v25, -inf }
 0x3d7   : > { %v1267_v26 = vsel %vm792_vm2, %v1265_v21, -inf }
 0x3d8   : > { %v1995_v11 = vpop.f32.mrb[6].mxu0 }
 0x3d9   : > { %v1451_v12 = vpop.f32.mrb[7].mxu0  ;;  %v1461_v28 = vmul.f32 0.35355338, %v1995_v11 }
 0x3da   : > { %v1460_v23 = vmul.f32 0.35355338, %v1451_v12 }
 0x3db   : > { %v1465_v30 = vsel %vm792_vm2, %v1461_v28, -inf }
 0x3dc   : > { %v1462_v27 = vsel %vm792_vm2, %v1460_v23, -inf }
 0x3dd   : > { %v2307_v13 = vpop.f32.mrb[4].mxu1 }
 0x3de   : > { %v2309_v16 = vpop.f32.mrb[5].mxu1 }
 0x3e1   : > { %v1975_v17 = vpop.f32.mrb[6].mxu1 }
 0x3e2   : > { %v1070_v18 = vmul.f32 0.35355338, %v1975_v17  ;;  %v1060_v19 = vpop.f32.mrb[7].mxu1 }
 0x3e3   : > { %v1069_v20 = vmul.f32 0.35355338, %v1060_v19 }
 0x3e4   : > { %v1074_v22 = vsel %vm792_vm2, %v1070_v18, -inf }
 0x3e5   : > { %1075 = vmax.xlane.f32.xlu0 %v1074_v22  ;;  %v1071_v24 = vsel %vm792_vm2, %v1069_v20, -inf  ;;  %v1600_v22 = vld [vmem:[%s2384_s7] sm:$0xff] }
 0x3e6   : > { %1072 = vmax.xlane.f32.xlu1 %v1071_v24 }
 0x3e9   : > { %1268 = vmax.xlane.f32.xlu0 %v1267_v26  ;;  %v1603_v26 = vld [vmem:[%s2384_s7 + $0x18] sm:$0xff] }
 0x3ea   : > { %1463 = vmax.xlane.f32.xlu1 %v1462_v27 }
 0x3ed   : > { %1271 = vmax.xlane.f32.xlu0 %v1270_v29 }
 0x3f1   : > { %1466 = vmax.xlane.f32.xlu0 %v1465_v30 }
 0x472   : > { %v1076_v31 = vpop.xlane.xlu0 %1075 }
 0x473   : > { %v1073_v32 = vpop.xlane.xlu1 %1072  ;;  %v1078_v41 = vsub.f32 %v1070_v18, %v1076_v31 }
 0x474   : > { %v1077_v58 = vsub.f32 %v1069_v20, %v1073_v32 }
 0x475   : > { %v1081_v45 = vmul.f32 1.442695, %v1078_v41 }
 0x476   : > { %v1269_v33 = vpop.xlane.xlu0 %1268  ;;  %v1079_v59 = vmul.f32 1.442695, %v1077_v58 }
 0x477   : > { %v1273_v34 = vsub.f32 %v1265_v21, %v1269_v33  ;;  %v1464_v35 = vpop.xlane.xlu1 %1463 }
 0x478   : > { %v1468_v36 = vsub.f32 %v1460_v23, %v1464_v35  ;;  %v1601_v23 = vld [vmem:[%s2384_s7 + $0x8] sm:$0xff] }
 0x479   : > { %v1275_v37 = vmul.f32 1.442695, %v1273_v34  ;;  %v2032_v24 = vpack.c.bf16 %v1601_v23, %v1600_v22 }
 0x47a   : > { %v1470_v38 = vmul.f32 1.442695, %v1468_v36  ;;  %v1272_v39 = vpop.xlane.xlu0 %1271 }
 0x47b   : > { %2065 = vpow2.f32 %v1275_v37  ;;  %v1274_v40 = vsub.f32 %v1266_v25, %v1272_v39  ;;  %2033 = vmatprep.subr.bf16.mxu0 %v2032_v24  ;;  %v1602_v25 = vld [vmem:[%s2384_s7 + $0x10] sm:$0xff] }
 0x47c   : > { %2067 = vpow2.f32 %v1470_v38  ;;  %2035 = vmatpush3.bf16.msra.mxu0 %v2032_v24  ;;  %v2036_v27 = vpack.c.bf16 %v1603_v26, %v1602_v25 }
 0x47d   : > { %v1277_v42 = vmul.f32 1.442695, %v1274_v40 }
 0x47e   : > { %v1467_v43 = vpop.xlane.xlu0 %1466  ;;  %2037 = vmatprep.subr.bf16.mxu0 %v2036_v27 }
 0x47f   : > { %2069 = vpow2.f32 %v1277_v42  ;;  %v1469_v44 = vsub.f32 %v1461_v28, %v1467_v43 }
 0x480   : > { %2039 = vmatpush3.bf16.msra.mxu0 %v2036_v27 }
 0x481   : > { %v1472_v46 = vmul.f32 1.442695, %v1469_v44 }
 0x483   : > { %2071 = vpow2.f32 %v1472_v46 }
 0x484   : > { %2073 = vpow2.f32 %v1081_v45 }
 0x485   : > { %v2066_v47 = vpop.eup %2065  ;;  %2075 = vpow2.f32 %v1079_v59 }
 0x486   : > { %v1279_v48 = vsel %vm792_vm2, %v2066_v47, 0.0  ;;  %v2068_v50 = vpop.eup %2067 }
 0x487   : > { %1280 = vadd.xlane.f32.xlu1 %v1279_v48  ;;  %v1474_v52 = vsel %vm792_vm2, %v2068_v50, 0.0 }
 0x489   : > { %v2070_v51 = vpop.eup %2069 }
 0x48a   : > { %v1282_v53 = vsel %vm792_vm2, %v2070_v51, 0.0 }
 0x48b   : > { %1475 = vadd.xlane.f32.xlu1 %v1474_v52  ;;  %1283 = vadd.xlane.f32.xlu0 %v1282_v53 }
 0x48d   : > { %v2072_v54 = vpop.eup %2071 }
 0x48e   : > { %v1477_v55 = vsel %vm792_vm2, %v2072_v54, 0.0  ;;  %v2074_v56 = vpop.eup %2073 }
 0x48f   : > { %1478 = vadd.xlane.f32.xlu0 %v1477_v55  ;;  %v1086_v57 = vsel %vm792_vm2, %v2074_v56, 0.0  ;;  %v2076_v60 = vpop.eup %2075 }
 0x490   : > { %v1083_v61 = vsel %vm792_vm2, %v2076_v60, 0.0 }
 0x493   : > { %1087 = vadd.xlane.f32.xlu0 %v1086_v57 }
 0x49c   : > { %1094 = vrot.lane.b32.xlu1 %v2281_v49, %s2104_s28  ;;  %s2108_s28 = smov 16  }
 0x4a9   : > { %1289 = vrot.lane.b32.xlu0 %v2281_v49, %s2105_s15  ;;  %s2109_s15 = smov 24  }
 0x4c0   : > { %1084 = vadd.xlane.f32.xlu1 %v1083_v61 }
 0x4d1   : > { %1484 = vrot.lane.b32.xlu1 %v2281_v49, %s2106_s20 }
 0x514   : > { %v1281_v62 = vpop.xlane.xlu1 %1280 }
 0x515   : > { %2077 = vrcp.f32 %v1281_v62 }
 0x518   : > { %v1476_v63 = vpop.xlane.xlu1 %1475  ;;  %v1284_v0 = vpop.xlane.xlu0 %1283 }
 0x51c   : > { %v1095_v1 = vpop.permute.xlu1 %1094  ;;  %v1479_v2 = vpop.xlane.xlu0 %1478 }
 0x51d   : > { %1976 = vmatprep.subr.mxu1 %v1095_v1 }
 0x51e   : > { %1977 = vmatpush3.msra.mxu1 %v1095_v1 }
 0x51f   : > { %v2078_v6 = vpop.eup %2077 }
 0x520   : > { %v1088_v3 = vpop.xlane.xlu0 %1087  ;;  %v1286_v11 = vmul.f32 %v2078_v6, %v2066_v47 }
 0x521   : > { %2079 = vrcp.f32 %v1088_v3 }
 0x524   : > { %v1290_v4 = vpop.permute.xlu0 %1289 }
 0x525   : > { %1986 = vmatprep.subr.mxu1 %v1290_v4 }
 0x52b   : > { %v2080_v7 = vpop.eup %2079 }
 0x52c   : > { %v1092_v9 = vmul.f32 %v2080_v7, %v2074_v56  ;;  %v1876_v7 = vld [vmem:[%s2390_s13] ss:$0 sm:$0xff] }
 0x54d   : > { %v1085_v5 = vpop.xlane.xlu1 %1084 }
 0x54e   : > { %2081 = vrcp.f32 %v1085_v5  ;;  %v1875_v5 = vld [vmem:[%s2389_s12] ss:$0 sm:$0xff] }
 0x54f   : > { %2083 = vrcp.f32 %v1284_v0 }
 0x550   : > { %2085 = vrcp.f32 %v1476_v63 }
 0x551   : > { %2087 = vrcp.f32 %v1479_v2  ;;  %v1485_v17 = vpop.permute.xlu1 %1484 }
 0x558   : > { %v2082_v49 = vpop.eup %2081 }
 0x559   : > { %v1090_v8 = vmul.f32 %v2082_v49, %v2076_v60  ;;  %v2084_v10 = vpop.eup %2083 }
 0x55a   : > { %v2086_v12 = vpop.eup %2085  ;;  %v1288_v18 = vmul.f32 %v2084_v10, %v2070_v51 }
 0x55b   : > { %1978 = vmatprep.mubr.msk.f32.mxu1 %vm792_vm2, %v1090_v8  ;;  %v2088_v19 = vpop.eup %2087  ;;  %v1481_v20 = vmul.f32 %v2086_v12, %v2068_v50 }
 0x55c   : > { %1979 = vmatmul.mubr.msk.f32.vlgmr.msra.gmra.mrb[8].mxu1 %vm792_vm2, %v1092_v9  ;;  %v1483_v21 = vmul.f32 %v2088_v19, %v2072_v54 }
 0x55d   : > { %1987 = vmatpush3.msra.mxu1 %v1290_v4  ;;  %1988 = vmatprep.mubr.msk.f32.mxu1 %vm792_vm2, %v1286_v11 }
 0x55e   : > { %1996 = vmatprep.subr.mxu1 %v1485_v17 }
 0x560   : > { %1989 = vmatmul.mubr.msk.f32.vlgmr.msra.gmra.mrb[10].mxu1 %vm792_vm2, %v1288_v18 }
 0x561   : > { %1997 = vmatpush3.msra.mxu1 %v1485_v17  ;;  %1998 = vmatprep.mubr.msk.f32.mxu1 %vm792_vm2, %v1481_v20 }
 0x564   : > { %1999 = vmatmul.mubr.msk.f32.vlgmr.msra.gmra.mrb[12].mxu1 %vm792_vm2, %v1483_v21 }
 0x62f   : > { %v1980_v28 = vpop.f32.mrb[8].mxu1 }
 0x630   : > { %1572 = vrot.lane.b32.xlu1 %v1980_v28, %s2107_s30  ;;  %v1169_v29 = vpop.f32.mrb[9].mxu1 }
 0x633   : > { %v1990_v30 = vpop.f32.mrb[10].mxu1 }
 0x634   : > { %1570 = vrot.lane.b32.xlu1 %v1169_v29, %s2107_s30  ;;  %v1364_v31 = vpop.f32.mrb[11].mxu1 }
 0x635   : > { %1578 = vrot.lane.b32.xlu0 %v1364_v31, %s2108_s28 }
 0x637   : > { %v2000_v32 = vpop.f32.mrb[12].mxu1 }
 0x638   : > { %1580 = vrot.lane.b32.xlu1 %v1990_v30, %s2108_s28  ;;  %v1559_v33 = vpop.f32.mrb[13].mxu1 }
 0x639   : > { %1586 = vrot.lane.b32.xlu0 %v1559_v33, %s2109_s15 }
 0x63c   : > { %1588 = vrot.lane.b32.xlu1 %v2000_v32, %s2109_s15 }
 0x6a2   : > { %v1573_v34 = vpop.permute.xlu1 %1572 }
 0x6a3   : > { %v1593_v42 = vsel %vm792_vm2, %v2307_v13, %v1573_v34 }
 0x6a6   : > { %v1571_v35 = vpop.permute.xlu1 %1570 }
 0x6a7   : > { %v1579_v36 = vpop.permute.xlu0 %1578  ;;  %v1592_v37 = vsel %vm792_vm2, %v2309_v16, %v1571_v35  ;;  %v1872_v16 = vld [vmem:[%s2388_s11] ss:$0 sm:$0xff] }
 0x6a8   : > { %v1595_v39 = vsel %vm1594_vm3, %v1592_v37, %v1579_v36 }
 0x6aa   : > { %v1581_v38 = vpop.permute.xlu1 %1580 }
 0x6ab   : > { %v1587_v40 = vpop.permute.xlu0 %1586  ;;  %v1596_v43 = vsel %vm1594_vm3, %v1593_v42, %v1581_v38 }
 0x6ac   : > { %v1598_v41 = vsel %vm1597_vm4, %v1595_v39, %v1587_v40 }
 0x6ad   : > { %2009 = vmatprep.mubr.msk.f32.mxu0 %vm542_vm1, %v1598_v41 }
 0x6ae   : > { %v1589_v44 = vpop.permute.xlu1 %1588 }
 0x6af   : > { %v1599_v45 = vsel %vm1597_vm4, %v1596_v43, %v1589_v44 }
 0x6b0   : > { %2010 = vmatmul.mubr.msk.f32.vlgmr.msra.gmra.mrb[8].mxu0 %vm542_vm1, %v1599_v45 }
 0x783   : > { %v2011_v46 = vpop.f32.mrb[8].mxu0 }
 0x784   : > { %v1689_v47 = vadd.f32 %v2011_v46, %v1872_v16  ;;  %v1683_v48 = vpop.f32.mrb[9].mxu0 }
 0x785   : > { %v1684_v50 = vadd.f32 %v1872_v16, %v1683_v48 }
 0x786   : > { %v1693_v51 = vadd.f32 %v1689_v47, %v2230_v15 }
 0x787   : > { %v1692_v52 = vadd.f32 %v1684_v50, %v2228_v14 }
 0x788   : > { %v1697_v13 = vsel %vm542_vm1, %v1693_v51, 0.0 }
 0x789   : > { %1698 = vadd.xlane.f32.xlu1 %v1697_v13  ;;  %v1694_v53 = vsel %vm542_vm1, %v1692_v52, 0.0 }
 0x78a   : > { %1695 = vadd.xlane.f32.xlu0 %v1694_v53 }
 0x816   : > { %v1699_v54 = vpop.xlane.xlu1 %1698 }
 0x817   : > { %v1702_v55 = vmul.f32 0.03125, %v1699_v54  ;;  %v1696_v56 = vpop.xlane.xlu0 %1695 }
 0x818   : > { %v1701_v57 = vmul.f32 0.03125, %v1696_v56 }
 0x819   : > { %v1704_v58 = vsub.f32 %v1693_v51, %v1702_v55 }
 0x81a   : > { %v1703_v59 = vsub.f32 %v1692_v52, %v1701_v57 }
 0x81b   : > { %v1706_v62 = vmul.f32 %v1704_v58, %v1704_v58 }
 0x81c   : > { %v1705_v60 = vmul.f32 %v1703_v59, %v1703_v59 }
 0x81d   : > { %v1710_v15 = vsel %vm542_vm1, %v1706_v62, 0.0 }
 0x81e   : > { %v1707_v61 = vsel %vm542_vm1, %v1705_v60, 0.0 }
 0x81f   : > { %1708 = vadd.xlane.f32.xlu0 %v1707_v61 }
 0x823   : > { %1711 = vadd.xlane.f32.xlu0 %v1710_v15 }
 0x8ac   : > { %v1709_v14 = vpop.xlane.xlu0 %1708 }
 0x8ad   : > { %v1713_v63 = vmul.f32 0.03125, %v1709_v14 }
 0x8af   : > { %v1715_v0 = vadd.f32 1e-05, %v1713_v63 }
 0x8b0   : > { %v1712_v1 = vpop.xlane.xlu0 %1711 }
 0x8b1   : > { %2089 = vrsqrt.f32 %v1715_v0  ;;  %v1714_v2 = vmul.f32 0.03125, %v1712_v1 }
 0x8b3   : > { %v1716_v3 = vadd.f32 1e-05, %v1714_v2 }
 0x8b5   : > { %2091 = vrsqrt.f32 %v1716_v3 }
 0x8bb   : > { %v2090_v4 = vpop.eup %2089 }
 0x8bc   : > { %v1719_v6 = vmul.f32 %v2090_v4, %v1703_v59 }
 0x8be   : > { %v1728_v49 = vmul.f32 %v1875_v5, %v1719_v6 }
 0x8bf   : > { %v2092_v8 = vpop.eup %2091 }
 0x8c0   : > { %v1737_v9 = vadd.f32 %v1876_v7, %v1728_v49  ;;  %v1720_v10 = vmul.f32 %v2092_v8, %v1704_v58 }
 0x8c2   : > { %1739 = vst.msk [vmem:[%s521_s25] sm:$0xff] %vm542_vm1, %v1737_v9  ;;  %v1729_v11 = vmul.f32 %v1875_v5, %v1720_v10 }
 0x8c4   : > { %v1738_v12 = vadd.f32 %v1876_v7, %v1729_v11 }
 0x8c6   : > { %1740 = vst.msk [vmem:[%s521_s25 + $0x8] sm:$0xff] %vm542_vm1, %v1738_v12 }
 0x8c7 PF: > { %s24_s29 = sadd.s32 1, %s2099_s29  }
 0x8c8   : > { %p21_p4 = scmp.ge.s32.totalorder %s24_s29, 4  }
 0x8ca   :  { %23 = sbr.rel (!%p21_p4) target bundleno = 1 (0x1), region = 115 }

// kernel: dca_encoder_layer_forward.13
= control target key start
LH: loop header
LB: loop body
LE: loop exit
PB: predicated region body
PF: predicated region fallthrough
CT: control target
= control target key end

     0   :  { %s708_s24 = smov 0   ;;  %s784_s0 = inlined_call_operand.vmem [shape: f32[2,8,32], index: 0, kind: input, shape index: {}]   ;;  %s785_s1 = inlined_call_operand.vmem [shape: f32[32,64], index: 1, kind: input, shape index: {}]   ;;  %s786_s2 = inlined_call_operand.vmem [shape: f32[1,64], index: 2, kind: input, shape index: {}]   ;;  %s787_s3 = inlined_call_operand.vmem [shape: f32[64,32], index: 3, kind: input, shape index: {}]   ;;  %s788_s4 = inlined_call_operand.vmem [shape: f32[1,32], index: 4, kind: input, shape index: {}]   ;;  %s789_s5 = inlined_call_operand.vmem [shape: f32[1,32], index: 5, kind: input, shape index: {}]   ;;  %s790_s6 = inlined_call_operand.vmem [shape: f32[1,32], index: 6, kind: input, shape index: {}]   ;;  %s791_s7 = inlined_call_operand.vmem [shape: f32[2,8,32], index: 7, kind: output, shape index: {}]  }
   0x1 LB: > { %s561_s25 = sadd.s32 4294967295, %s662_s24   ;;  %p565_p0 = scmp.ge.s32.totalorder %s662_s24, 1  ;;  %s662_s24 = sphi %s708_s24, %s17_s24  }
   0x2   : > { %p236_p1 = scmp.lt.s32.totalorder %s662_s24, 3 }
   0x4   : > { %p237_p2 = pnand %p565_p0, %p236_p1 }
   0x5   : > { %v275_v0 = vld [vmem:[%s785_s1] sm:$0xff] (!%p237_p2)  ;;  %v276_v1 = vld [vmem:[%s785_s1 + $0x8] sm:$0xff] (!%p237_p2)  ;;  %v277_v2 = vld [vmem:[%s785_s1 + $0x10] sm:$0xff] (!%p237_p2)  ;;  %v664_v3 = vmov (!%p237_p2), 0.0|0.0   ;;  %vm665_vm0 = vmmov (!%p237_p2), 0   ;;  %v666_v6 = vmov (!%p237_p2), 0.0  }
   0x6   : > { %240 = sbr.rel (%p237_p2) target bundleno = 808 (0x328), region = 48  ;;  %620 = vmatprep.subr.bf16.mxu0 (!%p237_p2), %v664_v3  ;;  %v621_v4 = vpack.c.bf16 (!%p237_p2), %v276_v1, %v275_v0  ;;  %v278_v5 = vld [vmem:[%s785_s1 + $0x18] sm:$0xff] (!%p237_p2)  ;;  %598 = vmatprep.mubr.msk.f32.mxu0 (!%p237_p2), %vm665_vm0, %v666_v6  ;;  %p266_p3 = scmp.lt.s32.totalorder (!%p237_p2), %s561_s25, 1  ;;  %vm286_vm1 = vcmask (!%p237_p2), 261120   ;;  %v387_v9 = vld [vmem:[%s787_s3] sm:$0xff] (!%p237_p2)  ;;  %v388_v10 = vld [vmem:[%s787_s3 + $0x8] sm:$0xff] (!%p237_p2) }
   0x7   : > { %626 = vmatprep.subr.bf16.mxu1 (!%p237_p2), %v664_v3  ;;  %617 = vmatprep.mubr.msk.f32.mxu1 (!%p237_p2), %vm665_vm0, %v666_v6  ;;  %v624_v7 = vpack.c.bf16 (!%p237_p2), %v278_v5, %v277_v2  ;;  %v627_v11 = vpack.c.bf16 (!%p237_p2), %v388_v10, %v387_v9  ;;  %v389_v12 = vld [vmem:[%s787_s3 + $0x10] sm:$0xff] (!%p237_p2)  ;;  %v390_v13 = vld [vmem:[%s787_s3 + $0x18] sm:$0xff] (!%p237_p2)  ;;  %v391_v15 = vld [vmem:[%s787_s3 + $0x20] sm:$0xff] (!%p237_p2)  ;;  %v667_v45 = vmov (!%p237_p2), -1.0   ;;  %vm402_vm3 = vcmask (!%p237_p2), 523264  }
   0x8   : > { %622 = vmatpush3.bf16.msra.mxu0 (!%p237_p2), %v621_v4  ;;  %v630_v14 = vpack.c.bf16 (!%p237_p2), %v390_v13, %v389_v12  ;;  %v392_v16 = vld [vmem:[%s787_s3 + $0x28] sm:$0xff] (!%p237_p2)  ;;  %v393_v18 = vld [vmem:[%s787_s3 + $0x30] sm:$0xff] (!%p237_p2)  ;;  %v394_v19 = vld [vmem:[%s787_s3 + $0x38] sm:$0xff] (!%p237_p2) }
   0x9   : > { %623 = vmatprep.subr.bf16.mxu0 (!%p237_p2), %v664_v3  ;;  %628 = vmatpush3.bf16.msra.mxu1 (!%p237_p2), %v627_v11  ;;  %v633_v17 = vpack.c.bf16 (!%p237_p2), %v392_v16, %v391_v15  ;;  %v636_v20 = vpack.c.bf16 (!%p237_p2), %v394_v19, %v393_v18  ;;  %v568_v21 = vld [vmem:[%s786_s2] ss:$0 sm:$0xff] (!%p237_p2) }
   0xa   : > { %629 = vmatprep.subr.bf16.mxu1 (!%p237_p2), %v664_v3  ;;  %v570_v51 = vld [vmem:[%s788_s4] ss:$0 sm:$0xff] (!%p237_p2) }
   0xb   : > { %v572_v2 = vld [vmem:[%s789_s5] ss:$0 sm:$0xff] (!%p237_p2) }
   0xc   : > { %625 = vmatpush3.bf16.msra.mxu0 (!%p237_p2), %v624_v7  ;;  %v573_v4 = vld [vmem:[%s790_s6] ss:$0 sm:$0xff] (!%p237_p2) }
   0xd   : > { %s793_s25 = smov (!%p266_p3, %s561_s25), 1  ;;  %631 = vmatpush3.bf16.msra.mxu1 %v630_v14 }
   0xe   : > { %s566_s11 = sshll.u32 %s793_s25, 3  ;;  %632 = vmatprep.subr.bf16.mxu1 %v664_v3 }
   0xf   : > { %s269_s14 = scalar_lea.vmem %s784_s0, %s566_s11  ;;  %s273_s21 = scalar_lea.vmem %s791_s7, %s566_s11 }
  0x10   : > { %v274_v8 = vld [vmem:[%s269_s14] sm:$0xff] }
  0x11   : > { %599 = vmatmul.mubr.msk.f32.vlgmr.msra.gmra.mrb[0].mxu0 %vm286_vm1, %v274_v8  ;;  %634 = vmatpush3.bf16.msra.mxu1 %v633_v17 }
  0x12   : > { %635 = vmatprep.subr.bf16.mxu1 %v664_v3 }
  0x15   : > { %637 = vmatpush3.bf16.msra.mxu1 %v636_v20 }
  0xe4   : > { %v356_v22 = vpop.f32.mrb[0].mxu0 }
  0xe5   : > { %v357_v23 = vadd.f32 %v568_v21, %v356_v22  ;;  %v600_v24 = vpop.f32.mrb[1].mxu0 }
  0xe7   : > { %v361_v25 = vmul.f32 0.70710677, %v357_v23  ;;  %v360_v48 = vmul.f32 0.5, %v357_v23 }
  0xe9   : > { %v364_v26 = vand.u32 2147483647, %v361_v25  ;;  %vm362_vm2 = vcmp.ge.f32.partialorder %v361_v25, 0.0 }
  0xea   : > { %v363_v46 = vsel %vm362_vm2, 1.0, %v667_v45 }
  0xeb   : > { %v365_v27 = vmul.f32 0.3275911, %v364_v26  ;;  %v378_v29 = vsub.f32 0.0, %v364_v26 }
  0xed   : > { %v366_v28 = vadd.f32 1.0, %v365_v27  ;;  %v379_v31 = vmul.f32 %v378_v29, %v364_v26 }
  0xef   : > { %650 = vrcp.f32 %v366_v28  ;;  %v380_v34 = vmul.f32 1.442695, %v379_v31 }
  0xf1   : > { %652 = vpow2.f32 %v380_v34 }
  0xf9   : > { %v651_v30 = vpop.eup %650 }
  0xfa   : > { %v369_v32 = vmul.f32 1.0614054, %v651_v30 }
  0xfb   : > { %v653_v42 = vpop.eup %652 }
  0xfc   : > { %v370_v33 = vadd.f32 -1.4531521, %v369_v32 }
  0xfe   : > { %v371_v35 = vmul.f32 %v651_v30, %v370_v33 }
 0x100   : > { %v372_v36 = vadd.f32 1.4214138, %v371_v35 }
 0x102   : > { %v373_v37 = vmul.f32 %v651_v30, %v372_v36 }
 0x104   : > { %v374_v38 = vadd.f32 -0.28449672, %v373_v37 }
 0x106   : > { %v375_v39 = vmul.f32 %v651_v30, %v374_v38 }
 0x108   : > { %v376_v40 = vadd.f32 0.2548296, %v375_v39 }
 0x10a   : > { %v377_v41 = vmul.f32 %v651_v30, %v376_v40 }
 0x10c   : > { %v382_v43 = vmul.f32 %v653_v42, %v377_v41 }
 0x10e   : > { %v383_v44 = vsub.f32 1.0, %v382_v43 }
 0x110   : > { %v384_v47 = vmul.f32 %v383_v44, %v363_v46 }
 0x112   : > { %v385_v49 = vadd.f32 1.0, %v384_v47 }
 0x114   : > { %v386_v50 = vmul.f32 %v385_v49, %v360_v48 }
 0x116   : > { %618 = vmatmul.mubr.msk.f32.vlgmr.msra.gmra.mrb[0].mxu1 %vm402_vm3, %v386_v50 }
 0x1e9   : > { %v472_v52 = vpop.f32.mrb[0].mxu1 }
 0x1ea   : > { %v473_v53 = vadd.f32 %v570_v51, %v472_v52  ;;  %v619_v54 = vpop.f32.mrb[1].mxu1 }
 0x1ec   : > { %v476_v55 = vadd.f32 %v473_v53, %v274_v8 }
 0x1ee   : > { %v477_v56 = vsel %vm286_vm1, %v476_v55, 0.0 }
 0x1ef   : > { %478 = vadd.xlane.f32.xlu0 %v477_v56 }
 0x27c   : > { %v479_v57 = vpop.xlane.xlu0 %478 }
 0x27d   : > { %v481_v58 = vmul.f32 0.03125, %v479_v57 }
 0x27f   : > { %v482_v59 = vsub.f32 %v476_v55, %v481_v58 }
 0x281   : > { %v483_v60 = vmul.f32 %v482_v59, %v482_v59 }
 0x283   : > { %v484_v61 = vsel %vm286_vm1, %v483_v60, 0.0 }
 0x284   : > { %485 = vadd.xlane.f32.xlu0 %v484_v61 }
 0x311   : > { %v486_v62 = vpop.xlane.xlu0 %485 }
 0x312   : > { %v487_v63 = vmul.f32 0.03125, %v486_v62 }
 0x314   : > { %v488_v0 = vadd.f32 1e-05, %v487_v63 }
 0x316   : > { %654 = vrsqrt.f32 %v488_v0 }
 0x320   : > { %v655_v1 = vpop.eup %654 }
 0x321   : > { %v490_v3 = vmul.f32 %v655_v1, %v482_v59 }
 0x323   : > { %v498_v5 = vmul.f32 %v572_v2, %v490_v3 }
 0x325   : > { %v506_v6 = vadd.f32 %v573_v4, %v498_v5 }
 0x327   : > { %507 = vst.msk [vmem:[%s273_s21] sm:$0xff] %vm286_vm1, %v506_v6 }
 0x328 PF: > { %s17_s24 = sadd.s32 1, %s662_s24  }
 0x329   : > { %p14_p4 = scmp.ge.s32.totalorder %s17_s24, 4  }
 0x32b   :  { %16 = sbr.rel (!%p14_p4) target bundleno = 1 (0x1), region = 78 }

// kernel: dca_encoder_layer_forward.15
= control target key start
LH: loop header
LB: loop body
LE: loop exit
PB: predicated region body
PF: predicated region fallthrough
CT: control target
= control target key end

     0   :  { %s697_s24 = smov 0   ;;  %s767_s0 = inlined_call_operand.vmem [shape: f32[2,8,16], index: 0, kind: input, shape index: {}]   ;;  %s768_s1 = inlined_call_operand.vmem [shape: f32[16,64], index: 1, kind: input, shape index: {}]   ;;  %s769_s2 = inlined_call_operand.vmem [shape: f32[1,64], index: 2, kind: input, shape index: {}]   ;;  %s770_s3 = inlined_call_operand.vmem [shape: f32[64,16], index: 3, kind: input, shape index: {}]   ;;  %s771_s4 = inlined_call_operand.vmem [shape: f32[1,16], index: 4, kind: input, shape index: {}]   ;;  %s772_s5 = inlined_call_operand.vmem [shape: f32[1,16], index: 5, kind: input, shape index: {}]   ;;  %s773_s6 = inlined_call_operand.vmem [shape: f32[1,16], index: 6, kind: input, shape index: {}]   ;;  %s774_s7 = inlined_call_operand.vmem [shape: f32[2,8,16], index: 7, kind: output, shape index: {}]  }
   0x1 LB: > { %s559_s25 = sadd.s32 4294967295, %s651_s24   ;;  %p563_p0 = scmp.ge.s32.totalorder %s651_s24, 1  ;;  %s651_s24 = sphi %s697_s24, %s17_s24  }
   0x2   : > { %p236_p1 = scmp.lt.s32.totalorder %s651_s24, 3 }
   0x4   : > { %p237_p2 = pnand %p563_p0, %p236_p1 }
   0x5   : > { %v275_v0 = vld [vmem:[%s768_s1] sm:$0xff] (!%p237_p2)  ;;  %v276_v1 = vld [vmem:[%s768_s1 + $0x8] sm:$0xff] (!%p237_p2)  ;;  %p266_p3 = scmp.lt.s32.totalorder (!%p237_p2), %s559_s25, 1  ;;  %v653_v2 = vmov (!%p237_p2), 0.0|0.0   ;;  %vm654_vm0 = vmmov (!%p237_p2), 0   ;;  %v655_v4 = vmov (!%p237_p2), 0.0  }
   0x6   : > { %240 = sbr.rel (%p237_p2) target bundleno = 808 (0x328), region = 48  ;;  %612 = vmatprep.subr.bf16.mxu0 (!%p237_p2), %v653_v2  ;;  %v613_v3 = vpack.c.bf16 (!%p237_p2), %v276_v1, %v275_v0  ;;  %590 = vmatprep.mubr.msk.f32.mxu0 (!%p237_p2), %vm654_vm0, %v655_v4  ;;  %vm284_vm1 = vcmask (!%p237_p2), 130048   ;;  %v385_v6 = vld [vmem:[%s770_s3] sm:$0xff] (!%p237_p2)  ;;  %v386_v7 = vld [vmem:[%s770_s3 + $0x8] sm:$0xff] (!%p237_p2)  ;;  %v387_v9 = vld [vmem:[%s770_s3 + $0x10] sm:$0xff] (!%p237_p2)  ;;  %v656_v42 = vmov (!%p237_p2), -1.0  }
   0x7   : > { %615 = vmatprep.subr.bf16.mxu1 (!%p237_p2), %v653_v2  ;;  %609 = vmatprep.mubr.msk.f32.mxu1 (!%p237_p2), %vm654_vm0, %v655_v4  ;;  %v616_v8 = vpack.c.bf16 (!%p237_p2), %v386_v7, %v385_v6  ;;  %v388_v10 = vld [vmem:[%s770_s3 + $0x18] sm:$0xff] (!%p237_p2)  ;;  %v389_v12 = vld [vmem:[%s770_s3 + $0x20] sm:$0xff] (!%p237_p2)  ;;  %v390_v13 = vld [vmem:[%s770_s3 + $0x28] sm:$0xff] (!%p237_p2)  ;;  %vm400_vm3 = vcmask (!%p237_p2), 523264  }
   0x8   : > { %614 = vmatpush3.bf16.msra.mxu0 (!%p237_p2), %v613_v3  ;;  %v619_v11 = vpack.c.bf16 (!%p237_p2), %v388_v10, %v387_v9  ;;  %v622_v14 = vpack.c.bf16 (!%p237_p2), %v390_v13, %v389_v12  ;;  %v391_v15 = vld [vmem:[%s770_s3 + $0x30] sm:$0xff] (!%p237_p2)  ;;  %v392_v16 = vld [vmem:[%s770_s3 + $0x38] sm:$0xff] (!%p237_p2)  ;;  %v566_v18 = vld [vmem:[%s769_s2] ss:$0 sm:$0xff] (!%p237_p2) }
   0x9   : > { %617 = vmatpush3.bf16.msra.mxu1 (!%p237_p2), %v616_v8  ;;  %v625_v17 = vpack.c.bf16 (!%p237_p2), %v392_v16, %v391_v15  ;;  %v568_v48 = vld [vmem:[%s771_s4] ss:$0 sm:$0xff] (!%p237_p2) }
   0xa   : > { %618 = vmatprep.subr.bf16.mxu1 (!%p237_p2), %v653_v2  ;;  %v570_v63 = vld [vmem:[%s772_s5] ss:$0 sm:$0xff] (!%p237_p2) }
   0xb   : > { %v571_v1 = vld [vmem:[%s773_s6] ss:$0 sm:$0xff] (!%p237_p2) }
   0xd   : > { %s776_s25 = smov (!%p266_p3, %s559_s25), 1  ;;  %620 = vmatpush3.bf16.msra.mxu1 %v619_v11 }
   0xe   : > { %s564_s30 = sshll.u32 %s776_s25, 3  ;;  %621 = vmatprep.subr.bf16.mxu1 %v653_v2 }
   0xf   : > { %s269_s10 = scalar_lea.vmem %s767_s0, %s564_s30  ;;  %s273_s17 = scalar_lea.vmem %s774_s7, %s564_s30 }
  0x10   : > { %v274_v5 = vld [vmem:[%s269_s10] sm:$0xff] }
  0x11   : > { %591 = vmatmul.mubr.msk.f32.vlgmr.msra.gmra.mrb[0].mxu0 %vm284_vm1, %v274_v5  ;;  %623 = vmatpush3.bf16.msra.mxu1 %v622_v14 }
  0x12   : > { %624 = vmatprep.subr.bf16.mxu1 %v653_v2 }
  0x15   : > { %626 = vmatpush3.bf16.msra.mxu1 %v625_v17 }
  0xe4   : > { %v354_v19 = vpop.f32.mrb[0].mxu0 }
  0xe5   : > { %v355_v20 = vadd.f32 %v566_v18, %v354_v19  ;;  %v592_v21 = vpop.f32.mrb[1].mxu0 }
  0xe7   : > { %v359_v22 = vmul.f32 0.70710677, %v355_v20  ;;  %v358_v45 = vmul.f32 0.5, %v355_v20 }
  0xe9   : > { %v362_v23 = vand.u32 2147483647, %v359_v22  ;;  %vm360_vm2 = vcmp.ge.f32.partialorder %v359_v22, 0.0 }
  0xea   : > { %v361_v43 = vsel %vm360_vm2, 1.0, %v656_v42 }
  0xeb   : > { %v363_v24 = vmul.f32 0.3275911, %v362_v23  ;;  %v376_v26 = vsub.f32 0.0, %v362_v23 }
  0xed   : > { %v364_v25 = vadd.f32 1.0, %v363_v24  ;;  %v377_v28 = vmul.f32 %v376_v26, %v362_v23 }
  0xef   : > { %639 = vrcp.f32 %v364_v25  ;;  %v378_v31 = vmul.f32 1.442695, %v377_v28 }
  0xf1   : > { %641 = vpow2.f32 %v378_v31 }
  0xf9   : > { %v640_v27 = vpop.eup %639 }
  0xfa   : > { %v367_v29 = vmul.f32 1.0614054, %v640_v27 }
  0xfb   : > { %v642_v39 = vpop.eup %641 }
  0xfc   : > { %v368_v30 = vadd.f32 -1.4531521, %v367_v29 }
  0xfe   : > { %v369_v32 = vmul.f32 %v640_v27, %v368_v30 }
 0x100   : > { %v370_v33 = vadd.f32 1.4214138, %v369_v32 }
 0x102   : > { %v371_v34 = vmul.f32 %v640_v27, %v370_v33 }
 0x104   : > { %v372_v35 = vadd.f32 -0.28449672, %v371_v34 }
 0x106   : > { %v373_v36 = vmul.f32 %v640_v27, %v372_v35 }
 0x108   : > { %v374_v37 = vadd.f32 0.2548296, %v373_v36 }
 0x10a   : > { %v375_v38 = vmul.f32 %v640_v27, %v374_v37 }
 0x10c   : > { %v380_v40 = vmul.f32 %v642_v39, %v375_v38 }
 0x10e   : > { %v381_v41 = vsub.f32 1.0, %v380_v40 }
 0x110   : > { %v382_v44 = vmul.f32 %v381_v41, %v361_v43 }
 0x112   : > { %v383_v46 = vadd.f32 1.0, %v382_v44 }
 0x114   : > { %v384_v47 = vmul.f32 %v383_v46, %v358_v45 }
 0x116   : > { %610 = vmatmul.mubr.msk.f32.vlgmr.msra.gmra.mrb[0].mxu1 %vm400_vm3, %v384_v47 }
 0x1e9   : > { %v470_v49 = vpop.f32.mrb[0].mxu1 }
 0x1ea   : > { %v471_v50 = vadd.f32 %v568_v48, %v470_v49  ;;  %v611_v51 = vpop.f32.mrb[1].mxu1 }
 0x1ec   : > { %v474_v52 = vadd.f32 %v471_v50, %v274_v5 }
 0x1ee   : > { %v475_v53 = vsel %vm284_vm1, %v474_v52, 0.0 }
 0x1ef   : > { %476 = vadd.xlane.f32.xlu0 %v475_v53 }
 0x27c   : > { %v477_v54 = vpop.xlane.xlu0 %476 }
 0x27d   : > { %v479_v55 = vmul.f32 0.0625, %v477_v54 }
 0x27f   : > { %v480_v56 = vsub.f32 %v474_v52, %v479_v55 }
 0x281   : > { %v481_v57 = vmul.f32 %v480_v56, %v480_v56 }
 0x283   : > { %v482_v58 = vsel %vm284_vm1, %v481_v57, 0.0 }
 0x284   : > { %483 = vadd.xlane.f32.xlu0 %v482_v58 }
 0x311   : > { %v484_v59 = vpop.xlane.xlu0 %483 }
 0x312   : > { %v485_v60 = vmul.f32 0.0625, %v484_v59 }
 0x314   : > { %v486_v61 = vadd.f32 1e-05, %v485_v60 }
 0x316   : > { %643 = vrsqrt.f32 %v486_v61 }
 0x320   : > { %v644_v62 = vpop.eup %643 }
 0x321   : > { %v488_v0 = vmul.f32 %v644_v62, %v480_v56 }
 0x323   : > { %v496_v2 = vmul.f32 %v570_v63, %v488_v0 }
 0x325   : > { %v504_v3 = vadd.f32 %v571_v1, %v496_v2 }
 0x327   : > { %505 = vst.msk [vmem:[%s273_s17] sm:$0xff] %vm284_vm1, %v504_v3 }
 0x328 PF: > { %s17_s24 = sadd.s32 1, %s651_s24  }
 0x329   : > { %p14_p4 = scmp.ge.s32.totalorder %s17_s24, 4  }
 0x32b   :  { %16 = sbr.rel (!%p14_p4) target bundleno = 1 (0x1), region = 78 }

// kernel: dca_encoder_layer_forward.12
= control target key start
LH: loop header
LB: loop body
LE: loop exit
PB: predicated region body
PF: predicated region fallthrough
CT: control target
= control target key end

     0   :  { %s2109_s29 = smov 0   ;;  %s2308_s0 = inlined_call_operand.vmem [shape: f32[2,8,32], index: 0, kind: input, shape index: {}]   ;;  %s2309_s1 = inlined_call_operand.vmem [shape: f32[2,8,32], index: 1, kind: input, shape index: {}]   ;;  %s2310_s2 = inlined_call_operand.vmem [shape: f32[2,16,32], index: 2, kind: input, shape index: {}]   ;;  %s2311_s3 = inlined_call_operand.vmem [shape: f32[2,16,32], index: 3, kind: input, shape index: {}]   ;;  %s2312_s4 = inlined_call_operand.vmem [shape: f32[32,32], index: 4, kind: input, shape index: {}]   ;;  %s2313_s5 = inlined_call_operand.vmem [shape: f32[32,32], index: 5, kind: input, shape index: {}]   ;;  %s2314_s6 = inlined_call_operand.vmem [shape: f32[32,32], index: 6, kind: input, shape index: {}]   ;;  %s2315_s7 = inlined_call_operand.vmem [shape: f32[32,32], index: 7, kind: input, shape index: {}]   ;;  %s2316_s8 = inlined_call_operand.vmem [shape: f32[1,32], index: 8, kind: input, shape index: {}]   ;;  %s2317_s9 = inlined_call_operand.vmem [shape: f32[1,32], index: 9, kind: input, shape index: {}]   ;;  %s2318_s10 = inlined_call_operand.vmem [shape: f32[1,32], index: 10, kind: input, shape index: {}]   ;;  %s2319_s11 = inlined_call_operand.vmem [shape: f32[1,32], index: 11, kind: input, shape index: {}]   ;;  %s2320_s12 = inlined_call_operand.vmem [shape: f32[1,32], index: 12, kind: input, shape index: {}]   ;;  %s2321_s13 = inlined_call_operand.vmem [shape: f32[1,32], index: 13, kind: input, shape index: {}]   ;;  %s2322_s14 = inlined_call_operand.vmem [shape: f32[2,8,32], index: 14, kind: output, shape index: {}]  }
   0x1 LB: > { %s1706_s30 = sadd.s32 4294967295, %s2023_s29   ;;  %p1710_p0 = scmp.ge.s32.totalorder %s2023_s29, 1  ;;  %s2023_s29 = sphi %s2109_s29, %s24_s29  }
   0x2   : > { %p440_p1 = scmp.lt.s32.totalorder %s2023_s29, 3 }
   0x4   : > { %p441_p2 = pnand %p1710_p0, %p440_p1 }
   0x5   : > { %v614_v0 = vld [vmem:[%s2313_s5] sm:$0xff] (!%p441_p2)  ;;  %v615_v1 = vld [vmem:[%s2313_s5 + $0x8] sm:$0xff] (!%p441_p2)  ;;  %v616_v2 = vld [vmem:[%s2313_s5 + $0x10] sm:$0xff] (!%p441_p2)  ;;  %p498_p3 = scmp.lt.s32.totalorder (!%p441_p2), %s1706_s30, 1  ;;  %v2025_v5 = vmov (!%p441_p2), 0.0|0.0   ;;  %vm2026_vm0 = vmmov (!%p441_p2), 0  }
   0x6   : > { %444 = sbr.rel (%p441_p2) target bundleno = 3239 (0xca7), region = 76  ;;  %v1902_v3 = vpack.c.bf16 (!%p441_p2), %v615_v1, %v614_v0  ;;  %v617_v4 = vld [vmem:[%s2313_s5 + $0x18] sm:$0xff] (!%p441_p2)  ;;  %1896 = vmatprep.subr.bf16.mxu0 (!%p441_p2), %v2025_v5  ;;  %v529_v6 = vld [vmem:[%s2312_s4] sm:$0xff] (!%p441_p2)  ;;  %v530_v7 = vld [vmem:[%s2312_s4 + $0x8] sm:$0xff] (!%p441_p2)  ;;  %v2027_v12 = vmov (!%p441_p2), 0.0   ;;  %vm540_vm1 = vcmask (!%p441_p2), 261120  }
   0x7   : > { %v1906_v8 = vpack.c.bf16 (!%p441_p2), %v617_v4, %v616_v2  ;;  %v1897_v9 = vpack.c.bf16 (!%p441_p2), %v530_v7, %v529_v6  ;;  %v531_v10 = vld [vmem:[%s2312_s4 + $0x10] sm:$0xff] (!%p441_p2)  ;;  %v532_v11 = vld [vmem:[%s2312_s4 + $0x18] sm:$0xff] (!%p441_p2)  ;;  %1804 = vmatprep.mubr.msk.f32.mxu0 (!%p441_p2), %vm2026_vm0, %v2027_v12  ;;  %v1720_v23 = vld [vmem:[%s2317_s9] ss:$0 sm:$0xff] (!%p441_p2)  ;;  %vm798_vm2 = vcmask (!%p441_p2), 64512   ;;  %vm879_vm4 = vcmask (!%p441_p2), 130048  }
   0x8   : > { %1903 = vmatprep.subr.bf16.mxu1 (!%p441_p2), %v1902_v3  ;;  %v1900_v13 = vpack.c.bf16 (!%p441_p2), %v532_v11, %v531_v10  ;;  %vm2176_vm3 = vmpackc.low (!%p441_p2), %vm798_vm2, %vm798_vm2  ;;  %v1718_v31 = vld [vmem:[%s2316_s8] ss:$0 sm:$0xff] (!%p441_p2)  ;;  %v707_v36 = vld [vmem:[%s2314_s6 + $0x8] sm:$0xff] (!%p441_p2)  ;;  %s2030_s19 = smov (!%p441_p2), 104   ;;  %s2031_s20 = smov (!%p441_p2), 8   ;;  %vm1499_vm5 = vcmask (!%p441_p2), 195584  }
   0x9   : > { %1905 = vmatpush3.bf16.msra.mxu1 (!%p441_p2), %v1902_v3  ;;  %1898 = vmatpush3.bf16.msra.mxu0 (!%p441_p2), %v1897_v9  ;;  %v706_v35 = vld [vmem:[%s2314_s6] sm:$0xff] (!%p441_p2)  ;;  %v708_v37 = vld [vmem:[%s2314_s6 + $0x10] sm:$0xff] (!%p441_p2)  ;;  %v709_v39 = vld [vmem:[%s2314_s6 + $0x18] sm:$0xff] (!%p441_p2) }
   0xa   : > { %1907 = vmatprep.subr.bf16.mxu1 (!%p441_p2), %v1906_v8  ;;  %1899 = vmatprep.subr.bf16.mxu0 (!%p441_p2), %v2025_v5  ;;  %v1910_v38 = vpack.c.bf16 (!%p441_p2), %v707_v36, %v706_v35  ;;  %v1914_v40 = vpack.c.bf16 (!%p441_p2), %v709_v39, %v708_v37  ;;  %v1723_v52 = vld [vmem:[%s2318_s10] ss:$0 sm:$0xff] (!%p441_p2) }
   0xd   : > { %s2326_s30 = smov (!%p498_p3, %s1706_s30), 1  ;;  %1909 = vmatpush3.bf16.msra.mxu1 %v1906_v8  ;;  %1901 = vmatpush3.bf16.msra.mxu0 %v1900_v13 }
   0xe   : > { %s2144_s17 = sshll.u32 %s2326_s30, 3  ;;  %s1748_s18 = sshll.u32 %s2326_s30, 4  ;;  %1918 = vmatprep.subr.bf16.mxu1 %v2025_v5  ;;  %1911 = vmatprep.subr.bf16.mxu0 %v1910_v38 }
   0xf   : > { %s510_s21 = scalar_lea.vmem %s2310_s2, %s1748_s18  ;;  %s515_s24 = scalar_lea.vmem %s2311_s3, %s1748_s18 }
  0x10   : > { %v523_v14 = vld [vmem:[%s510_s21] sm:$0xff]  ;;  %v524_v15 = vld [vmem:[%s510_s21 + $0x8] sm:$0xff]  ;;  %s501_s30 = scalar_lea.vmem %s2308_s0, %s2144_s17  ;;  %s505_s15 = scalar_lea.vmem %s2309_s1, %s2144_s17 }
  0x11   : > { %v525_v16 = vld [vmem:[%s515_s24] sm:$0xff]  ;;  %v526_v17 = vld [vmem:[%s515_s24 + $0x8] sm:$0xff]  ;;  %s2028_s21 = smov 120   ;;  %s2029_s18 = smov 112  }
  0x12   : > { %v527_v18 = vadd.f32 %v525_v16, %v523_v14  ;;  %v2161_v19 = vld [vmem:[%s501_s30] sm:$0xff]  ;;  %v528_v20 = vadd.f32 %v526_v17, %v524_v15  ;;  %s519_s25 = scalar_lea.vmem %s2322_s14, %s2144_s17 }
  0x13   : > { %v521_v21 = vld [vmem:[%s505_s15] sm:$0xff]  ;;  %s2033_s15 = smov 24  }
  0x14   : > { %1815 = vmatprep.mubr.msk.f32.mxu1 %vm540_vm1, %v527_v18  ;;  %v522_v22 = vadd.f32 %v521_v21, %v2161_v19 }
  0x15   : > { %1816 = vmatmul.mubr.msk.f32.vlgmr.msra.gmra.mrb[0].mxu1 %vm540_vm1, %v528_v20 }
  0x16   : > { %1805 = vmatmul.mubr.msk.f32.vlgmr.msra.gmra.mrb[0].mxu0 %vm540_vm1, %v522_v22  ;;  %1833 = vmatprep.mubr.msk.f32.mxu1 %vm2026_vm0, %v2027_v12 }
  0x17   : > { %1826 = vmatprep.mubr.msk.f32.mxu0 %vm540_vm1, %v523_v14  ;;  %1913 = vmatpush3.bf16.msra.mxu0 %v1910_v38 }
  0x18   : > { %1915 = vmatprep.subr.bf16.mxu0 %v1914_v40 }
  0x1b   : > { %1917 = vmatpush3.bf16.msra.mxu0 %v1914_v40 }
  0x1c   : > { %1929 = vmatprep.subr.bf16.mxu0 %v2025_v5 }
  0x1e   : > { %1827 = vmatmul.mubr.msk.f32.vlgmr.msra.gmra.mrb[2].mxu0 %vm540_vm1, %v524_v15 }
  0x1f   : > { %1854 = vmatprep.mubr.msk.f32.mxu0 %vm2026_vm0, %v2027_v12 }
  0xe8   : > { %v1817_v24 = vpop.f32.mrb[0].mxu1 }
  0xe9   : > { %v610_v25 = vpop.f32.mrb[0].mxu0  ;;  %v703_v26 = vadd.f32 %v1817_v24, %v1720_v23  ;;  %v697_v27 = vpop.f32.mrb[1].mxu1 }
  0xea   : > { %v1806_v28 = vpop.f32.mrb[1].mxu0  ;;  %v698_v29 = vadd.f32 %v1720_v23, %v697_v27  ;;  %v2189_v34 = vadd.f32 %v1718_v31, %v610_v25 }
  0xec   : > { %v1919_v32 = vpack.c.bf16 %v703_v26, %v698_v29  ;;  %v2183_v33 = vpack.i.bf16 %v703_v26, %v698_v29 }
  0xee   : > { %1970 = vrot.lane.b32.xlu1 %v2183_v33, %s2028_s21  ;;  %1921 = vmatpush3.bf16.xpose.msk.msra.mxu1 %vm2176_vm3, %v1919_v32 }
  0xef   : > { %1922 = vmatprep.subr.bf16.mxu1 %v2025_v5 }
  0xf1   : > { %v1828_v45 = vpop.f32.mrb[2].mxu0 }
  0xf2   : > { %964 = vrot.lane.b32.xlu1 %v2189_v34, %s2028_s21  ;;  %v789_v46 = vpop.f32.mrb[3].mxu0  ;;  %v795_v53 = vadd.f32 %v1828_v45, %v1723_v52 }
  0xf3   : > { %v790_v54 = vadd.f32 %v1723_v52, %v789_v46 }
  0xf5   : > { %1834 = vmatmul.mubr.msk.f32.vlgmr.msra.gmra.mrb[2].mxu1 %vm798_vm2, %v2189_v34  ;;  %v1923_v55 = vpack.c.bf16 %v795_v53, %v790_v54  ;;  %v2219_v56 = vpack.i.bf16 %v795_v53, %v790_v54 }
  0xf6   : > { %1840 = vmatprep.mubr.msk.f32.mxu1 %vm2026_vm0, %v2027_v12 }
  0xf7   : > { %1924 = vmatpush3.bf16.msra.mxu1 %v1923_v55 }
  0xf8   : > { %1925 = vmatprep.subr.bf16.mxu1 %v2025_v5 }
 0x160   : > { %v1971_v58 = vpop.permute.xlu1 %1970 }
 0x161   : > { %v1973_v59 = vunpack.i.h.bf16 %v1971_v58  ;;  %v1972_v60 = vunpack.i.l.bf16 %v1971_v58 }
 0x163   : > { %v1926_v63 = vpack.c.bf16 %v1973_v59, %v1972_v60 }
 0x164   : > { %v965_v0 = vpop.permute.xlu1 %964 }
 0x1c8   : > { %v874_v41 = vpop.f32.mrb[2].mxu1 }
 0x1c9   : > { %v878_v42 = vmul.f32 0.35355338, %v874_v41  ;;  %v1835_v43 = vpop.f32.mrb[3].mxu1 }
 0x1cb   : > { %v880_v44 = vsel %vm879_vm4, %v878_v42, -inf }
 0x1cc   : > { %881 = vmax.xlane.f32.xlu0 %v880_v44 }
 0x259   : > { %v882_v47 = vpop.xlane.xlu0 %881 }
 0x25a   : > { %v883_v48 = vsub.f32 %v878_v42, %v882_v47 }
 0x25c   : > { %v884_v49 = vmul.f32 1.442695, %v883_v48 }
 0x25e   : > { %1999 = vpow2.f32 %v884_v49 }
 0x268   : > { %v2000_v50 = vpop.eup %1999 }
 0x269   : > { %v886_v51 = vsel %vm879_vm4, %v2000_v50, 0.0 }
 0x26a   : > { %887 = vadd.xlane.f32.xlu0 %v886_v51 }
 0x2f7   : > { %v888_v57 = vpop.xlane.xlu0 %887 }
 0x2f8   : > { %2001 = vrcp.f32 %v888_v57 }
 0x302   : > { %v2002_v61 = vpop.eup %2001 }
 0x303   : > { %v890_v62 = vmul.f32 %v2002_v61, %v2000_v50 }
 0x305   : > { %1841 = vmatmul.mubr.msk.f32.vlgmr.msra.gmra.mrb[4].mxu1 %vm879_vm4, %v890_v62 }
 0x306   : > { %1928 = vmatpush3.bf16.xpose.msk.msra.mxu1 %vm2176_vm3, %v1926_v63  ;;  %1847 = vmatprep.mubr.msk.f32.mxu1 %vm2026_vm0, %v2027_v12 }
 0x307   : > { %1936 = vmatprep.subr.bf16.mxu1 %v2025_v5 }
 0x30d   : > { %1848 = vmatmul.mubr.msk.f32.vlgmr.msra.gmra.mrb[6].mxu1 %vm798_vm2, %v965_v0 }
 0x30e   : > { %1868 = vmatprep.mubr.msk.f32.mxu1 %vm2026_vm0, %v2027_v12 }
 0x3d8   : > { %v2231_v1 = vpop.f32.mrb[4].mxu1 }
 0x3d9   : > { %v1842_v2 = vpop.f32.mrb[5].mxu1 }
 0x3e0   : > { %v1042_v3 = vpop.f32.mrb[6].mxu1 }
 0x3e1   : > { %v1046_v4 = vmul.f32 0.35355338, %v1042_v3  ;;  %v1849_v6 = vpop.f32.mrb[7].mxu1 }
 0x3e2   : > { %v1501_v6 = vld [vmem:[%s2315_s7] sm:$0xff] }
 0x3e3   : > { %v1047_v7 = vsel %vm879_vm4, %v1046_v4, -inf }
 0x3e4   : > { %1048 = vmax.xlane.f32.xlu0 %v1047_v7  ;;  %v1502_v7 = vld [vmem:[%s2315_s7 + $0x8] sm:$0xff] }
 0x3fa   : > { %1975 = vrot.lane.b32.xlu0 %v2219_v56, %s2028_s21  ;;  %s2032_s21 = smov 16  }
 0x3fe   : > { %1980 = vrot.lane.b32.xlu0 %v2183_v33, %s2029_s18 }
 0x402   : > { %1139 = vrot.lane.b32.xlu0 %v2189_v34, %s2029_s18 }
 0x471   : > { %v1049_v8 = vpop.xlane.xlu0 %1048 }
 0x472   : > { %v1050_v9 = vsub.f32 %v1046_v4, %v1049_v8  ;;  %v1503_v8 = vld [vmem:[%s2315_s7 + $0x10] sm:$0xff] }
 0x474   : > { %v1051_v10 = vmul.f32 1.442695, %v1050_v9  ;;  %v1947_v9 = vpack.c.bf16 %v1502_v7, %v1501_v6 }
 0x475   : > { %v1976_v11 = vpop.permute.xlu0 %1975 }
 0x476   : > { %2003 = vpow2.f32 %v1051_v10  ;;  %v1978_v13 = vunpack.i.h.bf16 %v1976_v11  ;;  %v1977_v14 = vunpack.i.l.bf16 %v1976_v11  ;;  %v1504_v10 = vld [vmem:[%s2315_s7 + $0x18] sm:$0xff] }
 0x477   : > { %v1950_v11 = vpack.c.bf16 %v1504_v10, %v1503_v8 }
 0x478   : > { %v1930_v15 = vpack.c.bf16 %v1978_v13, %v1977_v14 }
 0x479   : > { %v1981_v23 = vpop.permute.xlu0 %1980 }
 0x47a   : > { %1931 = vmatpush3.bf16.msra.mxu0 %v1930_v15  ;;  %v1983_v25 = vunpack.i.h.bf16 %v1981_v23  ;;  %v1982_v26 = vunpack.i.l.bf16 %v1981_v23 }
 0x47b   : > { %1932 = vmatprep.subr.bf16.mxu0 %v2025_v5 }
 0x47c   : > { %v1933_v29 = vpack.c.bf16 %v1983_v25, %v1982_v26 }
 0x47d   : > { %v1140_v31 = vpop.permute.xlu0 %1139 }
 0x480   : > { %v2004_v16 = vpop.eup %2003 }
 0x481   : > { %v1053_v17 = vsel %vm879_vm4, %v2004_v16, 0.0 }
 0x482   : > { %1054 = vadd.xlane.f32.xlu1 %v1053_v17 }
 0x493   : > { %1985 = vrot.lane.b32.xlu1 %v2219_v56, %s2029_s18 }
 0x497   : > { %1990 = vrot.lane.b32.xlu1 %v2183_v33, %s2030_s19 }
 0x50f   : > { %v1055_v18 = vpop.xlane.xlu1 %1054 }
 0x510   : > { %2005 = vrcp.f32 %v1055_v18 }
 0x513   : > { %v1986_v20 = vpop.permute.xlu1 %1985 }
 0x514   : > { %v1988_v21 = vunpack.i.h.bf16 %v1986_v20  ;;  %v1987_v22 = vunpack.i.l.bf16 %v1986_v20 }
 0x516   : > { %v1937_v24 = vpack.c.bf16 %v1988_v21, %v1987_v22 }
 0x517   : > { %v1991_v44 = vpop.permute.xlu1 %1990 }
 0x518   : > { %1938 = vmatpush3.bf16.msra.mxu1 %v1937_v24  ;;  %v1993_v46 = vunpack.i.h.bf16 %v1991_v44  ;;  %v1992_v47 = vunpack.i.l.bf16 %v1991_v44 }
 0x519   : > { %1939 = vmatprep.subr.bf16.mxu1 %v2025_v5 }
 0x51a   : > { %v2006_v27 = vpop.eup %2005  ;;  %v1940_v50 = vpack.c.bf16 %v1993_v46, %v1992_v47 }
 0x51b   : > { %v1057_v28 = vmul.f32 %v2006_v27, %v2004_v16 }
 0x51d   : > { %1855 = vmatmul.mubr.msk.f32.vlgmr.msra.gmra.mrb[4].mxu0 %vm879_vm4, %v1057_v28 }
 0x51e   : > { %1935 = vmatpush3.bf16.xpose.msk.msra.mxu0 %vm2176_vm3, %v1933_v29  ;;  %1861 = vmatprep.mubr.msk.f32.mxu0 %vm2026_vm0, %v2027_v12 }
 0x51f   : > { %1943 = vmatprep.subr.bf16.mxu0 %v2025_v5 }
 0x525   : > { %1862 = vmatmul.mubr.msk.f32.vlgmr.msra.gmra.mrb[6].mxu0 %vm798_vm2, %v1140_v31 }
 0x526   : > { %1882 = vmatprep.mubr.msk.f32.mxu0 %vm2026_vm0, %v2027_v12 }
 0x5f0   : > { %v1135_v32 = vpop.f32.mrb[4].mxu0 }
 0x5f1   : > { %v1856_v33 = vpop.f32.mrb[5].mxu0 }
 0x5f8   : > { %v1217_v35 = vpop.f32.mrb[6].mxu0 }
 0x5f9   : > { %v1221_v36 = vmul.f32 0.35355338, %v1217_v35  ;;  %v1863_v37 = vpop.f32.mrb[7].mxu0 }
 0x5fa   : > { %v1745_v37 = vld [vmem:[%s2321_s13] ss:$0 sm:$0xff] }
 0x5fb   : > { %v1222_v38 = vsel %vm879_vm4, %v1221_v36, -inf }
 0x5fc   : > { %1223 = vmax.xlane.f32.xlu0 %v1222_v38 }
 0x689   : > { %v1224_v39 = vpop.xlane.xlu0 %1223 }
 0x68a   : > { %v1225_v40 = vsub.f32 %v1221_v36, %v1224_v39 }
 0x68c   : > { %v1226_v41 = vmul.f32 1.442695, %v1225_v40 }
 0x68e   : > { %2007 = vpow2.f32 %v1226_v41 }
 0x698   : > { %v2008_v42 = vpop.eup %2007 }
 0x699   : > { %v1228_v43 = vsel %vm879_vm4, %v2008_v42, 0.0 }
 0x69a   : > { %1229 = vadd.xlane.f32.xlu1 %v1228_v43 }
 0x6ab   : > { %1312 = vrot.lane.b32.xlu1 %v2189_v34, %s2030_s19 }
 0x727   : > { %v1230_v45 = vpop.xlane.xlu1 %1229 }
 0x728   : > { %2009 = vrcp.f32 %v1230_v45 }
 0x72b   : > { %v1313_v51 = vpop.permute.xlu1 %1312 }
 0x732   : > { %v2010_v48 = vpop.eup %2009 }
 0x733   : > { %v1232_v49 = vmul.f32 %v2010_v48, %v2008_v42 }
 0x735   : > { %1869 = vmatmul.mubr.msk.f32.vlgmr.msra.gmra.mrb[8].mxu1 %vm879_vm4, %v1232_v49 }
 0x736   : > { %1942 = vmatpush3.bf16.xpose.msk.msra.mxu1 %vm2176_vm3, %v1940_v50  ;;  %1875 = vmatprep.mubr.msk.f32.mxu1 %vm2026_vm0, %v2027_v12 }
 0x73d   : > { %1876 = vmatmul.mubr.msk.f32.vlgmr.msra.gmra.mrb[10].mxu1 %vm798_vm2, %v1313_v51 }
 0x808   : > { %v1308_v34 = vpop.f32.mrb[8].mxu1 }
 0x809   : > { %v1870_v52 = vpop.f32.mrb[9].mxu1 }
 0x810   : > { %v1390_v53 = vpop.f32.mrb[10].mxu1 }
 0x811   : > { %v1394_v54 = vmul.f32 0.35355338, %v1390_v53  ;;  %v1877_v55 = vpop.f32.mrb[11].mxu1 }
 0x813   : > { %v1395_v57 = vsel %vm879_vm4, %v1394_v54, -inf }
 0x814   : > { %1396 = vmax.xlane.f32.xlu0 %v1395_v57 }
 0x82a   : > { %1995 = vrot.lane.b32.xlu0 %v2219_v56, %s2030_s19 }
 0x82e   : > { %1486 = vrot.lane.b32.xlu0 %v1135_v32, %s2031_s20 }
 0x832   : > { %1490 = vrot.lane.b32.xlu0 %v1308_v34, %s2032_s21 }
 0x8a1   : > { %v1397_v30 = vpop.xlane.xlu0 %1396 }
 0x8a2   : > { %v1398_v58 = vsub.f32 %v1394_v54, %v1397_v30 }
 0x8a4   : > { %v1399_v59 = vmul.f32 1.442695, %v1398_v58 }
 0x8a5   : > { %v1996_v60 = vpop.permute.xlu0 %1995 }
 0x8a6   : > { %2011 = vpow2.f32 %v1399_v59  ;;  %v1998_v61 = vunpack.i.h.bf16 %v1996_v60  ;;  %v1997_v62 = vunpack.i.l.bf16 %v1996_v60 }
 0x8a8   : > { %v1944_v63 = vpack.c.bf16 %v1998_v61, %v1997_v62 }
 0x8a9   : > { %v1487_v14 = vpop.permute.xlu0 %1486 }
 0x8aa   : > { %1945 = vmatpush3.bf16.msra.mxu0 %v1944_v63  ;;  %v1497_v16 = vsel %vm798_vm2, %v2231_v1, %v1487_v14 }
 0x8ab   : > { %1946 = vmatprep.subr.bf16.mxu0 %v2025_v5 }
 0x8ad   : > { %v1491_v15 = vpop.permute.xlu0 %1490 }
 0x8ae   : > { %v1498_v17 = vsel %vm879_vm4, %v1497_v16, %v1491_v15 }
 0x8b0   : > { %v2012_v0 = vpop.eup %2011 }
 0x8b1   : > { %v1401_v2 = vsel %vm879_vm4, %v2012_v0, 0.0 }
 0x8b2   : > { %1402 = vadd.xlane.f32.xlu1 %v1401_v2 }
 0x93f   : > { %v1403_v56 = vpop.xlane.xlu1 %1402 }
 0x940   : > { %2013 = vrcp.f32 %v1403_v56 }
 0x94a   : > { %v2014_v3 = vpop.eup %2013 }
 0x94b   : > { %v1405_v4 = vmul.f32 %v2014_v3, %v2012_v0 }
 0x94d   : > { %1883 = vmatmul.mubr.msk.f32.vlgmr.msra.gmra.mrb[8].mxu0 %vm879_vm4, %v1405_v4 }
 0x94e   : > { %1893 = vmatprep.mubr.msk.f32.mxu0 %vm2026_vm0, %v2027_v12  ;;  %1948 = vmatpush3.bf16.msra.mxu0 %v1947_v9 }
 0x94f   : > { %1949 = vmatprep.subr.bf16.mxu0 %v2025_v5  ;;  %v1742_v5 = vld [vmem:[%s2319_s11] ss:$0 sm:$0xff] }
 0x952   : > { %1951 = vmatpush3.bf16.msra.mxu0 %v1950_v11 }
 0xa20   : > { %v1481_v12 = vpop.f32.mrb[8].mxu0 }
 0xa21   : > { %1494 = vrot.lane.b32.xlu0 %v1481_v12, %s2033_s15  ;;  %v1884_v13 = vpop.f32.mrb[9].mxu0 }
 0xa93   : > { %v1495_v18 = vpop.permute.xlu0 %1494 }
 0xa94   : > { %v1500_v20 = vsel %vm1499_vm5, %v1498_v17, %v1495_v18 }
 0xa95   : > { %1894 = vmatmul.mubr.msk.f32.vlgmr.msra.gmra.mrb[10].mxu0 %vm540_vm1, %v1500_v20 }
 0xb68   : > { %v1581_v21 = vpop.f32.mrb[10].mxu0 }
 0xb69   : > { %v1582_v22 = vadd.f32 %v1742_v5, %v1581_v21  ;;  %v1895_v23 = vpop.f32.mrb[11].mxu0 }
 0xb6b   : > { %v1585_v24 = vadd.f32 %v1582_v22, %v2161_v19  ;;  %v1744_v19 = vld [vmem:[%s2320_s12] ss:$0 sm:$0xff] }
 0xb6d   : > { %v1586_v25 = vsel %vm540_vm1, %v1585_v24, 0.0 }
 0xb6e   : > { %1587 = vadd.xlane.f32.xlu1 %v1586_v25 }
 0xbfb   : > { %v1588_v1 = vpop.xlane.xlu1 %1587 }
 0xbfc   : > { %v1590_v26 = vmul.f32 0.03125, %v1588_v1 }
 0xbfe   : > { %v1591_v27 = vsub.f32 %v1585_v24, %v1590_v26 }
 0xc00   : > { %v1592_v28 = vmul.f32 %v1591_v27, %v1591_v27 }
 0xc02   : > { %v1593_v29 = vsel %vm540_vm1, %v1592_v28, 0.0 }
 0xc03   : > { %1594 = vadd.xlane.f32.xlu0 %v1593_v29 }
 0xc90   : > { %v1595_v31 = vpop.xlane.xlu0 %1594 }
 0xc91   : > { %v1596_v32 = vmul.f32 0.03125, %v1595_v31 }
 0xc93   : > { %v1597_v33 = vadd.f32 1e-05, %v1596_v32 }
 0xc95   : > { %2015 = vrsqrt.f32 %v1597_v33 }
 0xc9f   : > { %v2016_v35 = vpop.eup %2015 }
 0xca0   : > { %v1599_v36 = vmul.f32 %v2016_v35, %v1591_v27 }
 0xca2   : > { %v1607_v38 = vmul.f32 %v1744_v19, %v1599_v36 }
 0xca4   : > { %v1615_v39 = vadd.f32 %v1745_v37, %v1607_v38 }
 0xca6   : > { %1616 = vst.msk [vmem:[%s519_s25] sm:$0xff] %vm540_vm1, %v1615_v39 }
 0xca7 PF: > { %s24_s29 = sadd.s32 1, %s2023_s29  }
 0xca8   : > { %p21_p4 = scmp.ge.s32.totalorder %s24_s29, 4  }
 0xcaa   :  { %23 = sbr.rel (!%p21_p4) target bundleno = 1 (0x1), region = 115 }

// kernel: dca_encoder_layer_forward.14
= control target key start
LH: loop header
LB: loop body
LE: loop exit
PB: predicated region body
PF: predicated region fallthrough
CT: control target
= control target key end

     0   :  { %s1917_s29 = smov 0   ;;  %s2070_s0 = inlined_call_operand.vmem [shape: f32[2,8,16], index: 0, kind: input, shape index: {}, may-alias: {0,2}]   ;;  %s2071_s1 = inlined_call_operand.vmem [shape: f32[2,8,16], index: 1, kind: input, shape index: {}, may-alias: {1,3}]   ;;  %s2072_s2 = inlined_call_operand.vmem [shape: f32[2,8,16], index: 2, kind: input, shape index: {}, may-alias: {0,2}]   ;;  %s2073_s3 = inlined_call_operand.vmem [shape: f32[2,8,16], index: 3, kind: input, shape index: {}, may-alias: {1,3}]   ;;  %s2074_s4 = inlined_call_operand.vmem [shape: f32[16,16], index: 4, kind: input, shape index: {}]   ;;  %s2075_s5 = inlined_call_operand.vmem [shape: f32[16,16], index: 5, kind: input, shape index: {}]   ;;  %s2076_s6 = inlined_call_operand.vmem [shape: f32[16,16], index: 6, kind: input, shape index: {}]   ;;  %s2077_s7 = inlined_call_operand.vmem [shape: f32[16,16], index: 7, kind: input, shape index: {}]   ;;  %s2078_s8 = inlined_call_operand.vmem [shape: f32[1,16], index: 8, kind: input, shape index: {}]   ;;  %s2079_s9 = inlined_call_operand.vmem [shape: f32[1,16], index: 9, kind: input, shape index: {}]   ;;  %s2080_s10 = inlined_call_operand.vmem [shape: f32[1,16], index: 10, kind: input, shape index: {}]   ;;  %s2081_s11 = inlined_call_operand.vmem [shape: f32[1,16], index: 11, kind: input, shape index: {}]   ;;  %s2082_s12 = inlined_call_operand.vmem [shape: f32[1,16], index: 12, kind: input, shape index: {}]   ;;  %s2083_s13 = inlined_call_operand.vmem [shape: f32[1,16], index: 13, kind: input, shape index: {}]   ;;  %s2084_s14 = inlined_call_operand.vmem [shape: f32[2,8,16], index: 14, kind: output, shape index: {}]  }
   0x1 LB: > { %s1648_s30 = sadd.s32 4294967295, %s1831_s29   ;;  %p1652_p0 = scmp.ge.s32.totalorder %s1831_s29, 1  ;;  %s1831_s29 = sphi %s1917_s29, %s24_s29  }
   0x2   : > { %p438_p1 = scmp.lt.s32.totalorder %s1831_s29, 3 }
   0x4   : > { %p439_p2 = pnand %p1652_p0, %p438_p1 }
   0x5   : > { %v603_v0 = vld [vmem:[%s2075_s5] sm:$0xff] (!%p439_p2)  ;;  %v604_v1 = vld [vmem:[%s2075_s5 + $0x8] sm:$0xff] (!%p439_p2)  ;;  %v1833_v3 = vmov (!%p439_p2), 0.0|0.0   ;;  %p494_p3 = scmp.lt.s32.totalorder (!%p439_p2), %s1648_s30, 1  ;;  %vm1834_vm0 = vmmov (!%p439_p2), 0   ;;  %v1835_v6 = vmov (!%p439_p2), 0.0  }
   0x6   : > { %442 = sbr.rel (%p439_p2) target bundleno = 1748 (0x6d4), region = 76  ;;  %v520_v2 = vld [vmem:[%s2074_s4] sm:$0xff] (!%p439_p2)  ;;  %1781 = vmatprep.subr.bf16.mxu1 (!%p439_p2), %v1833_v3  ;;  %v1782_v4 = vpack.c.bf16 (!%p439_p2), %v604_v1, %v603_v0  ;;  %1778 = vmatprep.subr.bf16.mxu0 (!%p439_p2), %v1833_v3  ;;  %v521_v5 = vld [vmem:[%s2074_s4 + $0x8] sm:$0xff] (!%p439_p2)  ;;  %vm529_vm1 = vcmask (!%p439_p2), 130048   ;;  %vm767_vm2 = vcmask (!%p439_p2), 31744   ;;  %s1837_s27 = smov (!%p439_p2), 124  }
   0x7   : > { %1721 = vmatprep.mubr.msk.f32.mxu1 (!%p439_p2), %vm1834_vm0, %v1835_v6  ;;  %v1779_v7 = vpack.c.bf16 (!%p439_p2), %v521_v5, %v520_v2  ;;  %1714 = vmatprep.mubr.msk.f32.mxu0 (!%p439_p2), %vm1834_vm0, %v1835_v6  ;;  %v1660_v14 = vld [vmem:[%s2079_s9] ss:$0 sm:$0xff] (!%p439_p2)  ;;  %v686_v23 = vld [vmem:[%s2076_s6 + $0x8] sm:$0xff] (!%p439_p2)  ;;  %vm845_vm3 = vcmask (!%p439_p2), 64512   ;;  %s1839_s25 = smov (!%p439_p2), 4   ;;  %vm1443_vm4 = vcmask (!%p439_p2), 97280  }
   0x8   : > { %1783 = vmatpush3.bf16.msra.mxu1 (!%p439_p2), %v1782_v4  ;;  %v1658_v16 = vld [vmem:[%s2078_s8] ss:$0 sm:$0xff] (!%p439_p2) }
   0x9   : > { %1780 = vmatpush3.bf16.msra.mxu0 (!%p439_p2), %v1779_v7  ;;  %1731 = vmatprep.subr.mxu1 (!%p439_p2), %v1835_v6  ;;  %v685_v22 = vld [vmem:[%s2076_s6] sm:$0xff] (!%p439_p2) }
   0xa   : > { %1784 = vmatprep.subr.bf16.mxu0 (!%p439_p2), %v1833_v3  ;;  %v1785_v24 = vpack.c.bf16 (!%p439_p2), %v686_v23, %v685_v22  ;;  %v1662_v32 = vld [vmem:[%s2080_s10] ss:$0 sm:$0xff] (!%p439_p2) }
   0xd   : > { %s2086_s30 = smov (!%p494_p3, %s1648_s30), 1 }
   0xe   : > { %s1944_s23 = sshll.u32 %s2086_s30, 3 }
   0xf   : > { %s505_s26 = scalar_lea.vmem %s2072_s2, %s1944_s23  ;;  %s509_s15 = scalar_lea.vmem %s2073_s3, %s1944_s23 }
  0x10   : > { %v517_v8 = vld [vmem:[%s505_s26] sm:$0xff]  ;;  %s497_s17 = scalar_lea.vmem %s2070_s0, %s1944_s23  ;;  %s501_s20 = scalar_lea.vmem %s2071_s1, %s1944_s23 }
  0x11   : > { %v518_v9 = vld [vmem:[%s509_s15] sm:$0xff]  ;;  %s1836_s26 = smov 120   ;;  %s513_s21 = scalar_lea.vmem %s2084_s14, %s1944_s23 }
  0x12   : > { %v519_v10 = vadd.f32 %v518_v9, %v517_v8  ;;  %v1963_v11 = vld [vmem:[%s497_s17] sm:$0xff]  ;;  %s1838_s17 = smov 116  }
  0x13   : > { %v515_v12 = vld [vmem:[%s501_s20] sm:$0xff] }
  0x14   : > { %1722 = vmatmul.mubr.msk.f32.vlgmr.msra.gmra.mrb[0].mxu1 %vm529_vm1, %v519_v10  ;;  %v516_v13 = vadd.f32 %v515_v12, %v1963_v11 }
  0x15   : > { %1733 = vmatprep.mubr.msk.f32.mxu1 %vm1834_vm0, %v1835_v6 }
  0x16   : > { %1715 = vmatmul.mubr.msk.f32.vlgmr.msra.gmra.mrb[0].mxu0 %vm529_vm1, %v516_v13 }
  0x17   : > { %1728 = vmatprep.mubr.msk.f32.mxu0 %vm1834_vm0, %v1835_v6  ;;  %1786 = vmatpush3.bf16.msra.mxu0 %v1785_v24 }
  0x18   : > { %1736 = vmatprep.subr.mxu0 %v1835_v6 }
  0x1a   : > { %1729 = vmatmul.mubr.msk.f32.vlgmr.msra.gmra.mrb[2].mxu0 %vm529_vm1, %v517_v8 }
  0x1b   : > { %1738 = vmatprep.mubr.msk.f32.mxu0 %vm1834_vm0, %v1835_v6 }
  0xe7   : > { %v681_v15 = vpop.f32.mrb[0].mxu1 }
  0xe8   : > { %v682_v17 = vadd.f32 %v1660_v14, %v681_v15  ;;  %v1723_v18 = vpop.f32.mrb[1].mxu1 }
  0xe9   : > { %v599_v19 = vpop.f32.mrb[0].mxu0 }
  0xea   : > { %1099 = vrot.lane.b32.xlu1 %v682_v17, %s1836_s26  ;;  %932 = vrot.lane.b32.xlu0 %v682_v17, %s1837_s27  ;;  %v600_v20 = vadd.f32 %v1658_v16, %v599_v19  ;;  %v1716_v21 = vpop.f32.mrb[1].mxu0 }
  0xeb   : > { %1732 = vmatpush3.xpose.msk.msra.mxu1 %vm767_vm2, %v682_v17 }
  0xec   : > { %1741 = vmatprep.subr.mxu1 %v1835_v6 }
  0xed   : > { %v763_v35 = vpop.f32.mrb[2].mxu0 }
  0xee   : > { %1734 = vmatmul.mubr.msk.f32.vlgmr.msra.gmra.mrb[2].mxu1 %vm767_vm2, %v600_v20  ;;  %1097 = vrot.lane.b32.xlu1 %v600_v20, %s1836_s26  ;;  %v764_v37 = vadd.f32 %v1662_v32, %v763_v35  ;;  %v1730_v38 = vpop.f32.mrb[3].mxu0 }
  0xef   : > { %930 = vrot.lane.b32.xlu0 %v600_v20, %s1837_s27  ;;  %1743 = vmatprep.mubr.msk.f32.mxu1 %vm1834_vm0, %v1835_v6 }
  0xf0   : > { %1737 = vmatpush3.msra.mxu0 %v764_v37 }
  0xf1   : > { %1746 = vmatprep.subr.mxu0 %v1835_v6 }
  0xf2   : > { %1263 = vrot.lane.b32.xlu1 %v600_v20, %s1838_s17 }
  0xf3   : > { %1265 = vrot.lane.b32.xlu0 %v682_v17, %s1838_s17 }
 0x15c   : > { %v933_v25 = vpop.permute.xlu0 %932  ;;  %v1100_v26 = vpop.permute.xlu1 %1099 }
 0x15d   : > { %1742 = vmatpush3.xpose.msk.msra.mxu1 %vm767_vm2, %v933_v25 }
 0x15e   : > { %1751 = vmatprep.subr.mxu1 %v1835_v6 }
 0x160   : > { %v1098_v28 = vpop.permute.xlu1 %1097 }
 0x161   : > { %v931_v27 = vpop.permute.xlu0 %930 }
 0x162   : > { %1744 = vmatmul.mubr.msk.f32.vlgmr.msra.gmra.mrb[4].mxu1 %vm767_vm2, %v931_v27  ;;  %v1446_v27 = vld [vmem:[%s2077_s7 + $0x8] sm:$0xff] }
 0x163   : > { %1752 = vmatpush3.xpose.msk.msra.mxu1 %vm767_vm2, %v1100_v26  ;;  %1753 = vmatprep.mubr.msk.f32.mxu1 %vm1834_vm0, %v1835_v6  ;;  %v1445_v26 = vld [vmem:[%s2077_s7] sm:$0xff] }
 0x164   : > { %1761 = vmatprep.subr.mxu1 %v1835_v6  ;;  %v1264_v30 = vpop.permute.xlu1 %1263 }
 0x165   : > { %v1266_v29 = vpop.permute.xlu0 %1265 }
 0x166   : > { %1754 = vmatmul.mubr.msk.f32.vlgmr.msra.gmra.mrb[6].mxu1 %vm767_vm2, %v1098_v28  ;;  %v1788_v28 = vpack.c.bf16 %v1446_v27, %v1445_v26 }
 0x167   : > { %1762 = vmatpush3.xpose.msk.msra.mxu1 %vm767_vm2, %v1266_v29  ;;  %1763 = vmatprep.mubr.msk.f32.mxu1 %vm1834_vm0, %v1835_v6 }
 0x168   : > { %1787 = vmatprep.subr.bf16.mxu1 %v1833_v3 }
 0x16a   : > { %1764 = vmatmul.mubr.msk.f32.vlgmr.msra.gmra.mrb[8].mxu1 %vm767_vm2, %v1264_v30 }
 0x16b   : > { %1775 = vmatprep.mubr.msk.f32.mxu1 %vm1834_vm0, %v1835_v6  ;;  %1789 = vmatpush3.bf16.msra.mxu1 %v1788_v28 }
 0x1c1   : > { %v840_v31 = vpop.f32.mrb[2].mxu1 }
 0x1c2   : > { %v844_v33 = vmul.f32 0.5, %v840_v31  ;;  %v1735_v34 = vpop.f32.mrb[3].mxu1 }
 0x1c4   : > { %v846_v36 = vsel %vm845_vm3, %v844_v33, -inf }
 0x1c5   : > { %847 = vmax.xlane.f32.xlu0 %v846_v36 }
 0x235   : > { %v1004_v39 = vpop.f32.mrb[4].mxu1 }
 0x236   : > { %v1008_v40 = vmul.f32 0.5, %v1004_v39  ;;  %v1745_v41 = vpop.f32.mrb[5].mxu1 }
 0x238   : > { %v1009_v42 = vsel %vm845_vm3, %v1008_v40, -inf }
 0x239   : > { %1010 = vmax.xlane.f32.xlu1 %v1009_v42  ;;  %v1171_v43 = vpop.f32.mrb[6].mxu1 }
 0x23a   : > { %v1175_v44 = vmul.f32 0.5, %v1171_v43  ;;  %v1755_v45 = vpop.f32.mrb[7].mxu1 }
 0x23c   : > { %v1176_v46 = vsel %vm845_vm3, %v1175_v44, -inf }
 0x23d   : > { %1177 = vmax.xlane.f32.xlu0 %v1176_v46  ;;  %v1337_v47 = vpop.f32.mrb[8].mxu1 }
 0x23e   : > { %v1341_v48 = vmul.f32 0.5, %v1337_v47  ;;  %v1765_v49 = vpop.f32.mrb[9].mxu1 }
 0x240   : > { %v1342_v50 = vsel %vm845_vm3, %v1341_v48, -inf }
 0x241   : > { %1343 = vmax.xlane.f32.xlu0 %v1342_v50 }
 0x24a   : > { %1021 = vrot.lane.b32.xlu1 %v764_v37, %s1837_s27  ;;  %s1841_s27 = smov 12  }
 0x252   : > { %v848_v51 = vpop.xlane.xlu0 %847 }
 0x253   : > { %v849_v52 = vsub.f32 %v844_v33, %v848_v51 }
 0x255   : > { %v850_v53 = vmul.f32 1.442695, %v849_v52 }
 0x257   : > { %1807 = vpow2.f32 %v850_v53 }
 0x261   : > { %v1808_v54 = vpop.eup %1807 }
 0x262   : > { %v852_v55 = vsel %vm845_vm3, %v1808_v54, 0.0 }
 0x26e   : > { %853 = vadd.xlane.f32.xlu1 %v852_v55 }
 0x2c6   : > { %v1011_v56 = vpop.xlane.xlu1 %1010 }
 0x2c7   : > { %v1012_v57 = vsub.f32 %v1008_v40, %v1011_v56  ;;  %v1676_v40 = vld [vmem:[%s2081_s11] ss:$0 sm:$0xff] }
 0x2c8   : > { %v1679_v56 = vld [vmem:[%s2083_s13] ss:$0 sm:$0xff] }
 0x2c9   : > { %v1013_v58 = vmul.f32 1.442695, %v1012_v57 }
 0x2ca   : > { %v1178_v59 = vpop.xlane.xlu0 %1177  ;;  %v1022_v8 = vpop.permute.xlu1 %1021 }
 0x2cb   : > { %1809 = vpow2.f32 %v1013_v58  ;;  %v1179_v60 = vsub.f32 %v1175_v44, %v1178_v59 }
 0x2cd   : > { %v1180_v61 = vmul.f32 1.442695, %v1179_v60 }
 0x2ce   : > { %v1344_v62 = vpop.xlane.xlu0 %1343 }
 0x2cf   : > { %1811 = vpow2.f32 %v1180_v61  ;;  %v1345_v63 = vsub.f32 %v1341_v48, %v1344_v62 }
 0x2d1   : > { %v1346_v0 = vmul.f32 1.442695, %v1345_v63 }
 0x2d3   : > { %1813 = vpow2.f32 %v1346_v0 }
 0x2d5   : > { %v1810_v1 = vpop.eup %1809 }
 0x2d6   : > { %v1015_v2 = vsel %vm845_vm3, %v1810_v1, 0.0 }
 0x2d7   : > { %1016 = vadd.xlane.f32.xlu0 %v1015_v2 }
 0x2d9   : > { %v1812_v3 = vpop.eup %1811 }
 0x2da   : > { %v1182_v4 = vsel %vm845_vm3, %v1812_v3, 0.0 }
 0x2db   : > { %1183 = vadd.xlane.f32.xlu1 %v1182_v4 }
 0x2dd   : > { %v1814_v5 = vpop.eup %1813 }
 0x2de   : > { %v1348_v7 = vsel %vm845_vm3, %v1814_v5, 0.0 }
 0x2df   : > { %1349 = vadd.xlane.f32.xlu0 %v1348_v7 }
 0x2ec   : > { %1353 = vrot.lane.b32.xlu1 %v764_v37, %s1838_s17 }
 0x2f5   : > { %1187 = vrot.lane.b32.xlu0 %v764_v37, %s1836_s26  ;;  %s1840_s26 = smov 8  }
 0x2fb   : > { %v854_v9 = vpop.xlane.xlu1 %853 }
 0x2fc   : > { %1815 = vrcp.f32 %v854_v9 }
 0x306   : > { %v1816_v10 = vpop.eup %1815 }
 0x307   : > { %v856_v12 = vmul.f32 %v1816_v10, %v1808_v54 }
 0x309   : > { %1739 = vmatmul.mubr.msk.f32.vlgmr.msra.gmra.mrb[4].mxu0 %vm845_vm3, %v856_v12 }
 0x30a   : > { %1747 = vmatpush3.msra.mxu0 %v1022_v8  ;;  %1748 = vmatprep.mubr.msk.f32.mxu0 %vm1834_vm0, %v1835_v6 }
 0x30b   : > { %1756 = vmatprep.subr.mxu0 %v1835_v6 }
 0x364   : > { %v1017_v13 = vpop.xlane.xlu0 %1016 }
 0x365   : > { %1817 = vrcp.f32 %v1017_v13 }
 0x368   : > { %v1184_v14 = vpop.xlane.xlu1 %1183 }
 0x369   : > { %1819 = vrcp.f32 %v1184_v14 }
 0x36c   : > { %v1350_v15 = vpop.xlane.xlu0 %1349  ;;  %v1354_v21 = vpop.permute.xlu1 %1353 }
 0x36d   : > { %1821 = vrcp.f32 %v1350_v15 }
 0x36f   : > { %v1818_v16 = vpop.eup %1817 }
 0x370   : > { %v1019_v17 = vmul.f32 %v1818_v16, %v1810_v1  ;;  %v1188_v18 = vpop.permute.xlu0 %1187 }
 0x372   : > { %1749 = vmatmul.mubr.msk.f32.vlgmr.msra.gmra.mrb[6].mxu0 %vm845_vm3, %v1019_v17 }
 0x373   : > { %v1820_v19 = vpop.eup %1819  ;;  %1757 = vmatpush3.msra.mxu0 %v1188_v18  ;;  %1758 = vmatprep.mubr.msk.f32.mxu0 %vm1834_vm0, %v1835_v6 }
 0x374   : > { %v1186_v20 = vmul.f32 %v1820_v19, %v1812_v3  ;;  %1766 = vmatprep.subr.mxu0 %v1835_v6 }
 0x376   : > { %1759 = vmatmul.mubr.msk.f32.vlgmr.msra.gmra.mrb[8].mxu0 %vm845_vm3, %v1186_v20 }
 0x377   : > { %v1822_v22 = vpop.eup %1821  ;;  %1767 = vmatpush3.msra.mxu0 %v1354_v21  ;;  %1768 = vmatprep.mubr.msk.f32.mxu0 %vm1834_vm0, %v1835_v6 }
 0x378   : > { %v1352_v23 = vmul.f32 %v1822_v22, %v1814_v5 }
 0x37a   : > { %1769 = vmatmul.mubr.msk.f32.vlgmr.msra.gmra.mrb[10].mxu0 %vm845_vm3, %v1352_v23 }
 0x3dc   : > { %v926_v24 = vpop.f32.mrb[4].mxu0 }
 0x3dd   : > { %v1740_v25 = vpop.f32.mrb[5].mxu0 }
 0x445   : > { %v1093_v29 = vpop.f32.mrb[6].mxu0 }
 0x446   : > { %1430 = vrot.lane.b32.xlu1 %v1093_v29, %s1839_s25  ;;  %v1750_v30 = vpop.f32.mrb[7].mxu0 }
 0x449   : > { %v1259_v6 = vpop.f32.mrb[8].mxu0 }
 0x44a   : > { %1434 = vrot.lane.b32.xlu0 %v1259_v6, %s1840_s26  ;;  %v1760_v31 = vpop.f32.mrb[9].mxu0 }
 0x44d   : > { %v1425_v32 = vpop.f32.mrb[10].mxu0 }
 0x44e   : > { %1438 = vrot.lane.b32.xlu1 %v1425_v32, %s1841_s27  ;;  %v1770_v33 = vpop.f32.mrb[11].mxu0 }
 0x4b8   : > { %v1431_v34 = vpop.permute.xlu1 %1430 }
 0x4b9   : > { %v1441_v36 = vsel %vm767_vm2, %v926_v24, %v1431_v34 }
 0x4bc   : > { %v1435_v35 = vpop.permute.xlu0 %1434 }
 0x4bd   : > { %v1442_v37 = vsel %vm845_vm3, %v1441_v36, %v1435_v35 }
 0x4c0   : > { %v1439_v38 = vpop.permute.xlu1 %1438 }
 0x4c1   : > { %v1444_v39 = vsel %vm1443_vm4, %v1442_v37, %v1439_v38 }
 0x4c2   : > { %1776 = vmatmul.mubr.msk.f32.vlgmr.msra.gmra.mrb[10].mxu1 %vm529_vm1, %v1444_v39 }
 0x595   : > { %v1523_v41 = vpop.f32.mrb[10].mxu1 }
 0x596   : > { %v1524_v42 = vadd.f32 %v1676_v40, %v1523_v41  ;;  %v1777_v43 = vpop.f32.mrb[11].mxu1 }
 0x598   : > { %v1527_v44 = vadd.f32 %v1524_v42, %v1963_v11  ;;  %v1678_v11 = vld [vmem:[%s2082_s12] ss:$0 sm:$0xff] }
 0x59a   : > { %v1528_v45 = vsel %vm529_vm1, %v1527_v44, 0.0 }
 0x59b   : > { %1529 = vadd.xlane.f32.xlu0 %v1528_v45 }
 0x628   : > { %v1530_v46 = vpop.xlane.xlu0 %1529 }
 0x629   : > { %v1532_v47 = vmul.f32 0.0625, %v1530_v46 }
 0x62b   : > { %v1533_v48 = vsub.f32 %v1527_v44, %v1532_v47 }
 0x62d   : > { %v1534_v49 = vmul.f32 %v1533_v48, %v1533_v48 }
 0x62f   : > { %v1535_v50 = vsel %vm529_vm1, %v1534_v49, 0.0 }
 0x630   : > { %1536 = vadd.xlane.f32.xlu1 %v1535_v50 }
 0x6bd   : > { %v1537_v51 = vpop.xlane.xlu1 %1536 }
 0x6be   : > { %v1538_v52 = vmul.f32 0.0625, %v1537_v51 }
 0x6c0   : > { %v1539_v53 = vadd.f32 1e-05, %v1538_v52 }
 0x6c2   : > { %1823 = vrsqrt.f32 %v1539_v53 }
 0x6cc   : > { %v1824_v54 = vpop.eup %1823 }
 0x6cd   : > { %v1541_v55 = vmul.f32 %v1824_v54, %v1533_v48 }
 0x6cf   : > { %v1549_v57 = vmul.f32 %v1678_v11, %v1541_v55 }
 0x6d1   : > { %v1557_v58 = vadd.f32 %v1679_v56, %v1549_v57 }
 0x6d3   : > { %1558 = vst.msk [vmem:[%s513_s21] sm:$0xff] %vm529_vm1, %v1557_v58 }
 0x6d4 PF: > { %s24_s29 = sadd.s32 1, %s1831_s29  }
 0x6d5   : > { %p21_p4 = scmp.ge.s32.totalorder %s24_s29, 4  }
 0x6d7   :  { %23 = sbr.rel (!%p21_p4) target bundleno = 1 (0x1), region = 115 }

</bundles_post_ra>
